<compile_context>
chip_gen: v6e
topology: v6e:2x2x1
jax: 0.10.0
libtpu: 0.0.40
codegen_flags: <defaults>
</compile_context>

<pallas_src>
import functools

import jax
import jax.numpy as jnp
from jax.experimental import pallas as pl
from jax.experimental.pallas import tpu as pltpu

BN_EPS = 1e-5


def dcrnn_kernel(
    x_ref,      # (T*N, Din)  node features, all timesteps stacked
    h_ref,      # (2N, H)     initial hidden states: rows [0:N]=layer1, [N:2N]=layer2
    w12a_ref,   # (Din, H)    layer-1 folded graph-conv weight (w1 + w2)
    w12b_ref,   # (H, H)      layer-2 folded graph-conv weight
    w3_ref,     # (4H, 3H)    rows: [wi3_L1 ; wh3_L1 ; wi3_L2 ; wh3_L2]
    bvec_ref,   # (4, 3H)     rows: [bi3_L1, bh3_L1, bi3_L2, bh3_L2]
    small_ref,  # (6, H)      rows: [b12_1, gamma1, beta1, b12_2, gamma2, beta2]
    wfc_ref,    # (H+1, 1)    rows [0:H] = fc weight, row H = fc bias
    out_ref,    # (T, N, 1)   fc output
    h1_ref,     # (T, N, H)   layer-1 hidden sequence (post-BN)
    h2_ref,     # (T, N, H)   layer-2 hidden sequence (post-BN)
    *, T, N, H,
):
    def cell(x_flat, w12, wi3, wh3, bi3, bh3, b12, gamma, beta, h0, out_h_ref):
        # Folded graph conv: ReLU(x @ (w1+w2) + (b1+b2)); one matmul, M = T*N.
        g = jnp.dot(x_flat, w12, preferred_element_type=jnp.float32) + b12
        g = jnp.maximum(g, 0.0)

        # Input-side gate pre-activations for every timestep at once: (T*N, 3H).
        gi = jnp.dot(g, wi3, preferred_element_type=jnp.float32) + bi3

        # Hidden-side pre-activations are t-invariant (h not carried): once.
        hh = jnp.dot(h0, wh3, preferred_element_type=jnp.float32) + bh3
        hh_r = hh[:, 0:H]
        hh_z = hh[:, H:2 * H]
        hh_n = hh[:, 2 * H:3 * H]

        # Per-timestep gate math + BatchNorm.  T is small and static -> unrolled;
        # every row slice starts at a multiple of N (= multiple of 8 sublanes).
        ys = []
        for t in range(T):
            gi_t = gi[t * N:(t + 1) * N, :]
            r = jax.nn.sigmoid(gi_t[:, 0:H] + hh_r)
            z = jax.nn.sigmoid(gi_t[:, H:2 * H] + hh_z)
            n = jnp.tanh(gi_t[:, 2 * H:3 * H] + r * hh_n)
            h_t = (1.0 - z) * n + z * h0

            # BatchNorm1d (training mode): stats over nodes, biased variance.
            mean = jnp.mean(h_t, axis=0, keepdims=True)
            xc = h_t - mean
            var = jnp.mean(xc * xc, axis=0, keepdims=True)
            y_t = xc * jax.lax.rsqrt(var + BN_EPS) * gamma + beta

            out_h_ref[t] = y_t.astype(out_h_ref.dtype)
            ys.append(y_t)
        return jnp.concatenate(ys, axis=0)   # (T*N, H) feeds the next layer

    h1_0 = h_ref[0:N, :]
    h2_0 = h_ref[N:2 * N, :]

    y1 = cell(x_ref[...], w12a_ref[...],
              w3_ref[0:H, :], w3_ref[H:2 * H, :],
              bvec_ref[0:1, :], bvec_ref[1:2, :],
              small_ref[0:1, :], small_ref[1:2, :], small_ref[2:3, :],
              h1_0, h1_ref)

    y2 = cell(y1, w12b_ref[...],
              w3_ref[2 * H:3 * H, :], w3_ref[3 * H:4 * H, :],
              bvec_ref[2:3, :], bvec_ref[3:4, :],
              small_ref[3:4, :], small_ref[4:5, :], small_ref[5:6, :],
              h2_0, h2_ref)

    # Final fc: one matmul over all timesteps, M = T*N.
    o = jnp.dot(y2, wfc_ref[0:H, :], preferred_element_type=jnp.float32) + wfc_ref[H:H + 1, :]
    for t in range(T):
        out_ref[t] = o[t * N:(t + 1) * N, :].astype(out_ref.dtype)


def dcrnn_forward(x, params, h=None):
    """x: [T, N, Din] float32 -> (out [T, N, 1], [h1 [T,N,H], h2 [T,N,H]])."""
    T, N, Din = x.shape
    layers = params["layers"]
    assert len(layers) == 2, "kernel is specialized for num_layers = 2"
    H = layers[0]["w1"].shape[1]
    if h is None:
        h = [jnp.zeros((N, H), jnp.float32) for _ in range(len(layers))]

    # Wrapper-side exact algebraic folding / packing (valid because conv1 and
    # conv2 see the same input, and h0 is reused unchanged for every timestep).
    def pack_layer(p):
        w12 = p["w1"] + p["w2"]                                              # (Din, H)
        b12 = p["b1"] + p["b2"]                                              # (1, H)
        wi3 = jnp.concatenate([p["wir"], p["wiz"], p["win"]], axis=1)        # (H, 3H)
        wh3 = jnp.concatenate([p["whr"], p["whz"], p["whn"]], axis=1)        # (H, 3H)
        bi3 = jnp.concatenate([p["bir"] + p["bhr"],
                               p["biz"] + p["bhz"],
                               p["bin"]], axis=1)                            # (1, 3H)
        bh3 = jnp.concatenate([jnp.zeros_like(p["bhr"]),
                               jnp.zeros_like(p["bhz"]),
                               p["bhn"]], axis=1)                            # (1, 3H)
        small = jnp.concatenate([b12, p["gamma"], p["beta"]], axis=0)        # (3, H)
        return w12, wi3, wh3, bi3, bh3, small

    w12_1, wi3_1, wh3_1, bi3_1, bh3_1, small_1 = pack_layer(layers[0])
    w12_2, wi3_2, wh3_2, bi3_2, bh3_2, small_2 = pack_layer(layers[1])

    w3cat = jnp.concatenate([wi3_1, wh3_1, wi3_2, wh3_2], axis=0)            # (4H, 3H)
    bvec = jnp.concatenate([bi3_1, bh3_1, bi3_2, bh3_2], axis=0)             # (4, 3H)
    small = jnp.concatenate([small_1, small_2], axis=0)                      # (6, H)
    hcat = jnp.concatenate(h, axis=0)                                        # (2N, H)
    wfcb = jnp.concatenate([params["fc_w"], params["fc_b"]], axis=0)         # (H+1, 1)

    x2 = x.reshape(T * N, Din)   # contiguous HBM reshape -> free

    vmem = lambda: pl.BlockSpec(memory_space=pltpu.MemorySpace.VMEM)

    out, h1, h2 = pl.pallas_call(
        functools.partial(dcrnn_kernel, T=T, N=N, H=H),
        out_shape=(
            jax.ShapeDtypeStruct((T, N, 1), jnp.float32),
            jax.ShapeDtypeStruct((T, N, H), jnp.float32),
            jax.ShapeDtypeStruct((T, N, H), jnp.float32),
        ),
        in_specs=[vmem() for _ in range(8)],
        out_specs=(vmem(), vmem(), vmem()),
    )(x2, hcat, w12_1, w12_2, w3cat, bvec, small, wfcb)
    return out, [h1, h2]


def reference_forward(x, params, h=None):
    """Pure-JAX reference of the same semantics (unfused params), for verification."""
    T, N, _ = x.shape
    layers = params["layers"]
    H = layers[0]["w1"].shape[1]
    if h is None:
        h = [jnp.zeros((N, H), jnp.float32) for _ in range(len(layers))]

    hs = []
    cur = x
    for p, h0 in zip(layers, h):
        g = jnp.maximum(cur @ p["w1"] + p["b1"] + cur @ p["w2"] + p["b2"], 0.0)  # [T, N, H]

        def step(g_t, p=p, h0=h0):
            r = jax.nn.sigmoid(g_t @ p["wir"] + p["bir"] + h0 @ p["whr"] + p["bhr"])
            z = jax.nn.sigmoid(g_t @ p["wiz"] + p["biz"] + h0 @ p["whz"] + p["bhz"])
            n = jnp.tanh(g_t @ p["win"] + p["bin"] + r * (h0 @ p["whn"] + p["bhn"]))
            h_t = (1.0 - z) * n + z * h0
            mean = jnp.mean(h_t, axis=0, keepdims=True)
            var = jnp.mean((h_t - mean) ** 2, axis=0, keepdims=True)
            return (h_t - mean) / jnp.sqrt(var + BN_EPS) * p["gamma"] + p["beta"]

        y = jax.vmap(step)(g)
        hs.append(y)
        cur = y

    out = cur @ params["fc_w"] + params["fc_b"]
    return out, hs


def init_layer_params(key, input_dim, hidden_dim):
    ks = jax.random.split(key, 16)
    H, D = hidden_dim, input_dim
    u = lambda k, shape, s: (jax.random.uniform(k, shape, jnp.float32) - 0.5) * 2.0 * s
    return {
        # GCNConv weights (stored pre-transposed: [Din, H]) and biases
        "w1": u(ks[0], (D, H), 0.5), "b1": u(ks[1], (1, H), 0.1),
        "w2": u(ks[2], (D, H), 0.5), "b2": u(ks[3], (1, H), 0.1),
        # GRUCell weights (stored pre-transposed: [H, H]), PyTorch gate order r,z,n
        "wir": u(ks[4], (H, H), 0.25), "wiz": u(ks[5], (H, H), 0.25), "win": u(ks[6], (H, H), 0.25),
        "whr": u(ks[7], (H, H), 0.25), "whz": u(ks[8], (H, H), 0.25), "whn": u(ks[9], (H, H), 0.25),
        "bir": u(ks[10], (1, H), 0.1), "biz": u(ks[11], (1, H), 0.1), "bin": u(ks[12], (1, H), 0.1),
        "bhr": u(ks[13], (1, H), 0.1), "bhz": u(ks[14], (1, H), 0.1), "bhn": u(ks[15], (1, H), 0.1),
        # BatchNorm1d affine (default init: gamma=1, beta=0)
        "gamma": jnp.ones((1, H), jnp.float32), "beta": jnp.zeros((1, H), jnp.float32),
    }


if __name__ == "__main__":
    T, N, INPUT_DIM, HIDDEN_DIM = 4, 32, 8, 16   # hidden_dim=16, num_layers=2 as in the module

    key = jax.random.PRNGKey(0)
    kx, k1, k2, kfw, kfb = jax.random.split(key, 5)
    x = jax.random.normal(kx, (T, N, INPUT_DIM), jnp.float32)
    params = {
        "layers": [
            init_layer_params(k1, INPUT_DIM, HIDDEN_DIM),
            init_layer_params(k2, HIDDEN_DIM, HIDDEN_DIM),
        ],
        # fc: Linear(hidden_dim, 1), weight stored pre-transposed [H, 1]
        "fc_w": (jax.random.uniform(kfw, (HIDDEN_DIM, 1), jnp.float32) - 0.5) * 0.5,
        "fc_b": (jax.random.uniform(kfb, (1, 1), jnp.float32) - 0.5) * 0.1,
    }

    out, hs = dcrnn_forward(x, params)            # default h=None -> zeros, as in DCRNN
    out = jax.block_until_ready(out)
    hs = [jax.block_until_ready(hh) for hh in hs]

    ref_out, ref_hs = reference_forward(x, params)
    ref_out = jax.block_until_ready(ref_out)

    assert out.shape == (T, N, 1)
    err = max(
        float(jnp.max(jnp.abs(out - ref_out))),
        float(jnp.max(jnp.abs(hs[0] - ref_hs[0]))),
        float(jnp.max(jnp.abs(hs[1] - ref_hs[1]))),
    )
    assert err < 1e-4, f"Pallas kernel mismatch vs reference: {err}"
    print("KERNEL_OK")
</pallas_src>

<mosaic_0001>
module attributes {stable_mosaic.version = 11 : i64} {
  func.func @dcrnn_kernel(%arg0: memref<128x8xf32, #tpu.memory_space<vmem>>, %arg1: memref<64x16xf32, #tpu.memory_space<vmem>>, %arg2: memref<8x16xf32, #tpu.memory_space<vmem>>, %arg3: memref<16x16xf32, #tpu.memory_space<vmem>>, %arg4: memref<64x48xf32, #tpu.memory_space<vmem>>, %arg5: memref<4x48xf32, #tpu.memory_space<vmem>>, %arg6: memref<6x16xf32, #tpu.memory_space<vmem>>, %arg7: memref<17x1xf32, #tpu.memory_space<vmem>>, %arg8: memref<4x32x1xf32, #tpu.memory_space<vmem>>, %arg9: memref<4x32x16xf32, #tpu.memory_space<vmem>>, %arg10: memref<4x32x16xf32, #tpu.memory_space<vmem>>) attributes {dimension_semantics = [], scalar_prefetch = 0 : i64, scratch_operands = 0 : i64, tpu.core_type = #tpu.core_type<tc>} {
    %c0 = arith.constant 0 : index
    %c0_0 = arith.constant 0 : index
    %0 = vector.load %arg1[%c0, %c0_0] : memref<64x16xf32, #tpu.memory_space<vmem>>, vector<32x16xf32>
    %c32 = arith.constant 32 : index
    %c0_1 = arith.constant 0 : index
    %1 = vector.load %arg1[%c32, %c0_1] : memref<64x16xf32, #tpu.memory_space<vmem>>, vector<32x16xf32>
    %c0_2 = arith.constant 0 : index
    %c0_3 = arith.constant 0 : index
    %2 = vector.load %arg0[%c0_2, %c0_3] : memref<128x8xf32, #tpu.memory_space<vmem>>, vector<128x8xf32>
    %c0_4 = arith.constant 0 : index
    %c0_5 = arith.constant 0 : index
    %3 = vector.load %arg2[%c0_4, %c0_5] : memref<8x16xf32, #tpu.memory_space<vmem>>, vector<8x16xf32>
    %c0_6 = arith.constant 0 : index
    %c0_7 = arith.constant 0 : index
    %4 = vector.load %arg4[%c0_6, %c0_7] : memref<64x48xf32, #tpu.memory_space<vmem>>, vector<16x48xf32>
    %c16 = arith.constant 16 : index
    %c0_8 = arith.constant 0 : index
    %5 = vector.load %arg4[%c16, %c0_8] : memref<64x48xf32, #tpu.memory_space<vmem>>, vector<16x48xf32>
    %c0_9 = arith.constant 0 : index
    %c0_10 = arith.constant 0 : index
    %6 = vector.load %arg5[%c0_9, %c0_10] : memref<4x48xf32, #tpu.memory_space<vmem>>, vector<1x48xf32>
    %c1 = arith.constant 1 : index
    %c0_11 = arith.constant 0 : index
    %7 = vector.load %arg5[%c1, %c0_11] : memref<4x48xf32, #tpu.memory_space<vmem>>, vector<1x48xf32>
    %c0_12 = arith.constant 0 : index
    %c0_13 = arith.constant 0 : index
    %8 = vector.load %arg6[%c0_12, %c0_13] : memref<6x16xf32, #tpu.memory_space<vmem>>, vector<1x16xf32>
    %c1_14 = arith.constant 1 : index
    %c0_15 = arith.constant 0 : index
    %9 = vector.load %arg6[%c1_14, %c0_15] : memref<6x16xf32, #tpu.memory_space<vmem>>, vector<1x16xf32>
    %c2 = arith.constant 2 : index
    %c0_16 = arith.constant 0 : index
    %10 = vector.load %arg6[%c2, %c0_16] : memref<6x16xf32, #tpu.memory_space<vmem>>, vector<1x16xf32>
    %cst = arith.constant dense<0.000000e+00> : vector<128x16xf32>
    %11 = tpu.matmul %2, %3, %cst {dimension_numbers = #tpu.dot_dimension_numbers<[1], [0], [0], [1], [0, 0, 1, 1], [], []>} : vector<128x8xf32>, vector<8x16xf32>, vector<128x16xf32> -> vector<128x16xf32>
    %12 = vector.broadcast %8 : vector<1x16xf32> to vector<128x16xf32>
    %13 = arith.addf %11, %12 : vector<128x16xf32>
    %cst_17 = arith.constant 0.000000e+00 : f32
    %14 = vector.broadcast %cst_17 : f32 to vector<128x16xf32>
    %15 = arith.maximumf %13, %14 : vector<128x16xf32>
    %cst_18 = arith.constant dense<0.000000e+00> : vector<128x48xf32>
    %16 = tpu.matmul %15, %4, %cst_18 {dimension_numbers = #tpu.dot_dimension_numbers<[1], [0], [0], [1], [0, 0, 1, 1], [], []>} : vector<128x16xf32>, vector<16x48xf32>, vector<128x48xf32> -> vector<128x48xf32>
    %17 = vector.broadcast %6 : vector<1x48xf32> to vector<128x48xf32>
    %18 = arith.addf %16, %17 : vector<128x48xf32>
    %cst_19 = arith.constant dense<0.000000e+00> : vector<32x48xf32>
    %19 = tpu.matmul %0, %5, %cst_19 {dimension_numbers = #tpu.dot_dimension_numbers<[1], [0], [0], [1], [0, 0, 1, 1], [], []>} : vector<32x16xf32>, vector<16x48xf32>, vector<32x48xf32> -> vector<32x48xf32>
    %20 = vector.broadcast %7 : vector<1x48xf32> to vector<32x48xf32>
    %21 = arith.addf %19, %20 : vector<32x48xf32>
    %22 = vector.extract_strided_slice %21 {offsets = [0, 0], sizes = [32, 16], strides = [1, 1]} : vector<32x48xf32> to vector<32x16xf32>
    %23 = vector.extract_strided_slice %21 {offsets = [0, 16], sizes = [32, 16], strides = [1, 1]} : vector<32x48xf32> to vector<32x16xf32>
    %24 = vector.extract_strided_slice %21 {offsets = [0, 32], sizes = [32, 16], strides = [1, 1]} : vector<32x48xf32> to vector<32x16xf32>
    %25 = vector.extract_strided_slice %18 {offsets = [0, 0], sizes = [32, 48], strides = [1, 1]} : vector<128x48xf32> to vector<32x48xf32>
    %26 = vector.extract_strided_slice %25 {offsets = [0, 0], sizes = [32, 16], strides = [1, 1]} : vector<32x48xf32> to vector<32x16xf32>
    %27 = arith.addf %26, %22 : vector<32x16xf32>
    %28 = arith.negf %27 : vector<32x16xf32>
    %29 = math.exp %28 : vector<32x16xf32>
    %cst_20 = arith.constant 1.000000e+00 : f32
    %30 = vector.broadcast %cst_20 : f32 to vector<32x16xf32>
    %31 = arith.addf %30, %29 : vector<32x16xf32>
    %32 = arith.divf %30, %31 : vector<32x16xf32>
    %33 = vector.extract_strided_slice %25 {offsets = [0, 16], sizes = [32, 16], strides = [1, 1]} : vector<32x48xf32> to vector<32x16xf32>
    %34 = arith.addf %33, %23 : vector<32x16xf32>
    %35 = arith.negf %34 : vector<32x16xf32>
    %36 = math.exp %35 : vector<32x16xf32>
    %cst_21 = arith.constant 1.000000e+00 : f32
    %37 = vector.broadcast %cst_21 : f32 to vector<32x16xf32>
    %38 = arith.addf %37, %36 : vector<32x16xf32>
    %39 = arith.divf %37, %38 : vector<32x16xf32>
    %40 = vector.extract_strided_slice %25 {offsets = [0, 32], sizes = [32, 16], strides = [1, 1]} : vector<32x48xf32> to vector<32x16xf32>
    %41 = arith.mulf %32, %24 : vector<32x16xf32>
    %42 = arith.addf %40, %41 : vector<32x16xf32>
    %43 = math.tanh %42 : vector<32x16xf32>
    %cst_22 = arith.constant 1.000000e+00 : f32
    %44 = vector.broadcast %cst_22 : f32 to vector<32x16xf32>
    %45 = arith.subf %44, %39 : vector<32x16xf32>
    %46 = arith.mulf %45, %43 : vector<32x16xf32>
    %47 = arith.mulf %39, %0 : vector<32x16xf32>
    %48 = arith.addf %46, %47 : vector<32x16xf32>
    %cst_23 = arith.constant dense<0.000000e+00> : vector<16xf32>
    %49 = vector.multi_reduction <add>, %48, %cst_23 [0] : vector<32x16xf32> to vector<16xf32>
    %50 = vector.shape_cast %49 : vector<16xf32> to vector<1x16xf32>
    %cst_24 = arith.constant 3.200000e+01 : f32
    %51 = vector.broadcast %cst_24 : f32 to vector<1x16xf32>
    %52 = arith.divf %50, %51 : vector<1x16xf32>
    %53 = vector.broadcast %52 : vector<1x16xf32> to vector<32x16xf32>
    %54 = arith.subf %48, %53 : vector<32x16xf32>
    %55 = arith.mulf %54, %54 : vector<32x16xf32>
    %cst_25 = arith.constant dense<0.000000e+00> : vector<16xf32>
    %56 = vector.multi_reduction <add>, %55, %cst_25 [0] : vector<32x16xf32> to vector<16xf32>
    %57 = vector.shape_cast %56 : vector<16xf32> to vector<1x16xf32>
    %cst_26 = arith.constant 3.200000e+01 : f32
    %58 = vector.broadcast %cst_26 : f32 to vector<1x16xf32>
    %59 = arith.divf %57, %58 : vector<1x16xf32>
    %cst_27 = arith.constant 9.99999974E-6 : f32
    %60 = vector.broadcast %cst_27 : f32 to vector<1x16xf32>
    %61 = arith.addf %59, %60 : vector<1x16xf32>
    %62 = math.rsqrt %61 : vector<1x16xf32>
    %63 = vector.broadcast %62 : vector<1x16xf32> to vector<32x16xf32>
    %64 = arith.mulf %54, %63 : vector<32x16xf32>
    %65 = vector.broadcast %9 : vector<1x16xf32> to vector<32x16xf32>
    %66 = arith.mulf %64, %65 : vector<32x16xf32>
    %67 = vector.broadcast %10 : vector<1x16xf32> to vector<32x16xf32>
    %68 = arith.addf %66, %67 : vector<32x16xf32>
    %c0_28 = arith.constant 0 : index
    %c0_29 = arith.constant 0 : index
    %c0_30 = arith.constant 0 : index
    %69 = vector.load %arg9[%c0_28, %c0_29, %c0_30] : memref<4x32x16xf32, #tpu.memory_space<vmem>>, vector<1x32x16xf32>
    %70 = vector.shape_cast %69 : vector<1x32x16xf32> to vector<32x16xf32>
    %71 = vector.shape_cast %68 : vector<32x16xf32> to vector<1x32x16xf32>
    tpu.vector_store %arg9[%c0_28, %c0_29, %c0_30], %71 {strides = array<i32>} : memref<4x32x16xf32, #tpu.memory_space<vmem>>, vector<1x32x16xf32>,
    %72 = vector.extract_strided_slice %18 {offsets = [32, 0], sizes = [32, 48], strides = [1, 1]} : vector<128x48xf32> to vector<32x48xf32>
    %73 = vector.extract_strided_slice %72 {offsets = [0, 0], sizes = [32, 16], strides = [1, 1]} : vector<32x48xf32> to vector<32x16xf32>
    %74 = arith.addf %73, %22 : vector<32x16xf32>
    %75 = arith.negf %74 : vector<32x16xf32>
    %76 = math.exp %75 : vector<32x16xf32>
    %cst_31 = arith.constant 1.000000e+00 : f32
    %77 = vector.broadcast %cst_31 : f32 to vector<32x16xf32>
    %78 = arith.addf %77, %76 : vector<32x16xf32>
    %79 = arith.divf %77, %78 : vector<32x16xf32>
    %80 = vector.extract_strided_slice %72 {offsets = [0, 16], sizes = [32, 16], strides = [1, 1]} : vector<32x48xf32> to vector<32x16xf32>
    %81 = arith.addf %80, %23 : vector<32x16xf32>
    %82 = arith.negf %81 : vector<32x16xf32>
    %83 = math.exp %82 : vector<32x16xf32>
    %cst_32 = arith.constant 1.000000e+00 : f32
    %84 = vector.broadcast %cst_32 : f32 to vector<32x16xf32>
    %85 = arith.addf %84, %83 : vector<32x16xf32>
    %86 = arith.divf %84, %85 : vector<32x16xf32>
    %87 = vector.extract_strided_slice %72 {offsets = [0, 32], sizes = [32, 16], strides = [1, 1]} : vector<32x48xf32> to vector<32x16xf32>
    %88 = arith.mulf %79, %24 : vector<32x16xf32>
    %89 = arith.addf %87, %88 : vector<32x16xf32>
    %90 = math.tanh %89 : vector<32x16xf32>
    %cst_33 = arith.constant 1.000000e+00 : f32
    %91 = vector.broadcast %cst_33 : f32 to vector<32x16xf32>
    %92 = arith.subf %91, %86 : vector<32x16xf32>
    %93 = arith.mulf %92, %90 : vector<32x16xf32>
    %94 = arith.mulf %86, %0 : vector<32x16xf32>
    %95 = arith.addf %93, %94 : vector<32x16xf32>
    %cst_34 = arith.constant dense<0.000000e+00> : vector<16xf32>
    %96 = vector.multi_reduction <add>, %95, %cst_34 [0] : vector<32x16xf32> to vector<16xf32>
    %97 = vector.shape_cast %96 : vector<16xf32> to vector<1x16xf32>
    %cst_35 = arith.constant 3.200000e+01 : f32
    %98 = vector.broadcast %cst_35 : f32 to vector<1x16xf32>
    %99 = arith.divf %97, %98 : vector<1x16xf32>
    %100 = vector.broadcast %99 : vector<1x16xf32> to vector<32x16xf32>
    %101 = arith.subf %95, %100 : vector<32x16xf32>
    %102 = arith.mulf %101, %101 : vector<32x16xf32>
    %cst_36 = arith.constant dense<0.000000e+00> : vector<16xf32>
    %103 = vector.multi_reduction <add>, %102, %cst_36 [0] : vector<32x16xf32> to vector<16xf32>
    %104 = vector.shape_cast %103 : vector<16xf32> to vector<1x16xf32>
    %cst_37 = arith.constant 3.200000e+01 : f32
    %105 = vector.broadcast %cst_37 : f32 to vector<1x16xf32>
    %106 = arith.divf %104, %105 : vector<1x16xf32>
    %cst_38 = arith.constant 9.99999974E-6 : f32
    %107 = vector.broadcast %cst_38 : f32 to vector<1x16xf32>
    %108 = arith.addf %106, %107 : vector<1x16xf32>
    %109 = math.rsqrt %108 : vector<1x16xf32>
    %110 = vector.broadcast %109 : vector<1x16xf32> to vector<32x16xf32>
    %111 = arith.mulf %101, %110 : vector<32x16xf32>
    %112 = vector.broadcast %9 : vector<1x16xf32> to vector<32x16xf32>
    %113 = arith.mulf %111, %112 : vector<32x16xf32>
    %114 = vector.broadcast %10 : vector<1x16xf32> to vector<32x16xf32>
    %115 = arith.addf %113, %114 : vector<32x16xf32>
    %c1_39 = arith.constant 1 : index
    %c0_40 = arith.constant 0 : index
    %c0_41 = arith.constant 0 : index
    %116 = vector.load %arg9[%c1_39, %c0_40, %c0_41] : memref<4x32x16xf32, #tpu.memory_space<vmem>>, vector<1x32x16xf32>
    %117 = vector.shape_cast %116 : vector<1x32x16xf32> to vector<32x16xf32>
    %118 = vector.shape_cast %115 : vector<32x16xf32> to vector<1x32x16xf32>
    tpu.vector_store %arg9[%c1_39, %c0_40, %c0_41], %118 {strides = array<i32>} : memref<4x32x16xf32, #tpu.memory_space<vmem>>, vector<1x32x16xf32>,
    %119 = vector.extract_strided_slice %18 {offsets = [64, 0], sizes = [32, 48], strides = [1, 1]} : vector<128x48xf32> to vector<32x48xf32>
    %120 = vector.extract_strided_slice %119 {offsets = [0, 0], sizes = [32, 16], strides = [1, 1]} : vector<32x48xf32> to vector<32x16xf32>
    %121 = arith.addf %120, %22 : vector<32x16xf32>
    %122 = arith.negf %121 : vector<32x16xf32>
    %123 = math.exp %122 : vector<32x16xf32>
    %cst_42 = arith.constant 1.000000e+00 : f32
    %124 = vector.broadcast %cst_42 : f32 to vector<32x16xf32>
    %125 = arith.addf %124, %123 : vector<32x16xf32>
    %126 = arith.divf %124, %125 : vector<32x16xf32>
    %127 = vector.extract_strided_slice %119 {offsets = [0, 16], sizes = [32, 16], strides = [1, 1]} : vector<32x48xf32> to vector<32x16xf32>
    %128 = arith.addf %127, %23 : vector<32x16xf32>
    %129 = arith.negf %128 : vector<32x16xf32>
    %130 = math.exp %129 : vector<32x16xf32>
    %cst_43 = arith.constant 1.000000e+00 : f32
    %131 = vector.broadcast %cst_43 : f32 to vector<32x16xf32>
    %132 = arith.addf %131, %130 : vector<32x16xf32>
    %133 = arith.divf %131, %132 : vector<32x16xf32>
    %134 = vector.extract_strided_slice %119 {offsets = [0, 32], sizes = [32, 16], strides = [1, 1]} : vector<32x48xf32> to vector<32x16xf32>
    %135 = arith.mulf %126, %24 : vector<32x16xf32>
    %136 = arith.addf %134, %135 : vector<32x16xf32>
    %137 = math.tanh %136 : vector<32x16xf32>
    %cst_44 = arith.constant 1.000000e+00 : f32
    %138 = vector.broadcast %cst_44 : f32 to vector<32x16xf32>
    %139 = arith.subf %138, %133 : vector<32x16xf32>
    %140 = arith.mulf %139, %137 : vector<32x16xf32>
    %141 = arith.mulf %133, %0 : vector<32x16xf32>
    %142 = arith.addf %140, %141 : vector<32x16xf32>
    %cst_45 = arith.constant dense<0.000000e+00> : vector<16xf32>
    %143 = vector.multi_reduction <add>, %142, %cst_45 [0] : vector<32x16xf32> to vector<16xf32>
    %144 = vector.shape_cast %143 : vector<16xf32> to vector<1x16xf32>
    %cst_46 = arith.constant 3.200000e+01 : f32
    %145 = vector.broadcast %cst_46 : f32 to vector<1x16xf32>
    %146 = arith.divf %144, %145 : vector<1x16xf32>
    %147 = vector.broadcast %146 : vector<1x16xf32> to vector<32x16xf32>
    %148 = arith.subf %142, %147 : vector<32x16xf32>
    %149 = arith.mulf %148, %148 : vector<32x16xf32>
    %cst_47 = arith.constant dense<0.000000e+00> : vector<16xf32>
    %150 = vector.multi_reduction <add>, %149, %cst_47 [0] : vector<32x16xf32> to vector<16xf32>
    %151 = vector.shape_cast %150 : vector<16xf32> to vector<1x16xf32>
    %cst_48 = arith.constant 3.200000e+01 : f32
    %152 = vector.broadcast %cst_48 : f32 to vector<1x16xf32>
    %153 = arith.divf %151, %152 : vector<1x16xf32>
    %cst_49 = arith.constant 9.99999974E-6 : f32
    %154 = vector.broadcast %cst_49 : f32 to vector<1x16xf32>
    %155 = arith.addf %153, %154 : vector<1x16xf32>
    %156 = math.rsqrt %155 : vector<1x16xf32>
    %157 = vector.broadcast %156 : vector<1x16xf32> to vector<32x16xf32>
    %158 = arith.mulf %148, %157 : vector<32x16xf32>
    %159 = vector.broadcast %9 : vector<1x16xf32> to vector<32x16xf32>
    %160 = arith.mulf %158, %159 : vector<32x16xf32>
    %161 = vector.broadcast %10 : vector<1x16xf32> to vector<32x16xf32>
    %162 = arith.addf %160, %161 : vector<32x16xf32>
    %c2_50 = arith.constant 2 : index
    %c0_51 = arith.constant 0 : index
    %c0_52 = arith.constant 0 : index
    %163 = vector.load %arg9[%c2_50, %c0_51, %c0_52] : memref<4x32x16xf32, #tpu.memory_space<vmem>>, vector<1x32x16xf32>
    %164 = vector.shape_cast %163 : vector<1x32x16xf32> to vector<32x16xf32>
    %165 = vector.shape_cast %162 : vector<32x16xf32> to vector<1x32x16xf32>
    tpu.vector_store %arg9[%c2_50, %c0_51, %c0_52], %165 {strides = array<i32>} : memref<4x32x16xf32, #tpu.memory_space<vmem>>, vector<1x32x16xf32>,
    %166 = vector.extract_strided_slice %18 {offsets = [96, 0], sizes = [32, 48], strides = [1, 1]} : vector<128x48xf32> to vector<32x48xf32>
    %167 = vector.extract_strided_slice %166 {offsets = [0, 0], sizes = [32, 16], strides = [1, 1]} : vector<32x48xf32> to vector<32x16xf32>
    %168 = arith.addf %167, %22 : vector<32x16xf32>
    %169 = arith.negf %168 : vector<32x16xf32>
    %170 = math.exp %169 : vector<32x16xf32>
    %cst_53 = arith.constant 1.000000e+00 : f32
    %171 = vector.broadcast %cst_53 : f32 to vector<32x16xf32>
    %172 = arith.addf %171, %170 : vector<32x16xf32>
    %173 = arith.divf %171, %172 : vector<32x16xf32>
    %174 = vector.extract_strided_slice %166 {offsets = [0, 16], sizes = [32, 16], strides = [1, 1]} : vector<32x48xf32> to vector<32x16xf32>
    %175 = arith.addf %174, %23 : vector<32x16xf32>
    %176 = arith.negf %175 : vector<32x16xf32>
    %177 = math.exp %176 : vector<32x16xf32>
    %cst_54 = arith.constant 1.000000e+00 : f32
    %178 = vector.broadcast %cst_54 : f32 to vector<32x16xf32>
    %179 = arith.addf %178, %177 : vector<32x16xf32>
    %180 = arith.divf %178, %179 : vector<32x16xf32>
    %181 = vector.extract_strided_slice %166 {offsets = [0, 32], sizes = [32, 16], strides = [1, 1]} : vector<32x48xf32> to vector<32x16xf32>
    %182 = arith.mulf %173, %24 : vector<32x16xf32>
    %183 = arith.addf %181, %182 : vector<32x16xf32>
    %184 = math.tanh %183 : vector<32x16xf32>
    %cst_55 = arith.constant 1.000000e+00 : f32
    %185 = vector.broadcast %cst_55 : f32 to vector<32x16xf32>
    %186 = arith.subf %185, %180 : vector<32x16xf32>
    %187 = arith.mulf %186, %184 : vector<32x16xf32>
    %188 = arith.mulf %180, %0 : vector<32x16xf32>
    %189 = arith.addf %187, %188 : vector<32x16xf32>
    %cst_56 = arith.constant dense<0.000000e+00> : vector<16xf32>
    %190 = vector.multi_reduction <add>, %189, %cst_56 [0] : vector<32x16xf32> to vector<16xf32>
    %191 = vector.shape_cast %190 : vector<16xf32> to vector<1x16xf32>
    %cst_57 = arith.constant 3.200000e+01 : f32
    %192 = vector.broadcast %cst_57 : f32 to vector<1x16xf32>
    %193 = arith.divf %191, %192 : vector<1x16xf32>
    %194 = vector.broadcast %193 : vector<1x16xf32> to vector<32x16xf32>
    %195 = arith.subf %189, %194 : vector<32x16xf32>
    %196 = arith.mulf %195, %195 : vector<32x16xf32>
    %cst_58 = arith.constant dense<0.000000e+00> : vector<16xf32>
    %197 = vector.multi_reduction <add>, %196, %cst_58 [0] : vector<32x16xf32> to vector<16xf32>
    %198 = vector.shape_cast %197 : vector<16xf32> to vector<1x16xf32>
    %cst_59 = arith.constant 3.200000e+01 : f32
    %199 = vector.broadcast %cst_59 : f32 to vector<1x16xf32>
    %200 = arith.divf %198, %199 : vector<1x16xf32>
    %cst_60 = arith.constant 9.99999974E-6 : f32
    %201 = vector.broadcast %cst_60 : f32 to vector<1x16xf32>
    %202 = arith.addf %200, %201 : vector<1x16xf32>
    %203 = math.rsqrt %202 : vector<1x16xf32>
    %204 = vector.broadcast %203 : vector<1x16xf32> to vector<32x16xf32>
    %205 = arith.mulf %195, %204 : vector<32x16xf32>
    %206 = vector.broadcast %9 : vector<1x16xf32> to vector<32x16xf32>
    %207 = arith.mulf %205, %206 : vector<32x16xf32>
    %208 = vector.broadcast %10 : vector<1x16xf32> to vector<32x16xf32>
    %209 = arith.addf %207, %208 : vector<32x16xf32>
    %c3 = arith.constant 3 : index
    %c0_61 = arith.constant 0 : index
    %c0_62 = arith.constant 0 : index
    %210 = vector.load %arg9[%c3, %c0_61, %c0_62] : memref<4x32x16xf32, #tpu.memory_space<vmem>>, vector<1x32x16xf32>
    %211 = vector.shape_cast %210 : vector<1x32x16xf32> to vector<32x16xf32>
    %212 = vector.shape_cast %209 : vector<32x16xf32> to vector<1x32x16xf32>
    tpu.vector_store %arg9[%c3, %c0_61, %c0_62], %212 {strides = array<i32>} : memref<4x32x16xf32, #tpu.memory_space<vmem>>, vector<1x32x16xf32>,
    %213 = tpu.concatenate %68, %115, %162, %209 in 0 : vector<32x16xf32>, vector<32x16xf32>, vector<32x16xf32>, vector<32x16xf32> -> vector<128x16xf32>
    %c0_63 = arith.constant 0 : index
    %c0_64 = arith.constant 0 : index
    %214 = vector.load %arg3[%c0_63, %c0_64] : memref<16x16xf32, #tpu.memory_space<vmem>>, vector<16x16xf32>
    %c32_65 = arith.constant 32 : index
    %c0_66 = arith.constant 0 : index
    %215 = vector.load %arg4[%c32_65, %c0_66] : memref<64x48xf32, #tpu.memory_space<vmem>>, vector<16x48xf32>
    %c48 = arith.constant 48 : index
    %c0_67 = arith.constant 0 : index
    %216 = vector.load %arg4[%c48, %c0_67] : memref<64x48xf32, #tpu.memory_space<vmem>>, vector<16x48xf32>
    %c2_68 = arith.constant 2 : index
    %c0_69 = arith.constant 0 : index
    %217 = vector.load %arg5[%c2_68, %c0_69] : memref<4x48xf32, #tpu.memory_space<vmem>>, vector<1x48xf32>
    %c3_70 = arith.constant 3 : index
    %c0_71 = arith.constant 0 : index
    %218 = vector.load %arg5[%c3_70, %c0_71] : memref<4x48xf32, #tpu.memory_space<vmem>>, vector<1x48xf32>
    %c3_72 = arith.constant 3 : index
    %c0_73 = arith.constant 0 : index
    %219 = vector.load %arg6[%c3_72, %c0_73] : memref<6x16xf32, #tpu.memory_space<vmem>>, vector<1x16xf32>
    %c4 = arith.constant 4 : index
    %c0_74 = arith.constant 0 : index
    %220 = vector.load %arg6[%c4, %c0_74] : memref<6x16xf32, #tpu.memory_space<vmem>>, vector<1x16xf32>
    %c5 = arith.constant 5 : index
    %c0_75 = arith.constant 0 : index
    %221 = vector.load %arg6[%c5, %c0_75] : memref<6x16xf32, #tpu.memory_space<vmem>>, vector<1x16xf32>
    %cst_76 = arith.constant dense<0.000000e+00> : vector<128x16xf32>
    %222 = tpu.matmul %213, %214, %cst_76 {dimension_numbers = #tpu.dot_dimension_numbers<[1], [0], [0], [1], [0, 0, 1, 1], [], []>} : vector<128x16xf32>, vector<16x16xf32>, vector<128x16xf32> -> vector<128x16xf32>
    %223 = vector.broadcast %219 : vector<1x16xf32> to vector<128x16xf32>
    %224 = arith.addf %222, %223 : vector<128x16xf32>
    %cst_77 = arith.constant 0.000000e+00 : f32
    %225 = vector.broadcast %cst_77 : f32 to vector<128x16xf32>
    %226 = arith.maximumf %224, %225 : vector<128x16xf32>
    %cst_78 = arith.constant dense<0.000000e+00> : vector<128x48xf32>
    %227 = tpu.matmul %226, %215, %cst_78 {dimension_numbers = #tpu.dot_dimension_numbers<[1], [0], [0], [1], [0, 0, 1, 1], [], []>} : vector<128x16xf32>, vector<16x48xf32>, vector<128x48xf32> -> vector<128x48xf32>
    %228 = vector.broadcast %217 : vector<1x48xf32> to vector<128x48xf32>
    %229 = arith.addf %227, %228 : vector<128x48xf32>
    %cst_79 = arith.constant dense<0.000000e+00> : vector<32x48xf32>
    %230 = tpu.matmul %1, %216, %cst_79 {dimension_numbers = #tpu.dot_dimension_numbers<[1], [0], [0], [1], [0, 0, 1, 1], [], []>} : vector<32x16xf32>, vector<16x48xf32>, vector<32x48xf32> -> vector<32x48xf32>
    %231 = vector.broadcast %218 : vector<1x48xf32> to vector<32x48xf32>
    %232 = arith.addf %230, %231 : vector<32x48xf32>
    %233 = vector.extract_strided_slice %232 {offsets = [0, 0], sizes = [32, 16], strides = [1, 1]} : vector<32x48xf32> to vector<32x16xf32>
    %234 = vector.extract_strided_slice %232 {offsets = [0, 16], sizes = [32, 16], strides = [1, 1]} : vector<32x48xf32> to vector<32x16xf32>
    %235 = vector.extract_strided_slice %232 {offsets = [0, 32], sizes = [32, 16], strides = [1, 1]} : vector<32x48xf32> to vector<32x16xf32>
    %236 = vector.extract_strided_slice %229 {offsets = [0, 0], sizes = [32, 48], strides = [1, 1]} : vector<128x48xf32> to vector<32x48xf32>
    %237 = vector.extract_strided_slice %236 {offsets = [0, 0], sizes = [32, 16], strides = [1, 1]} : vector<32x48xf32> to vector<32x16xf32>
    %238 = arith.addf %237, %233 : vector<32x16xf32>
    %239 = arith.negf %238 : vector<32x16xf32>
    %240 = math.exp %239 : vector<32x16xf32>
    %cst_80 = arith.constant 1.000000e+00 : f32
    %241 = vector.broadcast %cst_80 : f32 to vector<32x16xf32>
    %242 = arith.addf %241, %240 : vector<32x16xf32>
    %243 = arith.divf %241, %242 : vector<32x16xf32>
    %244 = vector.extract_strided_slice %236 {offsets = [0, 16], sizes = [32, 16], strides = [1, 1]} : vector<32x48xf32> to vector<32x16xf32>
    %245 = arith.addf %244, %234 : vector<32x16xf32>
    %246 = arith.negf %245 : vector<32x16xf32>
    %247 = math.exp %246 : vector<32x16xf32>
    %cst_81 = arith.constant 1.000000e+00 : f32
    %248 = vector.broadcast %cst_81 : f32 to vector<32x16xf32>
    %249 = arith.addf %248, %247 : vector<32x16xf32>
    %250 = arith.divf %248, %249 : vector<32x16xf32>
    %251 = vector.extract_strided_slice %236 {offsets = [0, 32], sizes = [32, 16], strides = [1, 1]} : vector<32x48xf32> to vector<32x16xf32>
    %252 = arith.mulf %243, %235 : vector<32x16xf32>
    %253 = arith.addf %251, %252 : vector<32x16xf32>
    %254 = math.tanh %253 : vector<32x16xf32>
    %cst_82 = arith.constant 1.000000e+00 : f32
    %255 = vector.broadcast %cst_82 : f32 to vector<32x16xf32>
    %256 = arith.subf %255, %250 : vector<32x16xf32>
    %257 = arith.mulf %256, %254 : vector<32x16xf32>
    %258 = arith.mulf %250, %1 : vector<32x16xf32>
    %259 = arith.addf %257, %258 : vector<32x16xf32>
    %cst_83 = arith.constant dense<0.000000e+00> : vector<16xf32>
    %260 = vector.multi_reduction <add>, %259, %cst_83 [0] : vector<32x16xf32> to vector<16xf32>
    %261 = vector.shape_cast %260 : vector<16xf32> to vector<1x16xf32>
    %cst_84 = arith.constant 3.200000e+01 : f32
    %262 = vector.broadcast %cst_84 : f32 to vector<1x16xf32>
    %263 = arith.divf %261, %262 : vector<1x16xf32>
    %264 = vector.broadcast %263 : vector<1x16xf32> to vector<32x16xf32>
    %265 = arith.subf %259, %264 : vector<32x16xf32>
    %266 = arith.mulf %265, %265 : vector<32x16xf32>
    %cst_85 = arith.constant dense<0.000000e+00> : vector<16xf32>
    %267 = vector.multi_reduction <add>, %266, %cst_85 [0] : vector<32x16xf32> to vector<16xf32>
    %268 = vector.shape_cast %267 : vector<16xf32> to vector<1x16xf32>
    %cst_86 = arith.constant 3.200000e+01 : f32
    %269 = vector.broadcast %cst_86 : f32 to vector<1x16xf32>
    %270 = arith.divf %268, %269 : vector<1x16xf32>
    %cst_87 = arith.constant 9.99999974E-6 : f32
    %271 = vector.broadcast %cst_87 : f32 to vector<1x16xf32>
    %272 = arith.addf %270, %271 : vector<1x16xf32>
    %273 = math.rsqrt %272 : vector<1x16xf32>
    %274 = vector.broadcast %273 : vector<1x16xf32> to vector<32x16xf32>
    %275 = arith.mulf %265, %274 : vector<32x16xf32>
    %276 = vector.broadcast %220 : vector<1x16xf32> to vector<32x16xf32>
    %277 = arith.mulf %275, %276 : vector<32x16xf32>
    %278 = vector.broadcast %221 : vector<1x16xf32> to vector<32x16xf32>
    %279 = arith.addf %277, %278 : vector<32x16xf32>
    %c0_88 = arith.constant 0 : index
    %c0_89 = arith.constant 0 : index
    %c0_90 = arith.constant 0 : index
    %280 = vector.load %arg10[%c0_88, %c0_89, %c0_90] : memref<4x32x16xf32, #tpu.memory_space<vmem>>, vector<1x32x16xf32>
    %281 = vector.shape_cast %280 : vector<1x32x16xf32> to vector<32x16xf32>
    %282 = vector.shape_cast %279 : vector<32x16xf32> to vector<1x32x16xf32>
    tpu.vector_store %arg10[%c0_88, %c0_89, %c0_90], %282 {strides = array<i32>} : memref<4x32x16xf32, #tpu.memory_space<vmem>>, vector<1x32x16xf32>,
    %283 = vector.extract_strided_slice %229 {offsets = [32, 0], sizes = [32, 48], strides = [1, 1]} : vector<128x48xf32> to vector<32x48xf32>
    %284 = vector.extract_strided_slice %283 {offsets = [0, 0], sizes = [32, 16], strides = [1, 1]} : vector<32x48xf32> to vector<32x16xf32>
    %285 = arith.addf %284, %233 : vector<32x16xf32>
    %286 = arith.negf %285 : vector<32x16xf32>
    %287 = math.exp %286 : vector<32x16xf32>
    %cst_91 = arith.constant 1.000000e+00 : f32
    %288 = vector.broadcast %cst_91 : f32 to vector<32x16xf32>
    %289 = arith.addf %288, %287 : vector<32x16xf32>
    %290 = arith.divf %288, %289 : vector<32x16xf32>
    %291 = vector.extract_strided_slice %283 {offsets = [0, 16], sizes = [32, 16], strides = [1, 1]} : vector<32x48xf32> to vector<32x16xf32>
    %292 = arith.addf %291, %234 : vector<32x16xf32>
    %293 = arith.negf %292 : vector<32x16xf32>
    %294 = math.exp %293 : vector<32x16xf32>
    %cst_92 = arith.constant 1.000000e+00 : f32
    %295 = vector.broadcast %cst_92 : f32 to vector<32x16xf32>
    %296 = arith.addf %295, %294 : vector<32x16xf32>
    %297 = arith.divf %295, %296 : vector<32x16xf32>
    %298 = vector.extract_strided_slice %283 {offsets = [0, 32], sizes = [32, 16], strides = [1, 1]} : vector<32x48xf32> to vector<32x16xf32>
    %299 = arith.mulf %290, %235 : vector<32x16xf32>
    %300 = arith.addf %298, %299 : vector<32x16xf32>
    %301 = math.tanh %300 : vector<32x16xf32>
    %cst_93 = arith.constant 1.000000e+00 : f32
    %302 = vector.broadcast %cst_93 : f32 to vector<32x16xf32>
    %303 = arith.subf %302, %297 : vector<32x16xf32>
    %304 = arith.mulf %303, %301 : vector<32x16xf32>
    %305 = arith.mulf %297, %1 : vector<32x16xf32>
    %306 = arith.addf %304, %305 : vector<32x16xf32>
    %cst_94 = arith.constant dense<0.000000e+00> : vector<16xf32>
    %307 = vector.multi_reduction <add>, %306, %cst_94 [0] : vector<32x16xf32> to vector<16xf32>
    %308 = vector.shape_cast %307 : vector<16xf32> to vector<1x16xf32>
    %cst_95 = arith.constant 3.200000e+01 : f32
    %309 = vector.broadcast %cst_95 : f32 to vector<1x16xf32>
    %310 = arith.divf %308, %309 : vector<1x16xf32>
    %311 = vector.broadcast %310 : vector<1x16xf32> to vector<32x16xf32>
    %312 = arith.subf %306, %311 : vector<32x16xf32>
    %313 = arith.mulf %312, %312 : vector<32x16xf32>
    %cst_96 = arith.constant dense<0.000000e+00> : vector<16xf32>
    %314 = vector.multi_reduction <add>, %313, %cst_96 [0] : vector<32x16xf32> to vector<16xf32>
    %315 = vector.shape_cast %314 : vector<16xf32> to vector<1x16xf32>
    %cst_97 = arith.constant 3.200000e+01 : f32
    %316 = vector.broadcast %cst_97 : f32 to vector<1x16xf32>
    %317 = arith.divf %315, %316 : vector<1x16xf32>
    %cst_98 = arith.constant 9.99999974E-6 : f32
    %318 = vector.broadcast %cst_98 : f32 to vector<1x16xf32>
    %319 = arith.addf %317, %318 : vector<1x16xf32>
    %320 = math.rsqrt %319 : vector<1x16xf32>
    %321 = vector.broadcast %320 : vector<1x16xf32> to vector<32x16xf32>
    %322 = arith.mulf %312, %321 : vector<32x16xf32>
    %323 = vector.broadcast %220 : vector<1x16xf32> to vector<32x16xf32>
    %324 = arith.mulf %322, %323 : vector<32x16xf32>
    %325 = vector.broadcast %221 : vector<1x16xf32> to vector<32x16xf32>
    %326 = arith.addf %324, %325 : vector<32x16xf32>
    %c1_99 = arith.constant 1 : index
    %c0_100 = arith.constant 0 : index
    %c0_101 = arith.constant 0 : index
    %327 = vector.load %arg10[%c1_99, %c0_100, %c0_101] : memref<4x32x16xf32, #tpu.memory_space<vmem>>, vector<1x32x16xf32>
    %328 = vector.shape_cast %327 : vector<1x32x16xf32> to vector<32x16xf32>
    %329 = vector.shape_cast %326 : vector<32x16xf32> to vector<1x32x16xf32>
    tpu.vector_store %arg10[%c1_99, %c0_100, %c0_101], %329 {strides = array<i32>} : memref<4x32x16xf32, #tpu.memory_space<vmem>>, vector<1x32x16xf32>,
    %330 = vector.extract_strided_slice %229 {offsets = [64, 0], sizes = [32, 48], strides = [1, 1]} : vector<128x48xf32> to vector<32x48xf32>
    %331 = vector.extract_strided_slice %330 {offsets = [0, 0], sizes = [32, 16], strides = [1, 1]} : vector<32x48xf32> to vector<32x16xf32>
    %332 = arith.addf %331, %233 : vector<32x16xf32>
    %333 = arith.negf %332 : vector<32x16xf32>
    %334 = math.exp %333 : vector<32x16xf32>
    %cst_102 = arith.constant 1.000000e+00 : f32
    %335 = vector.broadcast %cst_102 : f32 to vector<32x16xf32>
    %336 = arith.addf %335, %334 : vector<32x16xf32>
    %337 = arith.divf %335, %336 : vector<32x16xf32>
    %338 = vector.extract_strided_slice %330 {offsets = [0, 16], sizes = [32, 16], strides = [1, 1]} : vector<32x48xf32> to vector<32x16xf32>
    %339 = arith.addf %338, %234 : vector<32x16xf32>
    %340 = arith.negf %339 : vector<32x16xf32>
    %341 = math.exp %340 : vector<32x16xf32>
    %cst_103 = arith.constant 1.000000e+00 : f32
    %342 = vector.broadcast %cst_103 : f32 to vector<32x16xf32>
    %343 = arith.addf %342, %341 : vector<32x16xf32>
    %344 = arith.divf %342, %343 : vector<32x16xf32>
    %345 = vector.extract_strided_slice %330 {offsets = [0, 32], sizes = [32, 16], strides = [1, 1]} : vector<32x48xf32> to vector<32x16xf32>
    %346 = arith.mulf %337, %235 : vector<32x16xf32>
    %347 = arith.addf %345, %346 : vector<32x16xf32>
    %348 = math.tanh %347 : vector<32x16xf32>
    %cst_104 = arith.constant 1.000000e+00 : f32
    %349 = vector.broadcast %cst_104 : f32 to vector<32x16xf32>
    %350 = arith.subf %349, %344 : vector<32x16xf32>
    %351 = arith.mulf %350, %348 : vector<32x16xf32>
    %352 = arith.mulf %344, %1 : vector<32x16xf32>
    %353 = arith.addf %351, %352 : vector<32x16xf32>
    %cst_105 = arith.constant dense<0.000000e+00> : vector<16xf32>
    %354 = vector.multi_reduction <add>, %353, %cst_105 [0] : vector<32x16xf32> to vector<16xf32>
    %355 = vector.shape_cast %354 : vector<16xf32> to vector<1x16xf32>
    %cst_106 = arith.constant 3.200000e+01 : f32
    %356 = vector.broadcast %cst_106 : f32 to vector<1x16xf32>
    %357 = arith.divf %355, %356 : vector<1x16xf32>
    %358 = vector.broadcast %357 : vector<1x16xf32> to vector<32x16xf32>
    %359 = arith.subf %353, %358 : vector<32x16xf32>
    %360 = arith.mulf %359, %359 : vector<32x16xf32>
    %cst_107 = arith.constant dense<0.000000e+00> : vector<16xf32>
    %361 = vector.multi_reduction <add>, %360, %cst_107 [0] : vector<32x16xf32> to vector<16xf32>
    %362 = vector.shape_cast %361 : vector<16xf32> to vector<1x16xf32>
    %cst_108 = arith.constant 3.200000e+01 : f32
    %363 = vector.broadcast %cst_108 : f32 to vector<1x16xf32>
    %364 = arith.divf %362, %363 : vector<1x16xf32>
    %cst_109 = arith.constant 9.99999974E-6 : f32
    %365 = vector.broadcast %cst_109 : f32 to vector<1x16xf32>
    %366 = arith.addf %364, %365 : vector<1x16xf32>
    %367 = math.rsqrt %366 : vector<1x16xf32>
    %368 = vector.broadcast %367 : vector<1x16xf32> to vector<32x16xf32>
    %369 = arith.mulf %359, %368 : vector<32x16xf32>
    %370 = vector.broadcast %220 : vector<1x16xf32> to vector<32x16xf32>
    %371 = arith.mulf %369, %370 : vector<32x16xf32>
    %372 = vector.broadcast %221 : vector<1x16xf32> to vector<32x16xf32>
    %373 = arith.addf %371, %372 : vector<32x16xf32>
    %c2_110 = arith.constant 2 : index
    %c0_111 = arith.constant 0 : index
    %c0_112 = arith.constant 0 : index
    %374 = vector.load %arg10[%c2_110, %c0_111, %c0_112] : memref<4x32x16xf32, #tpu.memory_space<vmem>>, vector<1x32x16xf32>
    %375 = vector.shape_cast %374 : vector<1x32x16xf32> to vector<32x16xf32>
    %376 = vector.shape_cast %373 : vector<32x16xf32> to vector<1x32x16xf32>
    tpu.vector_store %arg10[%c2_110, %c0_111, %c0_112], %376 {strides = array<i32>} : memref<4x32x16xf32, #tpu.memory_space<vmem>>, vector<1x32x16xf32>,
    %377 = vector.extract_strided_slice %229 {offsets = [96, 0], sizes = [32, 48], strides = [1, 1]} : vector<128x48xf32> to vector<32x48xf32>
    %378 = vector.extract_strided_slice %377 {offsets = [0, 0], sizes = [32, 16], strides = [1, 1]} : vector<32x48xf32> to vector<32x16xf32>
    %379 = arith.addf %378, %233 : vector<32x16xf32>
    %380 = arith.negf %379 : vector<32x16xf32>
    %381 = math.exp %380 : vector<32x16xf32>
    %cst_113 = arith.constant 1.000000e+00 : f32
    %382 = vector.broadcast %cst_113 : f32 to vector<32x16xf32>
    %383 = arith.addf %382, %381 : vector<32x16xf32>
    %384 = arith.divf %382, %383 : vector<32x16xf32>
    %385 = vector.extract_strided_slice %377 {offsets = [0, 16], sizes = [32, 16], strides = [1, 1]} : vector<32x48xf32> to vector<32x16xf32>
    %386 = arith.addf %385, %234 : vector<32x16xf32>
    %387 = arith.negf %386 : vector<32x16xf32>
    %388 = math.exp %387 : vector<32x16xf32>
    %cst_114 = arith.constant 1.000000e+00 : f32
    %389 = vector.broadcast %cst_114 : f32 to vector<32x16xf32>
    %390 = arith.addf %389, %388 : vector<32x16xf32>
    %391 = arith.divf %389, %390 : vector<32x16xf32>
    %392 = vector.extract_strided_slice %377 {offsets = [0, 32], sizes = [32, 16], strides = [1, 1]} : vector<32x48xf32> to vector<32x16xf32>
    %393 = arith.mulf %384, %235 : vector<32x16xf32>
    %394 = arith.addf %392, %393 : vector<32x16xf32>
    %395 = math.tanh %394 : vector<32x16xf32>
    %cst_115 = arith.constant 1.000000e+00 : f32
    %396 = vector.broadcast %cst_115 : f32 to vector<32x16xf32>
    %397 = arith.subf %396, %391 : vector<32x16xf32>
    %398 = arith.mulf %397, %395 : vector<32x16xf32>
    %399 = arith.mulf %391, %1 : vector<32x16xf32>
    %400 = arith.addf %398, %399 : vector<32x16xf32>
    %cst_116 = arith.constant dense<0.000000e+00> : vector<16xf32>
    %401 = vector.multi_reduction <add>, %400, %cst_116 [0] : vector<32x16xf32> to vector<16xf32>
    %402 = vector.shape_cast %401 : vector<16xf32> to vector<1x16xf32>
    %cst_117 = arith.constant 3.200000e+01 : f32
    %403 = vector.broadcast %cst_117 : f32 to vector<1x16xf32>
    %404 = arith.divf %402, %403 : vector<1x16xf32>
    %405 = vector.broadcast %404 : vector<1x16xf32> to vector<32x16xf32>
    %406 = arith.subf %400, %405 : vector<32x16xf32>
    %407 = arith.mulf %406, %406 : vector<32x16xf32>
    %cst_118 = arith.constant dense<0.000000e+00> : vector<16xf32>
    %408 = vector.multi_reduction <add>, %407, %cst_118 [0] : vector<32x16xf32> to vector<16xf32>
    %409 = vector.shape_cast %408 : vector<16xf32> to vector<1x16xf32>
    %cst_119 = arith.constant 3.200000e+01 : f32
    %410 = vector.broadcast %cst_119 : f32 to vector<1x16xf32>
    %411 = arith.divf %409, %410 : vector<1x16xf32>
    %cst_120 = arith.constant 9.99999974E-6 : f32
    %412 = vector.broadcast %cst_120 : f32 to vector<1x16xf32>
    %413 = arith.addf %411, %412 : vector<1x16xf32>
    %414 = math.rsqrt %413 : vector<1x16xf32>
    %415 = vector.broadcast %414 : vector<1x16xf32> to vector<32x16xf32>
    %416 = arith.mulf %406, %415 : vector<32x16xf32>
    %417 = vector.broadcast %220 : vector<1x16xf32> to vector<32x16xf32>
    %418 = arith.mulf %416, %417 : vector<32x16xf32>
    %419 = vector.broadcast %221 : vector<1x16xf32> to vector<32x16xf32>
    %420 = arith.addf %418, %419 : vector<32x16xf32>
    %c3_121 = arith.constant 3 : index
    %c0_122 = arith.constant 0 : index
    %c0_123 = arith.constant 0 : index
    %421 = vector.load %arg10[%c3_121, %c0_122, %c0_123] : memref<4x32x16xf32, #tpu.memory_space<vmem>>, vector<1x32x16xf32>
    %422 = vector.shape_cast %421 : vector<1x32x16xf32> to vector<32x16xf32>
    %423 = vector.shape_cast %420 : vector<32x16xf32> to vector<1x32x16xf32>
    tpu.vector_store %arg10[%c3_121, %c0_122, %c0_123], %423 {strides = array<i32>} : memref<4x32x16xf32, #tpu.memory_space<vmem>>, vector<1x32x16xf32>,
    %424 = tpu.concatenate %279, %326, %373, %420 in 0 : vector<32x16xf32>, vector<32x16xf32>, vector<32x16xf32>, vector<32x16xf32> -> vector<128x16xf32>
    %c0_124 = arith.constant 0 : index
    %c0_125 = arith.constant 0 : index
    %425 = vector.load %arg7[%c0_124, %c0_125] : memref<17x1xf32, #tpu.memory_space<vmem>>, vector<16x1xf32>
    %cst_126 = arith.constant dense<0.000000e+00> : vector<128x1xf32>
    %426 = tpu.matmul %424, %425, %cst_126 {dimension_numbers = #tpu.dot_dimension_numbers<[1], [0], [0], [1], [0, 0, 1, 1], [], []>} : vector<128x16xf32>, vector<16x1xf32>, vector<128x1xf32> -> vector<128x1xf32>
    %c16_127 = arith.constant 16 : index
    %c0_128 = arith.constant 0 : index
    %427 = vector.load %arg7[%c16_127, %c0_128] : memref<17x1xf32, #tpu.memory_space<vmem>>, vector<1x1xf32>
    %428 = vector.broadcast %427 : vector<1x1xf32> to vector<128x1xf32>
    %429 = arith.addf %426, %428 : vector<128x1xf32>
    %430 = vector.extract_strided_slice %429 {offsets = [0, 0], sizes = [32, 1], strides = [1, 1]} : vector<128x1xf32> to vector<32x1xf32>
    %c0_129 = arith.constant 0 : index
    %c0_130 = arith.constant 0 : index
    %c0_131 = arith.constant 0 : index
    %431 = vector.load %arg8[%c0_129, %c0_130, %c0_131] : memref<4x32x1xf32, #tpu.memory_space<vmem>>, vector<1x32x1xf32>
    %432 = vector.shape_cast %431 : vector<1x32x1xf32> to vector<32x1xf32>
    %433 = vector.shape_cast %430 : vector<32x1xf32> to vector<1x32x1xf32>
    tpu.vector_store %arg8[%c0_129, %c0_130, %c0_131], %433 {strides = array<i32>} : memref<4x32x1xf32, #tpu.memory_space<vmem>>, vector<1x32x1xf32>,
    %434 = vector.extract_strided_slice %429 {offsets = [32, 0], sizes = [32, 1], strides = [1, 1]} : vector<128x1xf32> to vector<32x1xf32>
    %c1_132 = arith.constant 1 : index
    %c0_133 = arith.constant 0 : index
    %c0_134 = arith.constant 0 : index
    %435 = vector.load %arg8[%c1_132, %c0_133, %c0_134] : memref<4x32x1xf32, #tpu.memory_space<vmem>>, vector<1x32x1xf32>
    %436 = vector.shape_cast %435 : vector<1x32x1xf32> to vector<32x1xf32>
    %437 = vector.shape_cast %434 : vector<32x1xf32> to vector<1x32x1xf32>
    tpu.vector_store %arg8[%c1_132, %c0_133, %c0_134], %437 {strides = array<i32>} : memref<4x32x1xf32, #tpu.memory_space<vmem>>, vector<1x32x1xf32>,
    %438 = vector.extract_strided_slice %429 {offsets = [64, 0], sizes = [32, 1], strides = [1, 1]} : vector<128x1xf32> to vector<32x1xf32>
    %c2_135 = arith.constant 2 : index
    %c0_136 = arith.constant 0 : index
    %c0_137 = arith.constant 0 : index
    %439 = vector.load %arg8[%c2_135, %c0_136, %c0_137] : memref<4x32x1xf32, #tpu.memory_space<vmem>>, vector<1x32x1xf32>
    %440 = vector.shape_cast %439 : vector<1x32x1xf32> to vector<32x1xf32>
    %441 = vector.shape_cast %438 : vector<32x1xf32> to vector<1x32x1xf32>
    tpu.vector_store %arg8[%c2_135, %c0_136, %c0_137], %441 {strides = array<i32>} : memref<4x32x1xf32, #tpu.memory_space<vmem>>, vector<1x32x1xf32>,
    %442 = vector.extract_strided_slice %429 {offsets = [96, 0], sizes = [32, 1], strides = [1, 1]} : vector<128x1xf32> to vector<32x1xf32>
    %c3_138 = arith.constant 3 : index
    %c0_139 = arith.constant 0 : index
    %c0_140 = arith.constant 0 : index
    %443 = vector.load %arg8[%c3_138, %c0_139, %c0_140] : memref<4x32x1xf32, #tpu.memory_space<vmem>>, vector<1x32x1xf32>
    %444 = vector.shape_cast %443 : vector<1x32x1xf32> to vector<32x1xf32>
    %445 = vector.shape_cast %442 : vector<32x1xf32> to vector<1x32x1xf32>
    tpu.vector_store %arg8[%c3_138, %c0_139, %c0_140], %445 {strides = array<i32>} : memref<4x32x1xf32, #tpu.memory_space<vmem>>, vector<1x32x1xf32>,
    return
  }
}

</mosaic_0001>

<bundles_post_ra>
// kernel: tpu_custom_call.1
= control target key start
LH: loop header
LB: loop body
LE: loop exit
PB: predicated region body
PF: predicated region fallthrough
CT: control target
= control target key end

     0   :  { %vm70_vm0 = vcmask 64512   ;;  %vm284_vm1 = vcmask 130048   ;;  %s3301_s23 = smov 96   ;;  %s3302_s26 = smov 32   ;;  %vm695_vm2 = vcmask 261248   ;;  %vm2629_vm3 = vcmask 7168   ;;  %s4838_s2 = inlined_call_operand.vmem [shape: f32[8,16], index: 2, kind: input, shape index: {}]   ;;  %s4839_s0 = inlined_call_operand.vmem [shape: f32[128,8], index: 0, kind: input, shape index: {}]   ;;  %s4840_s4 = inlined_call_operand.vmem [shape: f32[64,48], index: 4, kind: input, shape index: {}]   ;;  %s4841_s1 = inlined_call_operand.vmem [shape: f32[64,16], index: 1, kind: input, shape index: {}]   ;;  %s4842_s6 = inlined_call_operand.vmem [shape: f32[6,16], index: 6, kind: input, shape index: {}]   ;;  %s4843_s5 = inlined_call_operand.vmem [shape: f32[4,48], index: 5, kind: input, shape index: {}]   ;;  %s4844_s3 = inlined_call_operand.vmem [shape: f32[16,16], index: 3, kind: input, shape index: {}]   ;;  %s4845_s9 = inlined_call_operand.vmem [shape: f32[4,32,16], index: 9, kind: output, shape index: {1}]   ;;  %s4846_s7 = inlined_call_operand.vmem [shape: f32[17,1], index: 7, kind: input, shape index: {}]   ;;  %s4847_s10 = inlined_call_operand.vmem [shape: f32[4,32,16], index: 10, kind: output, shape index: {2}]   ;;  %s4848_s8 = inlined_call_operand.vmem [shape: f32[4,32,1], index: 8, kind: output, shape index: {0}]  }
   0x1   :  { %v56_v0 = vld [vmem:[%s4838_s2] sm:$0xff]  ;;  %v41_v2 = vld [vmem:[%s4839_s0 + $0x8] sm:$0xff]  ;;  %v42_v3 = vld [vmem:[%s4839_s0 + $0x10] sm:$0xff]  ;;  %s3303_s27 = smov 16   ;;  %s3304_s28 = smov 112  }
   0x2   :  { %v40_v1 = vld [vmem:[%s4839_s0] sm:$0xff]  ;;  %2929 = vmatprep.subr.mxu0 %v56_v0  ;;  %3087 = vmatprep.subr.mxu1 %v56_v0  ;;  %v49_v5 = vld [vmem:[%s4839_s0 + $0x48] sm:$0xff]  ;;  %v50_v6 = vld [vmem:[%s4839_s0 + $0x50] sm:$0xff] }
   0x3   :  { %2931 = vmatprep.mubr.msk.f32.mxu0 %vm70_vm0, %v40_v1  ;;  %2930 = vmatpush3.msra.mxu0 %v56_v0  ;;  %v48_v4 = vld [vmem:[%s4839_s0 + $0x40] sm:$0xff]  ;;  %v43_v7 = vld [vmem:[%s4839_s0 + $0x18] sm:$0xff]  ;;  %v59_v11 = vld [vmem:[%s4840_s4 + $0x10] sm:$0xff] }
   0x4   :  { %2932 = vmatmul.mubr.msk.f32.vlgmr.msra.gmra.mxu0 %vm70_vm0, %v41_v2  ;;  %3088 = vmatpush3.msra.mxu1 %v56_v0  ;;  %v44_v8 = vld [vmem:[%s4839_s0 + $0x20] sm:$0xff]  ;;  %v60_v9 = vld [vmem:[%s4840_s4 + $0x18] sm:$0xff]  ;;  %v45_v13 = vld [vmem:[%s4839_s0 + $0x28] sm:$0xff] }
   0x5   :  { %2934 = vmatprep.mubr.msk.f32.mxu0 %vm70_vm0, %v42_v3  ;;  %2943 = vmatprep.mubr.msk.f32.mxu1 %vm70_vm0, %v48_v4  ;;  %v51_v10 = vld [vmem:[%s4839_s0 + $0x58] sm:$0xff]  ;;  %v52_v12 = vld [vmem:[%s4839_s0 + $0x60] sm:$0xff]  ;;  %v58_v14 = vld [vmem:[%s4840_s4 + $0x8] sm:$0xff] }
   0x6   :  { %2944 = vmatmul.mubr.msk.f32.vlgmr.msra.gmra.mxu1 %vm70_vm0, %v49_v5  ;;  %2983 = vmatprep.subr.mxu0 %v60_v9  ;;  %v46_v15 = vld [vmem:[%s4839_s0 + $0x30] sm:$0xff]  ;;  %v53_v16 = vld [vmem:[%s4839_s0 + $0x68] sm:$0xff]  ;;  %v57_v17 = vld [vmem:[%s4840_s4] sm:$0xff] }
   0x7   :  { %2946 = vmatprep.mubr.msk.f32.mxu1 %vm70_vm0, %v50_v6  ;;  %2984 = vmatpush3.msra.mxu0 %v60_v9  ;;  %v54_v18 = vld [vmem:[%s4839_s0 + $0x70] sm:$0xff]  ;;  %v47_v19 = vld [vmem:[%s4839_s0 + $0x38] sm:$0xff]  ;;  %v3436_v20 = vld [vmem:[%s4841_s1] sm:$0xff] }
   0x8   :  { %2935 = vmatmul.mubr.msk.f32.gmra.mxu0 %vm70_vm0, %v43_v7  ;;  %2985 = vmatprep.subr.mxu0 %v59_v11  ;;  %v55_v21 = vld [vmem:[%s4839_s0 + $0x78] sm:$0xff]  ;;  %v3448_v22 = vld [vmem:[%s4841_s1 + $0x8] sm:$0xff]  ;;  %v3454_v23 = vld [vmem:[%s4841_s1 + $0x10] sm:$0xff] }
   0x9   :  { %2937 = vmatprep.mubr.msk.f32.mxu0 %vm70_vm0, %v44_v8  ;;  %2986 = vmatpush3.msra.mxu0 %v59_v11  ;;  %v3463_v24 = vld [vmem:[%s4841_s1 + $0x18] sm:$0xff]  ;;  %v3470_v25 = vld [vmem:[%s4842_s6] ss:$0 sm:$0xff]  ;;  %v2695_v58 = vld [vmem:[%s4843_s5 + $0x1] ss:$0 sm:$0xff] }
   0xa   :  { %2947 = vmatmul.mubr.msk.f32.gmra.mxu1 %vm70_vm0, %v51_v10  ;;  %2955 = vmatprep.subr.mxu1 %v58_v14 }
   0xb   :  { %2949 = vmatprep.mubr.msk.f32.mxu1 %vm70_vm0, %v52_v12  ;;  %2956 = vmatpush3.msra.mxu1 %v58_v14 }
   0xc   :  { %2938 = vmatmul.mubr.msk.f32.gmra.mxu0 %vm70_vm0, %v45_v13  ;;  %2957 = vmatprep.subr.mxu1 %v57_v17 }
   0xd   :  { %2940 = vmatprep.mubr.msk.f32.mxu0 %vm70_vm0, %v46_v15  ;;  %2958 = vmatpush3.msra.mxu1 %v57_v17 }
   0xe   :  { %2950 = vmatmul.mubr.msk.f32.gmra.mxu1 %vm70_vm0, %v53_v16 }
   0xf   :  { %2952 = vmatprep.mubr.msk.f32.mxu1 %vm70_vm0, %v54_v18 }
  0x10   :  { %2941 = vmatmul.mubr.msk.f32.gmra.mxu0 %vm70_vm0, %v47_v19  ;;  %v3526_v19 = vld [vmem:[%s4843_s5] ss:$0 sm:$0xff] }
  0x11   :  { %2987 = vmatprep.mubr.msk.f32.mxu0 %vm284_vm1, %v3436_v20 }
  0x12   :  { %2953 = vmatmul.mubr.msk.f32.gmra.mxu1 %vm70_vm0, %v55_v21 }
  0x14   :  { %2988 = vmatmul.mubr.msk.f32.vlgmr.msra.gmra.mxu0 %vm284_vm1, %v3448_v22 }
  0x15   :  { %2990 = vmatprep.mubr.msk.f32.mxu0 %vm284_vm1, %v3454_v23 }
  0x18   :  { %2991 = vmatmul.mubr.msk.f32.gmra.mxu0 %vm284_vm1, %v3463_v24 }
  0xc4   :  { %v2933_v26 = vpop.f32.mrf.mxu0 }
  0xc5   :  { %v191_v27 = vadd.f32 %v2933_v26, %v3470_v25 }
  0xc6   :  { %v185_v28 = vpop.f32.mrf.mxu0  ;;  %v2945_v29 = vpop.f32.mrf.mxu1 }
  0xc7   :  { %v186_v30 = vadd.f32 %v3470_v25, %v185_v28  ;;  %v265_v35 = vmax.f32 %v191_v27, 0.0  ;;  %v231_v56 = vadd.f32 %v2945_v29, %v3470_v25 }
  0xc8   :  { %v2936_v31 = vpop.f32.mrf.mxu0  ;;  %v225_v32 = vpop.f32.mrf.mxu1 }
  0xc9   :  { %v264_v33 = vmax.f32 %v186_v30, 0.0  ;;  %v201_v34 = vadd.f32 %v2936_v31, %v3470_v25  ;;  %v226_v51 = vadd.f32 %v3470_v25, %v225_v32  ;;  %v273_v1 = vmax.f32 %v231_v56, 0.0 }
  0xca   :  { %v195_v36 = vpop.f32.mrf.mxu0  ;;  %v2948_v37 = vpop.f32.mrf.mxu1 }
  0xcb   :  { %v196_v38 = vadd.f32 %v3470_v25, %v195_v36  ;;  %2959 = vmatprep.mubr.msk.f32.mxu1 %vm284_vm1, %v264_v33  ;;  %v267_v39 = vmax.f32 %v201_v34, 0.0  ;;  %v272_v60 = vmax.f32 %v226_v51, 0.0  ;;  %v241_v2 = vadd.f32 %v2948_v37, %v3470_v25 }
  0xcc   :  { %v2939_v40 = vpop.f32.mrf.mxu0  ;;  %2960 = vmatmul.mubr.msk.f32.vlgmr.msra.gmra.mxu1 %vm284_vm1, %v265_v35  ;;  %v235_v41 = vpop.f32.mrf.mxu1 }
  0xcd   :  { %v266_v42 = vmax.f32 %v196_v38, 0.0  ;;  %v211_v43 = vadd.f32 %v2939_v40, %v3470_v25  ;;  %v236_v61 = vadd.f32 %v3470_v25, %v235_v41  ;;  %v275_v10 = vmax.f32 %v241_v2, 0.0 }
  0xce   :  { %v205_v44 = vpop.f32.mrf.mxu0  ;;  %v2951_v45 = vpop.f32.mrf.mxu1 }
  0xcf   :  { %v206_v46 = vadd.f32 %v3470_v25, %v205_v44  ;;  %2962 = vmatprep.mubr.msk.f32.mxu1 %vm284_vm1, %v266_v42  ;;  %v269_v47 = vmax.f32 %v211_v43, 0.0  ;;  %v274_v4 = vmax.f32 %v236_v61, 0.0  ;;  %v251_v11 = vadd.f32 %v2951_v45, %v3470_v25 }
  0xd0   :  { %v2942_v48 = vpop.f32.mrf.mxu0  ;;  %2963 = vmatmul.mubr.msk.f32.gmra.mxu1 %vm284_vm1, %v267_v39  ;;  %v245_v53 = vpop.f32.mrf.mxu1 }
  0xd1   :  { %v268_v49 = vmax.f32 %v206_v46, 0.0  ;;  %v221_v50 = vadd.f32 %v2942_v48, %v3470_v25  ;;  %v246_v5 = vadd.f32 %v3470_v25, %v245_v53  ;;  %v277_v15 = vmax.f32 %v251_v11, 0.0 }
  0xd2   :  { %v215_v52 = vpop.f32.mrf.mxu0  ;;  %v2954_v62 = vpop.f32.mrf.mxu1 }
  0xd3   :  { %v216_v54 = vadd.f32 %v3470_v25, %v215_v52  ;;  %2965 = vmatprep.mubr.msk.f32.mxu1 %vm284_vm1, %v268_v49  ;;  %v271_v55 = vmax.f32 %v221_v50, 0.0  ;;  %v276_v12 = vmax.f32 %v246_v5, 0.0  ;;  %v261_v16 = vadd.f32 %v2954_v62, %v3470_v25 }
  0xd4   :  { %2966 = vmatmul.mubr.msk.f32.gmra.mxu1 %vm284_vm1, %v269_v47  ;;  %v2989_v57 = vpop.f32.mrf.mxu0  ;;  %v255_v6 = vpop.f32.mrf.mxu1 }
  0xd5   :  { %v270_v59 = vmax.f32 %v216_v54, 0.0  ;;  %v3501_v7 = vadd.f32 %v2989_v57, %v2695_v58  ;;  %v256_v13 = vadd.f32 %v3470_v25, %v255_v6  ;;  %v279_v18 = vmax.f32 %v261_v16, 0.0 }
  0xd6   :  { %v560_v63 = vpop.f32.mrf.mxu0 }
  0xd7   :  { %2968 = vmatprep.mubr.msk.f32.mxu1 %vm284_vm1, %v270_v59  ;;  %v3493_v0 = vadd.f32 %v2695_v58, %v560_v63  ;;  %v278_v17 = vmax.f32 %v256_v13, 0.0 }
  0xd8   :  { %2969 = vmatmul.mubr.msk.f32.gmra.mxu1 %vm284_vm1, %v271_v55  ;;  %v2992_v3 = vpop.f32.mrf.mxu0 }
  0xd9   :  { %2971 = vmatprep.mubr.msk.f32.mxu1 %vm284_vm1, %v272_v60  ;;  %611 = vrot.lane.b32.xlu0 %v3493_v0, %s3301_s23  ;;  %v3509_v14 = vadd.f32 %v2992_v3, %v2695_v58 }
  0xda   :  { %v570_v8 = vpop.f32.mrf.mxu0 }
  0xdb   :  { %v3503_v9 = vadd.f32 %v2695_v58, %v570_v8 }
  0xdc   :  { %2972 = vmatmul.mubr.msk.f32.gmra.mxu1 %vm284_vm1, %v273_v1 }
  0xdd   :  { %2974 = vmatprep.mubr.msk.f32.mxu1 %vm284_vm1, %v274_v4  ;;  %615 = vrot.lane.b32.xlu1 %v3503_v9, %s3301_s23 }
  0xde   :  { %613 = vrot.lane.b32.xlu0 %v3501_v7, %s3301_s23 }
  0xe0   :  { %2975 = vmatmul.mubr.msk.f32.gmra.mxu1 %vm284_vm1, %v275_v10 }
  0xe1   :  { %2977 = vmatprep.mubr.msk.f32.mxu1 %vm284_vm1, %v276_v12  ;;  %617 = vrot.lane.b32.xlu1 %v3509_v14, %s3301_s23 }
  0xe4   :  { %2978 = vmatmul.mubr.msk.f32.gmra.mxu1 %vm284_vm1, %v277_v15 }
  0xe5   :  { %2980 = vmatprep.mubr.msk.f32.mxu1 %vm284_vm1, %v278_v17 }
  0xe8   :  { %2981 = vmatmul.mubr.msk.f32.gmra.mxu1 %vm284_vm1, %v279_v18 }
 0x18c   :  { %v2961_v21 = vpop.f32.mrf.mxu1 }
 0x18d   :  { %v3529_v25 = vadd.f32 %v2961_v21, %v3526_v19 }
 0x18e   :  { %v399_v26 = vpop.f32.mrf.mxu1 }
 0x18f   :  { %v580_v27 = vadd.f32 %v3501_v7, %v3529_v25  ;;  %v3534_v28 = vadd.f32 %v3526_v19, %v399_v26 }
 0x190   :  { %v2964_v29 = vpop.f32.mrf.mxu1 }
 0x191   :  { %v2701_v30 = vmul.f32 -1.442695, %v580_v27  ;;  %v579_v31 = vadd.f32 %v3493_v0, %v3534_v28  ;;  %v3539_v32 = vadd.f32 %v2964_v29, %v3526_v19 }
 0x192   :  { %v409_v33 = vpop.f32.mrf.mxu1 }
 0x193   :  { %3093 = vpow2.f32 %v2701_v30  ;;  %v2700_v34 = vmul.f32 -1.442695, %v579_v31  ;;  %v582_v35 = vadd.f32 %v3509_v14, %v3539_v32  ;;  %v3544_v36 = vadd.f32 %v3526_v19, %v409_v33 }
 0x194   :  { %v2967_v37 = vpop.f32.mrf.mxu1 }
 0x195   :  { %3095 = vpow2.f32 %v2700_v34  ;;  %v2703_v38 = vmul.f32 -1.442695, %v582_v35  ;;  %v581_v39 = vadd.f32 %v3503_v9, %v3544_v36  ;;  %v3549_v40 = vadd.f32 %v2967_v37, %v3526_v19 }
 0x196   :  { %v419_v41 = vpop.f32.mrf.mxu1 }
 0x197   :  { %3097 = vpow2.f32 %v2703_v38  ;;  %v2702_v42 = vmul.f32 -1.442695, %v581_v39  ;;  %v784_v43 = vadd.f32 %v3501_v7, %v3549_v40  ;;  %v3554_v44 = vadd.f32 %v3526_v19, %v419_v41 }
 0x198   :  { %v2970_v45 = vpop.f32.mrf.mxu1 }
 0x199   :  { %3099 = vpow2.f32 %v2702_v42  ;;  %v2707_v46 = vmul.f32 -1.442695, %v784_v43  ;;  %v783_v47 = vadd.f32 %v3493_v0, %v3554_v44  ;;  %v3559_v48 = vadd.f32 %v2970_v45, %v3526_v19  ;;  %v3601_v42 = vpop.permute.xlu0 %611 }
 0x19a   :  { %v429_v49 = vpop.f32.mrf.mxu1 }
 0x19b   :  { %3101 = vpow2.f32 %v2707_v46  ;;  %v2706_v50 = vmul.f32 -1.442695, %v783_v47  ;;  %v786_v51 = vadd.f32 %v3509_v14, %v3559_v48  ;;  %v3564_v52 = vadd.f32 %v3526_v19, %v429_v49 }
 0x19c   :  { %v2973_v53 = vpop.f32.mrf.mxu1 }
 0x19d   :  { %3103 = vpow2.f32 %v2706_v50  ;;  %v2709_v54 = vmul.f32 -1.442695, %v786_v51  ;;  %v785_v55 = vadd.f32 %v3503_v9, %v3564_v52  ;;  %v3569_v56 = vadd.f32 %v2973_v53, %v3526_v19 }
 0x19e   :  { %v439_v57 = vpop.f32.mrf.mxu1 }
 0x19f   :  { %3105 = vpow2.f32 %v2709_v54  ;;  %v2708_v58 = vmul.f32 -1.442695, %v785_v55  ;;  %v943_v59 = vadd.f32 %v3501_v7, %v3569_v56  ;;  %v3574_v60 = vadd.f32 %v3526_v19, %v439_v57  ;;  %v3610_v54 = vpop.permute.xlu1 %615 }
 0x1a0   :  { %v3094_v61 = vpop.eup %3093  ;;  %v2976_v62 = vpop.f32.mrf.mxu1 }
 0x1a1   :  { %v596_v63 = vadd.f32 1.0, %v3094_v61  ;;  %3107 = vpow2.f32 %v2708_v58  ;;  %v2715_v1 = vmul.f32 -1.442695, %v943_v59  ;;  %v942_v2 = vadd.f32 %v3493_v0, %v3574_v60 }
 0x1a2   :  { %v3096_v3 = vpop.eup %3095  ;;  %v3579_v4 = vadd.f32 %v2976_v62, %v3526_v19  ;;  %v449_v5 = vpop.f32.mrf.mxu1 }
 0x1a3   :  { %3109 = vrcp.f32 %v596_v63  ;;  %v595_v6 = vadd.f32 1.0, %v3096_v3  ;;  %v2714_v8 = vmul.f32 -1.442695, %v942_v2  ;;  %v3582_v10 = vadd.f32 %v3526_v19, %v449_v5  ;;  %v618_v3 = vpop.permute.xlu1 %617 }
 0x1a4   :  { %v3098_v11 = vpop.eup %3097  ;;  %3111 = vpow2.f32 %v2715_v1  ;;  %v945_v12 = vadd.f32 %v3509_v14, %v3579_v4  ;;  %v2979_v13 = vpop.f32.mrf.mxu1 }
 0x1a5   :  { %3113 = vrcp.f32 %v595_v6  ;;  %v598_v15 = vadd.f32 1.0, %v3098_v11  ;;  %v944_v16 = vadd.f32 %v3503_v9, %v3582_v10  ;;  %v3589_v17 = vadd.f32 %v2979_v13, %v3526_v19 }
 0x1a6   :  { %v3100_v18 = vpop.eup %3099  ;;  %3115 = vpow2.f32 %v2714_v8  ;;  %v2717_v21 = vmul.f32 -1.442695, %v945_v12  ;;  %v459_v26 = vpop.f32.mrf.mxu1 }
 0x1a7   :  { %3117 = vrcp.f32 %v598_v15  ;;  %v597_v27 = vadd.f32 1.0, %v3100_v18  ;;  %v2716_v29 = vmul.f32 -1.442695, %v944_v16  ;;  %v1102_v30 = vadd.f32 %v3501_v7, %v3589_v17 }
 0x1a8   :  { %v3102_v31 = vpop.eup %3101  ;;  %3119 = vpow2.f32 %v2717_v21  ;;  %v3594_v33 = vadd.f32 %v3526_v19, %v459_v26  ;;  %v2982_v34 = vpop.f32.mrf.mxu1 }
 0x1a9   :  { %3121 = vrcp.f32 %v597_v27  ;;  %v800_v35 = vadd.f32 1.0, %v3102_v31  ;;  %v2723_v37 = vmul.f32 -1.442695, %v1102_v30  ;;  %v3597_v38 = vadd.f32 %v2982_v34, %v3526_v19 }
 0x1aa   :  { %v3104_v39 = vpop.eup %3103  ;;  %3123 = vpow2.f32 %v2716_v29  ;;  %v1101_v41 = vadd.f32 %v3493_v0, %v3594_v33  ;;  %v469_v7 = vpop.f32.mrf.mxu1 }
 0x1ab   :  { %3125 = vrcp.f32 %v800_v35  ;;  %v799_v43 = vadd.f32 1.0, %v3104_v39  ;;  %v1104_v45 = vadd.f32 %v3509_v14, %v3597_v38  ;;  %v3606_v46 = vadd.f32 %v3526_v19, %v469_v7  ;;  %v3614_v19 = vpop.permute.xlu0 %613 }
 0x1ac   :  { %v3106_v47 = vpop.eup %3105  ;;  %3127 = vpow2.f32 %v2723_v37  ;;  %v2722_v49 = vmul.f32 -1.442695, %v1101_v41 }
 0x1ad   :  { %3129 = vrcp.f32 %v799_v43  ;;  %v802_v50 = vadd.f32 1.0, %v3106_v47  ;;  %v2725_v51 = vmul.f32 -1.442695, %v1104_v45  ;;  %v1103_v0 = vadd.f32 %v3503_v9, %v3606_v46 }
 0x1ae   :  { %v3108_v53 = vpop.eup %3107  ;;  %3131 = vpow2.f32 %v2722_v49 }
 0x1af   :  { %3133 = vrcp.f32 %v802_v50  ;;  %v801_v55 = vadd.f32 1.0, %v3108_v53  ;;  %v2724_v57 = vmul.f32 -1.442695, %v1103_v0 }
 0x1b0   :  { %v3612_v14 = vpop.eup %3109  ;;  %3135 = vpow2.f32 %v2725_v51 }
 0x1b1   :  { %v3112_v58 = vpop.eup %3111  ;;  %3137 = vrcp.f32 %v801_v55  ;;  %v624_v59 = vmul.f32 %v3612_v14, %v3614_v19 }
 0x1b2   :  { %v3618_v61 = vpop.eup %3113  ;;  %v959_v9 = vadd.f32 1.0, %v3112_v58  ;;  %3139 = vpow2.f32 %v2724_v57 }
 0x1b3   :  { %v3116_v62 = vpop.eup %3115  ;;  %633 = vrot.lane.b32.xlu1 %v624_v59, %s3302_s26  ;;  %v623_v63 = vmul.f32 %v3618_v61, %v3601_v42 }
 0x1b4   :  { %v3623_v1 = vpop.eup %3117  ;;  %3141 = vrcp.f32 %v959_v9  ;;  %v958_v2 = vadd.f32 1.0, %v3116_v62 }
 0x1b5   :  { %v3120_v5 = vpop.eup %3119  ;;  %631 = vrot.lane.b32.xlu0 %v623_v63, %s3302_s26  ;;  %v626_v6 = vmul.f32 %v3623_v1, %v618_v3 }
 0x1b6   :  { %v3627_v8 = vpop.eup %3121  ;;  %3143 = vrcp.f32 %v958_v2  ;;  %v961_v11 = vadd.f32 1.0, %v3120_v5 }
 0x1b7   :  { %v3124_v12 = vpop.eup %3123  ;;  %637 = vrot.lane.b32.xlu1 %v626_v6, %s3302_s26  ;;  %v625_v13 = vmul.f32 %v3627_v8, %v3610_v54 }
 0x1b8   :  { %v3632_v15 = vpop.eup %3125  ;;  %3145 = vrcp.f32 %v961_v11  ;;  %v960_v16 = vadd.f32 1.0, %v3124_v12 }
 0x1b9   :  { %v3128_v18 = vpop.eup %3127  ;;  %635 = vrot.lane.b32.xlu0 %v625_v13, %s3302_s26  ;;  %v812_v21 = vmul.f32 %v3632_v15, %v3614_v19 }
 0x1ba   :  { %v3637_v26 = vpop.eup %3129  ;;  %3147 = vrcp.f32 %v960_v16  ;;  %v1118_v27 = vadd.f32 1.0, %v3128_v18 }
 0x1bb   :  { %v3132_v29 = vpop.eup %3131  ;;  %821 = vrot.lane.b32.xlu1 %v812_v21, %s3302_s26  ;;  %v811_v30 = vmul.f32 %v3637_v26, %v3601_v42 }
 0x1bc   :  { %v3642_v31 = vpop.eup %3133  ;;  %3149 = vrcp.f32 %v1118_v27  ;;  %v1117_v34 = vadd.f32 1.0, %v3132_v29 }
 0x1bd   :  { %v3136_v35 = vpop.eup %3135  ;;  %819 = vrot.lane.b32.xlu0 %v811_v30, %s3302_s26  ;;  %v814_v37 = vmul.f32 %v3642_v31, %v618_v3 }
 0x1be   :  { %v3646_v39 = vpop.eup %3137  ;;  %3151 = vrcp.f32 %v1117_v34  ;;  %v1120_v41 = vadd.f32 1.0, %v3136_v35 }
 0x1bf   :  { %v3140_v7 = vpop.eup %3139  ;;  %825 = vrot.lane.b32.xlu1 %v814_v37, %s3302_s26  ;;  %v813_v43 = vmul.f32 %v3646_v39, %v3610_v54 }
 0x1c0   :  { %3153 = vrcp.f32 %v1120_v41  ;;  %v1119_v45 = vadd.f32 1.0, %v3140_v7 }
 0x1c1   :  { %v3651_v47 = vpop.eup %3141  ;;  %823 = vrot.lane.b32.xlu0 %v813_v43, %s3302_s26 }
 0x1c2   :  { %3155 = vrcp.f32 %v1119_v45  ;;  %v971_v49 = vmul.f32 %v3651_v47, %v3614_v19 }
 0x1c3   :  { %v3656_v50 = vpop.eup %3143 }
 0x1c4   :  { %980 = vrot.lane.b32.xlu1 %v971_v49, %s3302_s26  ;;  %v970_v51 = vmul.f32 %v3656_v50, %v3601_v42 }
 0x1c5   :  { %v3661_v0 = vpop.eup %3145 }
 0x1c6   :  { %978 = vrot.lane.b32.xlu0 %v970_v51, %s3302_s26  ;;  %v973_v53 = vmul.f32 %v3661_v0, %v618_v3 }
 0x1c7   :  { %v3665_v55 = vpop.eup %3147 }
 0x1c8   :  { %984 = vrot.lane.b32.xlu1 %v973_v53, %s3302_s26  ;;  %v972_v57 = vmul.f32 %v3665_v55, %v3610_v54 }
 0x1c9   :  { %v3670_v58 = vpop.eup %3149 }
 0x1ca   :  { %982 = vrot.lane.b32.xlu0 %v972_v57, %s3302_s26  ;;  %v1130_v59 = vmul.f32 %v3670_v58, %v3614_v19 }
 0x1cb   :  { %v3675_v9 = vpop.eup %3151 }
 0x1cc   :  { %1139 = vrot.lane.b32.xlu1 %v1130_v59, %s3302_s26  ;;  %v1129_v62 = vmul.f32 %v3675_v9, %v3601_v42 }
 0x1cd   :  { %v3680_v63 = vpop.eup %3153 }
 0x1ce   :  { %1137 = vrot.lane.b32.xlu0 %v1129_v62, %s3302_s26  ;;  %v1132_v2 = vmul.f32 %v3680_v63, %v618_v3 }
 0x1cf   :  { %v3684_v5 = vpop.eup %3155 }
 0x1d0   :  { %1143 = vrot.lane.b32.xlu1 %v1132_v2, %s3302_s26  ;;  %v1131_v19 = vmul.f32 %v3684_v5, %v3610_v54 }
 0x1d2   :  { %1141 = vrot.lane.b32.xlu0 %v1131_v19, %s3302_s26  ;;  %v2705_v19 = vld [vmem:[%s4842_s6 + $0x2] ss:$0 sm:$0xff] }
 0x1d4   :  { %677 = vrot.lane.b32.xlu1 %v3448_v22, %s3303_s27 }
 0x1d6   :  { %675 = vrot.lane.b32.xlu0 %v3436_v20, %s3303_s27 }
 0x1d8   :  { %679 = vrot.lane.b32.xlu1 %v3454_v23, %s3303_s27 }
 0x225   :  { %v634_v42 = vpop.permute.xlu1 %633 }
 0x226   :  { %v644_v3 = vadd.f32 %v634_v42, %v3529_v25 }
 0x227   :  { %v632_v6 = vpop.permute.xlu0 %631 }
 0x228   :  { %3157 = vtanh.f32 %v644_v3  ;;  %v643_v11 = vadd.f32 %v632_v6, %v3534_v28  ;;  %v2704_v3 = vld [vmem:[%s4842_s6 + $0x1] ss:$0 sm:$0xff]  ;;  %v1261_v6 = vld [vmem:[%s4844_s3 + $0x8] sm:$0xff] }
 0x229   :  { %v638_v54 = vpop.permute.xlu1 %637  ;;  %2993 = vmatprep.subr.mxu1 %v1261_v6 }
 0x22a   :  { %3159 = vtanh.f32 %v643_v11  ;;  %v646_v12 = vadd.f32 %v638_v54, %v3539_v32  ;;  %v1260_v11 = vld [vmem:[%s4844_s3] sm:$0xff]  ;;  %2994 = vmatpush3.msra.mxu1 %v1261_v6 }
 0x22b   :  { %v636_v13 = vpop.permute.xlu0 %635  ;;  %2995 = vmatprep.subr.mxu1 %v1260_v11 }
 0x22c   :  { %3161 = vtanh.f32 %v646_v12  ;;  %v645_v22 = vadd.f32 %v636_v13, %v3544_v36  ;;  %2996 = vmatpush3.msra.mxu1 %v1260_v11  ;;  %v998_v11 = vsub.f32 1.0, %v3656_v50 }
 0x22d   :  { %v822_v16 = vpop.permute.xlu1 %821 }
 0x22e   :  { %v832_v20 = vadd.f32 %v822_v16, %v3549_v40 }
 0x22f   :  { %v820_v18 = vpop.permute.xlu0 %819 }
 0x230   :  { %3163 = vtanh.f32 %v832_v20  ;;  %v831_v25 = vadd.f32 %v820_v18, %v3554_v44  ;;  %v652_v18 = vsub.f32 1.0, %v3612_v14 }
 0x231   :  { %v826_v23 = vpop.permute.xlu1 %825  ;;  %3165 = vtanh.f32 %v645_v22  ;;  %v651_v22 = vsub.f32 1.0, %v3618_v61 }
 0x232   :  { %v834_v21 = vadd.f32 %v826_v23, %v3559_v48 }
 0x233   :  { %v824_v28 = vpop.permute.xlu0 %823 }
 0x234   :  { %3167 = vtanh.f32 %v834_v21  ;;  %v833_v32 = vadd.f32 %v824_v28, %v3564_v52 }
 0x235   :  { %v3158_v27 = vpop.eup %3157  ;;  %3169 = vtanh.f32 %v831_v25 }
 0x236   :  { %v981_v29 = vpop.permute.xlu1 %980  ;;  %661 = vrot.lane.b32.xlu1 %v3158_v27, %s3304_s28 }
 0x237   :  { %v3160_v36 = vpop.eup %3159  ;;  %v991_v40 = vadd.f32 %v981_v29, %v3569_v56 }
 0x238   :  { %v979_v30 = vpop.permute.xlu0 %978  ;;  %659 = vrot.lane.b32.xlu0 %v3160_v36, %s3304_s28  ;;  %v654_v36 = vsub.f32 1.0, %v3623_v1 }
 0x239   :  { %3171 = vtanh.f32 %v991_v40  ;;  %v990_v44 = vadd.f32 %v979_v30, %v3574_v60  ;;  %v3162_v34 = vpop.eup %3161 }
 0x23a   :  { %3173 = vtanh.f32 %v833_v32  ;;  %v985_v48 = vpop.permute.xlu1 %984  ;;  %681 = vrot.lane.b32.xlu1 %v3463_v24, %s3303_s27 }
 0x23b   :  { %v993_v52 = vadd.f32 %v985_v48, %v3579_v4  ;;  %v653_v48 = vsub.f32 1.0, %v3627_v8 }
 0x23c   :  { %v983_v35 = vpop.permute.xlu0 %982  ;;  %665 = vrot.lane.b32.xlu0 %v3162_v34, %s3304_s28  ;;  %v840_v34 = vsub.f32 1.0, %v3632_v15 }
 0x23d   :  { %v3164_v37 = vpop.eup %3163  ;;  %3175 = vtanh.f32 %v993_v52  ;;  %v992_v56 = vadd.f32 %v983_v35, %v3582_v10 }
 0x23e   :  { %3177 = vtanh.f32 %v990_v44  ;;  %v1140_v41 = vpop.permute.xlu1 %1139  ;;  %849 = vrot.lane.b32.xlu1 %v3164_v37, %s3304_s28  ;;  %v3166_v7 = vpop.eup %3165 }
 0x23f   :  { %v1150_v60 = vadd.f32 %v1140_v41, %v3589_v17  ;;  %v839_v41 = vsub.f32 1.0, %v3637_v26 }
 0x240   :  { %v1138_v43 = vpop.permute.xlu0 %1137  ;;  %663 = vrot.lane.b32.xlu0 %v3166_v7, %s3304_s28 }
 0x241   :  { %v3168_v24 = vpop.eup %3167  ;;  %3179 = vtanh.f32 %v1150_v60  ;;  %v1149_v4 = vadd.f32 %v1138_v43, %v3594_v33 }
 0x242   :  { %3181 = vtanh.f32 %v992_v56  ;;  %v1144_v45 = vpop.permute.xlu1 %1143  ;;  %853 = vrot.lane.b32.xlu1 %v3168_v24, %s3304_s28  ;;  %v3170_v49 = vpop.eup %3169 }
 0x243   :  { %v1152_v10 = vadd.f32 %v1144_v45, %v3597_v38  ;;  %v842_v45 = vsub.f32 1.0, %v3642_v31 }
 0x244   :  { %v1142_v51 = vpop.permute.xlu0 %1141  ;;  %847 = vrot.lane.b32.xlu0 %v3170_v49, %s3304_s28 }
 0x245   :  { %3183 = vtanh.f32 %v1152_v10  ;;  %v1151_v17 = vadd.f32 %v1142_v51, %v3606_v46 }
 0x246   :  { %v3172_v53 = vpop.eup %3171  ;;  %3185 = vtanh.f32 %v1149_v4  ;;  %v3744_v54 = vpop.permute.xlu1 %677 }
 0x247   :  { %v3174_v57 = vpop.eup %3173  ;;  %1008 = vrot.lane.b32.xlu1 %v3172_v53, %s3304_s28  ;;  %3187 = vtanh.f32 %v1151_v17  ;;  %v688_v32 = vmul.f32 %v3612_v14, %v3744_v54  ;;  %v841_v17 = vsub.f32 1.0, %v3646_v39 }
 0x248   :  { %851 = vrot.lane.b32.xlu0 %v3174_v57, %s3304_s28  ;;  %v3748_v13 = vpop.permute.xlu0 %675 }
 0x249   :  { %v687_v28 = vmul.f32 %v3618_v61, %v3748_v13  ;;  %v863_v10 = vmul.f32 %v3637_v26, %v3748_v13 }
 0x24a   :  { %v3176_v33 = vpop.eup %3175  ;;  %v3746_v12 = vpop.permute.xlu1 %679 }
 0x24b   :  { %v3178_v59 = vpop.eup %3177  ;;  %1012 = vrot.lane.b32.xlu1 %v3176_v33, %s3304_s28  ;;  %v689_v35 = vmul.f32 %v3627_v8, %v3746_v12 }
 0x24c   :  { %1006 = vrot.lane.b32.xlu0 %v3178_v59, %s3304_s28 }
 0x24e   :  { %v3180_v38 = vpop.eup %3179 }
 0x24f   :  { %v3182_v62 = vpop.eup %3181  ;;  %1167 = vrot.lane.b32.xlu1 %v3180_v38, %s3304_s28 }
 0x250   :  { %1010 = vrot.lane.b32.xlu0 %v3182_v62, %s3304_s28 }
 0x252   :  { %v3184_v2 = vpop.eup %3183 }
 0x253   :  { %v3186_v46 = vpop.eup %3185  ;;  %1171 = vrot.lane.b32.xlu1 %v3184_v2, %s3304_s28  ;;  %v999_v2 = vsub.f32 1.0, %v3651_v47 }
 0x254   :  { %1165 = vrot.lane.b32.xlu0 %v3186_v46, %s3304_s28  ;;  %v3188_v42 = vpop.eup %3187 }
 0x257   :  { %756 = vrot.lane.b32.xlu1 %v2705_v19, %s3303_s27 }
 0x258   :  { %1169 = vrot.lane.b32.xlu0 %v3188_v42, %s3304_s28  ;;  %v865_v42 = vmul.f32 %v3646_v39, %v3746_v12  ;;  %v1023_v39 = vmul.f32 %v3651_v47, %v3744_v54 }
 0x25c   :  { %744 = vrot.lane.b32.xlu0 %v2704_v3, %s3303_s27 }
 0x2a8   :  { %v662_v16 = vpop.permute.xlu1 %661 }
 0x2a9   :  { %v672_v21 = vmul.f32 %v662_v16, %v652_v18 }
 0x2aa   :  { %v660_v20 = vpop.permute.xlu0 %659 }
 0x2ab   :  { %v671_v23 = vmul.f32 %v660_v20, %v651_v22  ;;  %v3761_v30 = vadd.f32 %v688_v32, %v672_v21 }
 0x2ac   :  { %v3752_v25 = vpop.permute.xlu1 %681 }
 0x2ad   :  { %v3758_v29 = vadd.f32 %v687_v28, %v671_v23  ;;  %v690_v14 = vmul.f32 %v3623_v1, %v3752_v25  ;;  %v697_v7 = vsel %vm695_vm2, %v3761_v30, 0.0  ;;  %v864_v1 = vmul.f32 %v3632_v15, %v3744_v54 }
 0x2ae   :  { %v666_v27 = vpop.permute.xlu0 %665  ;;  %v866_v26 = vmul.f32 %v3642_v31, %v3752_v25  ;;  %v1001_v28 = vsub.f32 1.0, %v3661_v0 }
 0x2af   :  { %v674_v44 = vmul.f32 %v666_v27, %v654_v36  ;;  %v696_v61 = vsel %vm695_vm2, %v3758_v29, 0.0  ;;  %v1022_v36 = vmul.f32 %v3656_v50, %v3748_v13  ;;  %v1025_v50 = vmul.f32 %v3661_v0, %v3752_v25 }
 0x2b0   :  { %v850_v40 = vpop.permute.xlu1 %849  ;;  %v698_v4 = vadd.f32 %v697_v7, %v696_v61 }
 0x2b1   :  { %v3774_v60 = vadd.f32 %v690_v14, %v674_v44  ;;  %v860_v43 = vmul.f32 %v850_v40, %v840_v34  ;;  %v1000_v34 = vsub.f32 1.0, %v3665_v55 }
 0x2b2   :  { %v664_v52 = vpop.permute.xlu0 %663 }
 0x2b3   :  { %v673_v37 = vmul.f32 %v664_v52, %v653_v48  ;;  %v701_v57 = vsel %vm695_vm2, %v3774_v60, 0.0  ;;  %v3788_v33 = vadd.f32 %v864_v1, %v860_v43 }
 0x2b4   :  { %v854_v56 = vpop.permute.xlu1 %853 }
 0x2b5   :  { %v3776_v24 = vadd.f32 %v689_v35, %v673_v37  ;;  %v862_v59 = vmul.f32 %v854_v56, %v842_v45  ;;  %v872_v16 = vsel %vm695_vm2, %v3788_v33, 0.0 }
 0x2b6   :  { %v848_v49 = vpop.permute.xlu0 %847 }
 0x2b7   :  { %v699_v8 = vsel %vm695_vm2, %v3776_v24, 0.0  ;;  %v859_v51 = vmul.f32 %v848_v49, %v839_v41  ;;  %v3802_v22 = vadd.f32 %v866_v26, %v862_v59  ;;  %v1158_v41 = vsub.f32 1.0, %v3670_v58 }
 0x2b8   :  { %v700_v53 = vadd.f32 %v699_v8, %v698_v4  ;;  %v1024_v4 = vmul.f32 %v3665_v55, %v3746_v12  ;;  %v1181_v26 = vmul.f32 %v3675_v9, %v3748_v13 }
 0x2b9   :  { %v3790_v38 = vadd.f32 %v863_v10, %v859_v51  ;;  %v1009_v62 = vpop.permute.xlu1 %1008  ;;  %v876_v52 = vsel %vm695_vm2, %v3802_v22, 0.0 }
 0x2ba   :  { %v702_v15 = vadd.f32 %v701_v57, %v700_v53  ;;  %v852_v46 = vpop.permute.xlu0 %851  ;;  %v1019_v20 = vmul.f32 %v1009_v62, %v999_v2  ;;  %v1182_v62 = vmul.f32 %v3670_v58, %v3744_v54 }
 0x2bb   :  { %v871_v19 = vsel %vm695_vm2, %v3790_v38, 0.0  ;;  %v861_v3 = vmul.f32 %v852_v46, %v841_v17  ;;  %v1157_v17 = vsub.f32 1.0, %v3675_v9  ;;  %v1160_v46 = vsub.f32 1.0, %v3680_v63 }
 0x2bc   :  { %v703_v6 = vrot.slane %v702_v15, 4  ;;  %v873_v21 = vadd.f32 %v872_v16, %v871_v19  ;;  %v3816_v61 = vadd.f32 %v1023_v39, %v1019_v20  ;;  %v1159_v20 = vsub.f32 1.0, %v3684_v5 }
 0x2bd   :  { %v3804_v18 = vadd.f32 %v865_v42, %v861_v3  ;;  %v1013_v23 = vpop.permute.xlu1 %1012  ;;  %v1184_v39 = vmul.f32 %v3680_v63, %v3752_v25 }
 0x2be   :  { %v704_v31 = vadd.f32 %v703_v6, %v702_v15  ;;  %v1007_v27 = vpop.permute.xlu0 %1006  ;;  %v1021_v14 = vmul.f32 %v1013_v23, %v1001_v28  ;;  %v1031_v10 = vsel %vm695_vm2, %v3816_v61, 0.0 }
 0x2bf   :  { %v874_v32 = vsel %vm695_vm2, %v3804_v18, 0.0  ;;  %v1018_v40 = vmul.f32 %v1007_v27, %v998_v11 }
 0x2c0   :  { %v705_v44 = vrot.slane %v704_v31, 2  ;;  %v875_v48 = vadd.f32 %v874_v32, %v873_v21  ;;  %v3829_v51 = vadd.f32 %v1025_v50, %v1021_v14  ;;  %v1183_v32 = vmul.f32 %v3684_v5, %v3746_v12 }
 0x2c1   :  { %v3818_v35 = vadd.f32 %v1022_v36, %v1018_v40  ;;  %v1168_v47 = vpop.permute.xlu1 %1167 }
 0x2c2   :  { %v706_v37 = vadd.f32 %v705_v44, %v704_v31  ;;  %v877_v56 = vadd.f32 %v876_v52, %v875_v48  ;;  %v1011_v7 = vpop.permute.xlu0 %1010  ;;  %v1178_v8 = vmul.f32 %v1168_v47, %v1158_v41  ;;  %v1035_v16 = vsel %vm695_vm2, %v3829_v51, 0.0 }
 0x2c3   :  { %v1030_v43 = vsel %vm695_vm2, %v3818_v35, 0.0  ;;  %v1020_v45 = vmul.f32 %v1011_v7, %v1000_v34 }
 0x2c4   :  { %v707_v49 = vrot.slane %v706_v37, 1  ;;  %v878_v1 = vrot.slane %v877_v56, 4  ;;  %v1032_v59 = vadd.f32 %v1031_v10, %v1030_v43  ;;  %v3841_v6 = vadd.f32 %v1182_v62, %v1178_v8 }
 0x2c5   :  { %v3831_v53 = vadd.f32 %v1024_v4, %v1020_v45  ;;  %v1172_v55 = vpop.permute.xlu1 %1171 }
 0x2c6   :  { %v708_v0 = vadd.f32 %v707_v49, %v706_v37  ;;  %v879_v57 = vadd.f32 %v878_v1, %v877_v56  ;;  %v1166_v15 = vpop.permute.xlu0 %1165  ;;  %v1180_v58 = vmul.f32 %v1172_v55, %v1160_v46 }
 0x2c7   :  { %v1033_v2 = vsel %vm695_vm2, %v3831_v53, 0.0  ;;  %v1177_v19 = vmul.f32 %v1166_v15, %v1157_v17 }
 0x2c8   :  { %v710_v42 = vmul.f32 0.03125, %v708_v0  ;;  %v880_v3 = vrot.slane %v879_v57, 2  ;;  %v1034_v11 = vadd.f32 %v1033_v2, %v1032_v59  ;;  %v3878_v48 = vadd.f32 %v1184_v39, %v1180_v58 }
 0x2c9   :  { %v3845_v54 = vadd.f32 %v1181_v26, %v1177_v19 }
 0x2ca   :  { %v3849_v23 = vsub.f32 %v3758_v29, %v710_v42  ;;  %v3852_v31 = vsub.f32 %v3761_v30, %v710_v42  ;;  %v3855_v9 = vsub.f32 %v3776_v24, %v710_v42  ;;  %v3858_v13 = vsub.f32 %v3774_v60, %v710_v42  ;;  %v1170_v21 = vpop.permute.xlu0 %1169 }
 0x2cb   :  { %v881_v28 = vadd.f32 %v880_v3, %v879_v57  ;;  %v1036_v27 = vadd.f32 %v1035_v16, %v1034_v11  ;;  %v1190_v60 = vsel %vm695_vm2, %v3841_v6, 0.0  ;;  %v1189_v63 = vsel %vm695_vm2, %v3845_v54, 0.0 }
 0x2cc   :  { %v715_v29 = vmul.f32 %v3849_v23, %v3849_v23  ;;  %v716_v30 = vmul.f32 %v3852_v31, %v3852_v31  ;;  %v717_v24 = vmul.f32 %v3855_v9, %v3855_v9  ;;  %v1179_v25 = vmul.f32 %v1170_v21, %v1159_v20 }
 0x2cd   :  { %v882_v36 = vrot.slane %v881_v28, 1  ;;  %v1037_v40 = vrot.slane %v1036_v27, 4  ;;  %v718_v5 = vmul.f32 %v3858_v13, %v3858_v13  ;;  %v1191_v56 = vadd.f32 %v1190_v60, %v1189_v63 }
 0x2ce   :  { %v719_v12 = vsel %vm695_vm2, %v715_v29, 0.0  ;;  %v720_v44 = vsel %vm695_vm2, %v716_v30, 0.0  ;;  %v3880_v47 = vadd.f32 %v1183_v32, %v1179_v25  ;;  %v722_v37 = vsel %vm695_vm2, %v717_v24, 0.0 }
 0x2cf   :  { %v721_v34 = vadd.f32 %v720_v44, %v719_v12  ;;  %v883_v52 = vadd.f32 %v882_v36, %v881_v28  ;;  %v1038_v14 = vadd.f32 %v1037_v40, %v1036_v27  ;;  %v724_v4 = vsel %vm695_vm2, %v718_v5, 0.0 }
 0x2d0   :  { %v1192_v43 = vsel %vm695_vm2, %v3880_v47, 0.0  ;;  %v1194_v45 = vsel %vm695_vm2, %v3878_v48, 0.0 }
 0x2d1   :  { %v723_v41 = vadd.f32 %v722_v37, %v721_v34  ;;  %v884_v7 = vmul.f32 0.03125, %v883_v52  ;;  %v1039_v50 = vrot.slane %v1038_v14, 2  ;;  %v1193_v49 = vadd.f32 %v1192_v43, %v1191_v56 }
 0x2d3   :  { %v725_v1 = vadd.f32 %v724_v4, %v723_v41  ;;  %v3889_v8 = vsub.f32 %v3790_v38, %v884_v7  ;;  %v3892_v10 = vsub.f32 %v3788_v33, %v884_v7  ;;  %v3895_v17 = vsub.f32 %v3804_v18, %v884_v7 }
 0x2d4   :  { %v3898_v0 = vsub.f32 %v3802_v22, %v884_v7  ;;  %v1040_v57 = vadd.f32 %v1039_v50, %v1038_v14  ;;  %v1195_v59 = vadd.f32 %v1194_v45, %v1193_v49 }
 0x2d5   :  { %v726_v62 = vrot.slane %v725_v1, 4  ;;  %v889_v55 = vmul.f32 %v3889_v8, %v3889_v8  ;;  %v890_v15 = vmul.f32 %v3892_v10, %v3892_v10  ;;  %v891_v38 = vmul.f32 %v3895_v17, %v3895_v17 }
 0x2d6   :  { %v1041_v33 = vrot.slane %v1040_v57, 1  ;;  %v1196_v2 = vrot.slane %v1195_v59, 4  ;;  %v892_v18 = vmul.f32 %v3898_v0, %v3898_v0 }
 0x2d7   :  { %v727_v46 = vadd.f32 %v726_v62, %v725_v1  ;;  %v893_v22 = vsel %vm695_vm2, %v889_v55, 0.0  ;;  %v894_v26 = vsel %vm695_vm2, %v890_v15, 0.0  ;;  %v896_v16 = vsel %vm695_vm2, %v891_v38, 0.0 }
 0x2d8   :  { %v895_v19 = vadd.f32 %v894_v26, %v893_v22  ;;  %v1042_v42 = vadd.f32 %v1041_v33, %v1040_v57  ;;  %v1197_v3 = vadd.f32 %v1196_v2, %v1195_v59  ;;  %v898_v27 = vsel %vm695_vm2, %v892_v18, 0.0 }
 0x2d9   :  { %v728_v11 = vrot.slane %v727_v46, 2 }
 0x2da   :  { %v897_v58 = vadd.f32 %v896_v16, %v895_v19  ;;  %v1043_v20 = vmul.f32 0.03125, %v1042_v42  ;;  %v1198_v21 = vrot.slane %v1197_v3, 2 }
 0x2db   :  { %v729_v28 = vadd.f32 %v728_v11, %v727_v46 }
 0x2dc   :  { %v899_v39 = vadd.f32 %v898_v27, %v897_v58  ;;  %v3913_v32 = vsub.f32 %v3818_v35, %v1043_v20  ;;  %v3916_v29 = vsub.f32 %v3816_v61, %v1043_v20  ;;  %v3919_v30 = vsub.f32 %v3831_v53, %v1043_v20 }
 0x2dd   :  { %v730_v24 = vrot.slane %v729_v28, 1  ;;  %v3922_v60 = vsub.f32 %v3829_v51, %v1043_v20  ;;  %v1199_v36 = vadd.f32 %v1198_v21, %v1197_v3 }
 0x2de   :  { %v900_v40 = vrot.slane %v899_v39, 4  ;;  %v1048_v63 = vmul.f32 %v3913_v32, %v3913_v32  ;;  %v1049_v25 = vmul.f32 %v3916_v29, %v3916_v29  ;;  %v1050_v35 = vmul.f32 %v3919_v30, %v3919_v30 }
 0x2df   :  { %v731_v61 = vadd.f32 %v730_v24, %v729_v28  ;;  %v1200_v5 = vrot.slane %v1199_v36, 1  ;;  %v1051_v53 = vmul.f32 %v3922_v60, %v3922_v60 }
 0x2e0   :  { %v901_v12 = vadd.f32 %v900_v40, %v899_v39  ;;  %v1052_v51 = vsel %vm695_vm2, %v1048_v63, 0.0  ;;  %v1053_v44 = vsel %vm695_vm2, %v1049_v25, 0.0  ;;  %v1055_v56 = vsel %vm695_vm2, %v1050_v35, 0.0  ;;  %v3960_v39 = vpop.permute.xlu0 %744  ;;  %v3965_v35 = vpop.permute.xlu1 %756 }
 0x2e1   :  { %v732_v34 = vmul.f32 0.03125, %v731_v61  ;;  %v1054_v52 = vadd.f32 %v1053_v44, %v1052_v51  ;;  %v1201_v14 = vadd.f32 %v1200_v5, %v1199_v36  ;;  %v1057_v4 = vsel %vm695_vm2, %v1051_v53, 0.0 }
 0x2e2   :  { %v902_v37 = vrot.slane %v901_v12, 2 }
 0x2e3   :  { %v733_v41 = vadd.f32 1e-05, %v732_v34  ;;  %v1056_v7 = vadd.f32 %v1055_v56, %v1054_v52  ;;  %v1202_v50 = vmul.f32 0.03125, %v1201_v14 }
 0x2e4   :  { %v903_v43 = vadd.f32 %v902_v37, %v901_v12 }
 0x2e5   :  { %3189 = vrsqrt.f32 %v733_v41  ;;  %v1058_v45 = vadd.f32 %v1057_v4, %v1056_v7  ;;  %v3937_v49 = vsub.f32 %v3845_v54, %v1202_v50  ;;  %v3940_v1 = vsub.f32 %v3841_v6, %v1202_v50 }
 0x2e6   :  { %v904_v57 = vrot.slane %v903_v43, 1  ;;  %v3943_v59 = vsub.f32 %v3880_v47, %v1202_v50  ;;  %v3946_v62 = vsub.f32 %v3878_v48, %v1202_v50 }
 0x2e7   :  { %v1059_v55 = vrot.slane %v1058_v45, 4  ;;  %v1207_v15 = vmul.f32 %v3937_v49, %v3937_v49  ;;  %v1208_v38 = vmul.f32 %v3940_v1, %v3940_v1 }
 0x2e8   :  { %v905_v33 = vadd.f32 %v904_v57, %v903_v43  ;;  %v1209_v54 = vmul.f32 %v3943_v59, %v3943_v59  ;;  %v1210_v2 = vmul.f32 %v3946_v62, %v3946_v62 }
 0x2e9   :  { %v1060_v6 = vadd.f32 %v1059_v55, %v1058_v45  ;;  %v1211_v47 = vsel %vm695_vm2, %v1207_v15, 0.0  ;;  %v1212_v48 = vsel %vm695_vm2, %v1208_v38, 0.0 }
 0x2ea   :  { %v906_v46 = vmul.f32 0.03125, %v905_v33  ;;  %v1213_v18 = vadd.f32 %v1212_v48, %v1211_v47  ;;  %v1214_v26 = vsel %vm695_vm2, %v1209_v54, 0.0  ;;  %v1216_v11 = vsel %vm695_vm2, %v1210_v2, 0.0 }
 0x2eb   :  { %v1061_v22 = vrot.slane %v1060_v6, 2 }
 0x2ec   :  { %v907_v19 = vadd.f32 1e-05, %v906_v46  ;;  %v1215_v42 = vadd.f32 %v1214_v26, %v1213_v18 }
 0x2ed   :  { %v1062_v3 = vadd.f32 %v1061_v22, %v1060_v6 }
 0x2ee   :  { %3191 = vrsqrt.f32 %v907_v19  ;;  %v1217_v16 = vadd.f32 %v1216_v11, %v1215_v42 }
 0x2ef   :  { %v1063_v58 = vrot.slane %v1062_v3, 1 }
 0x2f0   :  { %v1218_v20 = vrot.slane %v1217_v16, 4 }
 0x2f1   :  { %v1064_v21 = vadd.f32 %v1063_v58, %v1062_v3 }
 0x2f2   :  { %v3190_v28 = vpop.eup %3189  ;;  %v1219_v27 = vadd.f32 %v1218_v20, %v1217_v16 }
 0x2f3   :  { %v737_v24 = vmul.f32 %v3190_v28, %v3855_v9  ;;  %v1065_v36 = vmul.f32 0.03125, %v1064_v21  ;;  %v736_v40 = vmul.f32 %v3190_v28, %v3852_v31  ;;  %v735_v63 = vmul.f32 %v3190_v28, %v3849_v23 }
 0x2f4   :  { %v1220_v25 = vrot.slane %v1219_v27, 2  ;;  %v738_v61 = vmul.f32 %v3190_v28, %v3858_v13 }
 0x2f5   :  { %v1066_v5 = vadd.f32 1e-05, %v1065_v36  ;;  %v748_v12 = vmul.f32 %v3960_v39, %v736_v40  ;;  %v747_v53 = vmul.f32 %v3960_v39, %v735_v63  ;;  %v749_v44 = vmul.f32 %v3960_v39, %v737_v24  ;;  %v1264_v24 = vld [vmem:[%s4840_s4 + $0x30] sm:$0xff] }
 0x2f6   :  { %v1221_v51 = vadd.f32 %v1220_v25, %v1219_v27  ;;  %v750_v23 = vmul.f32 %v3960_v39, %v738_v61 }
 0x2f7   :  { %3193 = vrsqrt.f32 %v1066_v5  ;;  %v760_v9 = vadd.f32 %v3965_v35, %v748_v12  ;;  %v759_v31 = vadd.f32 %v3965_v35, %v747_v53  ;;  %v761_v37 = vadd.f32 %v3965_v35, %v749_v44 }
 0x2f8   :  { %v1222_v34 = vrot.slane %v1221_v51, 1  ;;  %v762_v14 = vadd.f32 %v3965_v35, %v750_v23 }
 0x2f9   :  { %769 = vrot.lane.b32.xlu1 %v760_v9, %s3304_s28  ;;  %767 = vrot.lane.b32.xlu0 %v759_v31, %s3304_s28 }
 0x2fa   :  { %v1223_v13 = vadd.f32 %v1222_v34, %v1221_v51  ;;  %v4110_v34 = vld [vmem:[%s4841_s1 + $0x20] sm:$0xff] }
 0x2fb   :  { %v3192_v52 = vpop.eup %3191 }
 0x2fc   :  { %v911_v56 = vmul.f32 %v3192_v52, %v3895_v17  ;;  %v1224_v41 = vmul.f32 0.03125, %v1223_v13  ;;  %v910_v7 = vmul.f32 %v3192_v52, %v3892_v10  ;;  %v909_v50 = vmul.f32 %v3192_v52, %v3889_v8  ;;  %v4127_v13 = vld [vmem:[%s4841_s1 + $0x28] sm:$0xff] }
 0x2fd   :  { %773 = vrot.lane.b32.xlu1 %v762_v14, %s3304_s28  ;;  %771 = vrot.lane.b32.xlu0 %v761_v37, %s3304_s28  ;;  %v912_v43 = vmul.f32 %v3192_v52, %v3898_v0  ;;  %v4132_v52 = vld [vmem:[%s4841_s1 + $0x30] sm:$0xff]  ;;  %v4141_v14 = vld [vmem:[%s4841_s1 + $0x38] sm:$0xff] }
 0x2fe   :  { %v1225_v4 = vadd.f32 1e-05, %v1224_v41  ;;  %v914_v45 = vmul.f32 %v910_v7, %v3960_v39  ;;  %v913_v57 = vmul.f32 %v909_v50, %v3960_v39  ;;  %v915_v55 = vmul.f32 %v911_v56, %v3960_v39  ;;  %v1262_v37 = vld [vmem:[%s4840_s4 + $0x20] sm:$0xff] }
 0x2ff   :  { %v916_v8 = vmul.f32 %v912_v43, %v3960_v39  ;;  %v2730_v56 = vld [vmem:[%s4842_s6 + $0x3] ss:$0 sm:$0xff] }
 0x300   :  { %3195 = vrsqrt.f32 %v1225_v4  ;;  %v918_v17 = vadd.f32 %v914_v45, %v3965_v35  ;;  %v917_v10 = vadd.f32 %v913_v57, %v3965_v35  ;;  %v919_v38 = vadd.f32 %v915_v55, %v3965_v35 }
 0x301   :  { %v920_v0 = vadd.f32 %v916_v8, %v3965_v35 }
 0x302   :  { %927 = vrot.lane.b32.xlu1 %v918_v17, %s3304_s28  ;;  %925 = vrot.lane.b32.xlu0 %v917_v10, %s3304_s28 }
 0x304   :  { %v3194_v15 = vpop.eup %3193 }
 0x305   :  { %v1070_v33 = vmul.f32 %v3194_v15, %v3919_v30  ;;  %v1069_v54 = vmul.f32 %v3194_v15, %v3916_v29  ;;  %v1068_v6 = vmul.f32 %v3194_v15, %v3913_v32  ;;  %v1071_v2 = vmul.f32 %v3194_v15, %v3922_v60  ;;  %v1265_v32 = vld [vmem:[%s4840_s4 + $0x38] sm:$0xff] }
 0x306   :  { %931 = vrot.lane.b32.xlu1 %v920_v0, %s3304_s28  ;;  %929 = vrot.lane.b32.xlu0 %v919_v38, %s3304_s28 }
 0x307   :  { %v1073_v47 = vmul.f32 %v1069_v54, %v3960_v39  ;;  %v1072_v48 = vmul.f32 %v1068_v6, %v3960_v39  ;;  %v1075_v30 = vmul.f32 %v1071_v2, %v3960_v39  ;;  %v1074_v29 = vmul.f32 %v1070_v33, %v3960_v39  ;;  %3049 = vmatprep.subr.mxu1 %v1265_v32 }
 0x309   :  { %v1077_v46 = vadd.f32 %v1073_v47, %v3965_v35  ;;  %v1076_v18 = vadd.f32 %v1072_v48, %v3965_v35  ;;  %v1079_v22 = vadd.f32 %v1075_v30, %v3965_v35  ;;  %v1078_v26 = vadd.f32 %v1074_v29, %v3965_v35 }
 0x30b   :  { %1086 = vrot.lane.b32.xlu1 %v1077_v46, %s3304_s28  ;;  %1084 = vrot.lane.b32.xlu0 %v1076_v18, %s3304_s28 }
 0x30d   :  { %v3196_v60 = vpop.eup %3195 }
 0x30e   :  { %v1229_v19 = vmul.f32 %v3196_v60, %v3943_v59  ;;  %v1228_v42 = vmul.f32 %v3196_v60, %v3940_v1  ;;  %v1227_v3 = vmul.f32 %v3196_v60, %v3937_v49  ;;  %v1230_v11 = vmul.f32 %v3196_v60, %v3946_v62  ;;  %v1263_v49 = vld [vmem:[%s4840_s4 + $0x28] sm:$0xff] }
 0x30f   :  { %1090 = vrot.lane.b32.xlu1 %v1079_v22, %s3304_s28  ;;  %1088 = vrot.lane.b32.xlu0 %v1078_v26, %s3304_s28 }
 0x310   :  { %v1232_v16 = vmul.f32 %v1228_v42, %v3960_v39  ;;  %v1231_v58 = vmul.f32 %v1227_v3, %v3960_v39  ;;  %v1234_v59 = vmul.f32 %v1230_v11, %v3960_v39  ;;  %v1233_v1 = vmul.f32 %v1229_v19, %v3960_v39  ;;  %3021 = vmatprep.subr.mxu0 %v1263_v49 }
 0x311   :  { %3022 = vmatpush3.msra.mxu0 %v1263_v49 }
 0x312   :  { %v1236_v20 = vadd.f32 %v1232_v16, %v3965_v35  ;;  %v1235_v21 = vadd.f32 %v1231_v58, %v3965_v35  ;;  %v1238_v62 = vadd.f32 %v1234_v59, %v3965_v35  ;;  %v1237_v28 = vadd.f32 %v1233_v1, %v3965_v35  ;;  %3023 = vmatprep.subr.mxu0 %v1262_v37 }
 0x313   :  { %3024 = vmatpush3.msra.mxu0 %v1262_v37 }
 0x314   :  { %1245 = vrot.lane.b32.xlu1 %v1236_v20, %s3304_s28  ;;  %1243 = vrot.lane.b32.xlu0 %v1235_v21, %s3304_s28 }
 0x318   :  { %1249 = vrot.lane.b32.xlu1 %v1238_v62, %s3304_s28  ;;  %1247 = vrot.lane.b32.xlu0 %v1237_v28, %s3304_s28 }
 0x36b   :  { %v770_v27 = vpop.permute.xlu1 %769  ;;  %v768_v39 = vpop.permute.xlu0 %767 }
 0x36c   :  { %780 = vst.msk [vmem:[%s4845_s9 + $0x8] sm:$0xff] %vm284_vm1, %v770_v27  ;;  %779 = vst.msk [vmem:[%s4845_s9] sm:$0xff] %vm284_vm1, %v768_v39  ;;  %2997 = vmatprep.mubr.msk.f32.mxu1 %vm284_vm1, %v768_v39 }
 0x36d   :  { %2998 = vmatmul.mubr.msk.f32.vlgmr.msra.gmra.mxu1 %vm284_vm1, %v770_v27 }
 0x36e   :  { %3050 = vmatpush3.msra.mxu1 %v1265_v32 }
 0x36f   :  { %v774_v36 = vpop.permute.xlu1 %773  ;;  %v772_v40 = vpop.permute.xlu0 %771  ;;  %3051 = vmatprep.subr.mxu1 %v1264_v24 }
 0x370   :  { %782 = vst.msk [vmem:[%s4845_s9 + $0x18] sm:$0xff] %vm284_vm1, %v774_v36  ;;  %781 = vst.msk [vmem:[%s4845_s9 + $0x10] sm:$0xff] %vm284_vm1, %v772_v40  ;;  %3000 = vmatprep.mubr.msk.f32.mxu1 %vm284_vm1, %v772_v40  ;;  %3052 = vmatpush3.msra.mxu1 %v1264_v24  ;;  %v2764_v40 = vld [vmem:[%s4843_s5 + $0x3] ss:$0 sm:$0xff] }
 0x371   :  { %3001 = vmatmul.mubr.msk.f32.gmra.mxu1 %vm284_vm1, %v774_v36 }
 0x374   :  { %v928_v63 = vpop.permute.xlu1 %927  ;;  %v926_v25 = vpop.permute.xlu0 %925 }
 0x375   :  { %2711 = vst.msk [vmem:[%s4845_s9 + $0x28] sm:$0xff] %vm284_vm1, %v928_v63  ;;  %2710 = vst.msk [vmem:[%s4845_s9 + $0x20] sm:$0xff] %vm284_vm1, %v926_v25  ;;  %3003 = vmatprep.mubr.msk.f32.mxu1 %vm284_vm1, %v926_v25 }
 0x376   :  { %3004 = vmatmul.mubr.msk.f32.gmra.mxu1 %vm284_vm1, %v928_v63 }
 0x378   :  { %v932_v35 = vpop.permute.xlu1 %931  ;;  %v930_v61 = vpop.permute.xlu0 %929 }
 0x379   :  { %2713 = vst.msk [vmem:[%s4845_s9 + $0x38] sm:$0xff] %vm284_vm1, %v932_v35  ;;  %2712 = vst.msk [vmem:[%s4845_s9 + $0x30] sm:$0xff] %vm284_vm1, %v930_v61  ;;  %3006 = vmatprep.mubr.msk.f32.mxu1 %vm284_vm1, %v930_v61 }
 0x37a   :  { %3007 = vmatmul.mubr.msk.f32.gmra.mxu1 %vm284_vm1, %v932_v35 }
 0x37d   :  { %v1087_v5 = vpop.permute.xlu1 %1086  ;;  %v1085_v12 = vpop.permute.xlu0 %1084 }
 0x37e   :  { %2719 = vst.msk [vmem:[%s4845_s9 + $0x48] sm:$0xff] %vm284_vm1, %v1087_v5  ;;  %2718 = vst.msk [vmem:[%s4845_s9 + $0x40] sm:$0xff] %vm284_vm1, %v1085_v12  ;;  %3009 = vmatprep.mubr.msk.f32.mxu1 %vm284_vm1, %v1085_v12 }
 0x37f   :  { %3010 = vmatmul.mubr.msk.f32.gmra.mxu1 %vm284_vm1, %v1087_v5 }
 0x381   :  { %v1091_v53 = vpop.permute.xlu1 %1090  ;;  %v1089_v51 = vpop.permute.xlu0 %1088 }
 0x382   :  { %2721 = vst.msk [vmem:[%s4845_s9 + $0x58] sm:$0xff] %vm284_vm1, %v1091_v53  ;;  %2720 = vst.msk [vmem:[%s4845_s9 + $0x50] sm:$0xff] %vm284_vm1, %v1089_v51  ;;  %3012 = vmatprep.mubr.msk.f32.mxu1 %vm284_vm1, %v1089_v51 }
 0x383   :  { %3013 = vmatmul.mubr.msk.f32.gmra.mxu1 %vm284_vm1, %v1091_v53 }
 0x386   :  { %v1246_v44 = vpop.permute.xlu1 %1245  ;;  %v1244_v9 = vpop.permute.xlu0 %1243 }
 0x387   :  { %2727 = vst.msk [vmem:[%s4845_s9 + $0x68] sm:$0xff] %vm284_vm1, %v1246_v44  ;;  %2726 = vst.msk [vmem:[%s4845_s9 + $0x60] sm:$0xff] %vm284_vm1, %v1244_v9  ;;  %3015 = vmatprep.mubr.msk.f32.mxu1 %vm284_vm1, %v1244_v9 }
 0x388   :  { %3016 = vmatmul.mubr.msk.f32.gmra.mxu1 %vm284_vm1, %v1246_v44 }
 0x38a   :  { %v1250_v31 = vpop.permute.xlu1 %1249  ;;  %v1248_v23 = vpop.permute.xlu0 %1247 }
 0x38b   :  { %2729 = vst.msk [vmem:[%s4845_s9 + $0x78] sm:$0xff] %vm284_vm1, %v1250_v31  ;;  %2728 = vst.msk [vmem:[%s4845_s9 + $0x70] sm:$0xff] %vm284_vm1, %v1248_v23  ;;  %3018 = vmatprep.mubr.msk.f32.mxu1 %vm284_vm1, %v1248_v23  ;;  %v4189_v23 = vld [vmem:[%s4843_s5 + $0x2] ss:$0 sm:$0xff] }
 0x38c   :  { %3019 = vmatmul.mubr.msk.f32.gmra.mxu1 %vm284_vm1, %v1250_v31 }
 0x38d   :  { %3053 = vmatprep.mubr.msk.f32.mxu1 %vm284_vm1, %v4110_v34 }
 0x390   :  { %3054 = vmatmul.mubr.msk.f32.vlgmr.msra.gmra.mxu1 %vm284_vm1, %v4127_v13 }
 0x391   :  { %3056 = vmatprep.mubr.msk.f32.mxu1 %vm284_vm1, %v4132_v52 }
 0x394   :  { %3057 = vmatmul.mubr.msk.f32.gmra.mxu1 %vm284_vm1, %v4141_v14 }
 0x42d   :  { %v2999_v41 = vpop.f32.mrf.mxu1 }
 0x42e   :  { %v1379_v7 = vadd.f32 %v2999_v41, %v2730_v56 }
 0x42f   :  { %v1373_v50 = vpop.f32.mrf.mxu1 }
 0x430   :  { %v1374_v43 = vadd.f32 %v2730_v56, %v1373_v50  ;;  %v1453_v57 = vmax.f32 %v1379_v7, 0.0 }
 0x431   :  { %v3002_v4 = vpop.f32.mrf.mxu1 }
 0x432   :  { %v1452_v45 = vmax.f32 %v1374_v43, 0.0  ;;  %v1389_v55 = vadd.f32 %v3002_v4, %v2730_v56 }
 0x433   :  { %v1383_v17 = vpop.f32.mrf.mxu1 }
 0x434   :  { %v1384_v10 = vadd.f32 %v2730_v56, %v1383_v17  ;;  %3025 = vmatprep.mubr.msk.f32.mxu0 %vm284_vm1, %v1452_v45  ;;  %v1455_v0 = vmax.f32 %v1389_v55, 0.0 }
 0x435   :  { %3026 = vmatmul.mubr.msk.f32.vlgmr.msra.gmra.mxu0 %vm284_vm1, %v1453_v57 }
 0x436   :  { %v1454_v8 = vmax.f32 %v1384_v10, 0.0  ;;  %v3005_v15 = vpop.f32.mrf.mxu1 }
 0x437   :  { %v1399_v38 = vadd.f32 %v3005_v15, %v2730_v56 }
 0x438   :  { %v1393_v33 = vpop.f32.mrf.mxu1  ;;  %3028 = vmatprep.mubr.msk.f32.mxu0 %vm284_vm1, %v1454_v8 }
 0x439   :  { %v1394_v54 = vadd.f32 %v2730_v56, %v1393_v33  ;;  %3029 = vmatmul.mubr.msk.f32.gmra.mxu0 %vm284_vm1, %v1455_v0  ;;  %v1457_v47 = vmax.f32 %v1399_v38, 0.0 }
 0x43a   :  { %v3008_v6 = vpop.f32.mrf.mxu1 }
 0x43b   :  { %v1456_v2 = vmax.f32 %v1394_v54, 0.0  ;;  %v1409_v48 = vadd.f32 %v3008_v6, %v2730_v56 }
 0x43c   :  { %v1403_v46 = vpop.f32.mrf.mxu1 }
 0x43d   :  { %v1404_v18 = vadd.f32 %v2730_v56, %v1403_v46  ;;  %3031 = vmatprep.mubr.msk.f32.mxu0 %vm284_vm1, %v1456_v2  ;;  %v1459_v32 = vmax.f32 %v1409_v48, 0.0 }
 0x43e   :  { %3032 = vmatmul.mubr.msk.f32.gmra.mxu0 %vm284_vm1, %v1457_v47 }
 0x43f   :  { %v1458_v30 = vmax.f32 %v1404_v18, 0.0  ;;  %v3011_v29 = vpop.f32.mrf.mxu1 }
 0x440   :  { %v1419_v60 = vadd.f32 %v3011_v29, %v2730_v56 }
 0x441   :  { %v1413_v22 = vpop.f32.mrf.mxu1  ;;  %3034 = vmatprep.mubr.msk.f32.mxu0 %vm284_vm1, %v1458_v30 }
 0x442   :  { %v1414_v26 = vadd.f32 %v2730_v56, %v1413_v22  ;;  %3035 = vmatmul.mubr.msk.f32.gmra.mxu0 %vm284_vm1, %v1459_v32  ;;  %v1461_v3 = vmax.f32 %v1419_v60, 0.0 }
 0x443   :  { %v3014_v19 = vpop.f32.mrf.mxu1 }
 0x444   :  { %v1460_v42 = vmax.f32 %v1414_v26, 0.0  ;;  %v1429_v11 = vadd.f32 %v3014_v19, %v2730_v56 }
 0x445   :  { %v1423_v16 = vpop.f32.mrf.mxu1 }
 0x446   :  { %v1424_v58 = vadd.f32 %v2730_v56, %v1423_v16  ;;  %3037 = vmatprep.mubr.msk.f32.mxu0 %vm284_vm1, %v1460_v42  ;;  %v1463_v59 = vmax.f32 %v1429_v11, 0.0 }
 0x447   :  { %3038 = vmatmul.mubr.msk.f32.gmra.mxu0 %vm284_vm1, %v1461_v3 }
 0x448   :  { %v1462_v20 = vmax.f32 %v1424_v58, 0.0  ;;  %v3017_v21 = vpop.f32.mrf.mxu1 }
 0x449   :  { %v1439_v1 = vadd.f32 %v3017_v21, %v2730_v56 }
 0x44a   :  { %v1433_v49 = vpop.f32.mrf.mxu1  ;;  %3040 = vmatprep.mubr.msk.f32.mxu0 %vm284_vm1, %v1462_v20 }
 0x44b   :  { %v1434_v62 = vadd.f32 %v2730_v56, %v1433_v49  ;;  %3041 = vmatmul.mubr.msk.f32.gmra.mxu0 %vm284_vm1, %v1463_v59  ;;  %v1465_v39 = vmax.f32 %v1439_v1, 0.0 }
 0x44c   :  { %v3020_v28 = vpop.f32.mrf.mxu1 }
 0x44d   :  { %v1464_v27 = vmax.f32 %v1434_v62, 0.0  ;;  %v1449_v24 = vadd.f32 %v3020_v28, %v2730_v56 }
 0x44e   :  { %v1443_v36 = vpop.f32.mrf.mxu1 }
 0x44f   :  { %v1444_v63 = vadd.f32 %v2730_v56, %v1443_v36  ;;  %3043 = vmatprep.mubr.msk.f32.mxu0 %vm284_vm1, %v1464_v27  ;;  %v1467_v5 = vmax.f32 %v1449_v24, 0.0 }
 0x450   :  { %3044 = vmatmul.mubr.msk.f32.gmra.mxu0 %vm284_vm1, %v1465_v39  ;;  %v3055_v25 = vpop.f32.mrf.mxu1 }
 0x451   :  { %v1466_v35 = vmax.f32 %v1444_v63, 0.0  ;;  %v4168_v61 = vadd.f32 %v3055_v25, %v2764_v40 }
 0x452   :  { %v1747_v12 = vpop.f32.mrf.mxu1 }
 0x453   :  { %3046 = vmatprep.mubr.msk.f32.mxu0 %vm284_vm1, %v1466_v35  ;;  %v4171_v53 = vadd.f32 %v2764_v40, %v1747_v12  ;;  %1800 = vrot.lane.b32.xlu1 %v4168_v61, %s3301_s23 }
 0x454   :  { %3047 = vmatmul.mubr.msk.f32.gmra.mxu0 %vm284_vm1, %v1467_v5  ;;  %v3058_v51 = vpop.f32.mrf.mxu1 }
 0x455   :  { %1798 = vrot.lane.b32.xlu0 %v4171_v53, %s3301_s23  ;;  %v4178_v44 = vadd.f32 %v3058_v51, %v2764_v40 }
 0x456   :  { %v1757_v9 = vpop.f32.mrf.mxu1 }
 0x457   :  { %v4180_v31 = vadd.f32 %v2764_v40, %v1757_v9  ;;  %1804 = vrot.lane.b32.xlu1 %v4178_v44, %s3301_s23 }
 0x459   :  { %1802 = vrot.lane.b32.xlu0 %v4180_v31, %s3301_s23 }
 0x4f5   :  { %v3027_v37 = vpop.f32.mrf.mxu0 }
 0x4f6   :  { %v4192_v56 = vadd.f32 %v3027_v37, %v4189_v23 }
 0x4f7   :  { %v1586_v41 = vpop.f32.mrf.mxu0 }
 0x4f8   :  { %v1767_v7 = vadd.f32 %v4168_v61, %v4192_v56  ;;  %v4197_v50 = vadd.f32 %v4189_v23, %v1586_v41 }
 0x4f9   :  { %v3030_v43 = vpop.f32.mrf.mxu0 }
 0x4fa   :  { %v2770_v4 = vmul.f32 -1.442695, %v1767_v7  ;;  %v1766_v45 = vadd.f32 %v4171_v53, %v4197_v50  ;;  %v4202_v57 = vadd.f32 %v3030_v43, %v4189_v23 }
 0x4fb   :  { %v1596_v55 = vpop.f32.mrf.mxu0 }
 0x4fc   :  { %3197 = vpow2.f32 %v2770_v4  ;;  %v2769_v17 = vmul.f32 -1.442695, %v1766_v45  ;;  %v1769_v10 = vadd.f32 %v4178_v44, %v4202_v57  ;;  %v4207_v8 = vadd.f32 %v4189_v23, %v1596_v55 }
 0x4fe   :  { %3199 = vpow2.f32 %v2769_v17  ;;  %v2772_v15 = vmul.f32 -1.442695, %v1769_v10  ;;  %v1768_v0 = vadd.f32 %v4180_v31, %v4207_v8  ;;  %v3033_v38 = vpop.f32.mrf.mxu0 }
 0x4ff   :  { %v4212_v33 = vadd.f32 %v3033_v38, %v4189_v23 }
 0x500   :  { %3201 = vpow2.f32 %v2772_v15  ;;  %v2771_v54 = vmul.f32 -1.442695, %v1768_v0  ;;  %v1606_v6 = vpop.f32.mrf.mxu0 }
 0x501   :  { %v1969_v2 = vadd.f32 %v4168_v61, %v4212_v33  ;;  %v4217_v47 = vadd.f32 %v4189_v23, %v1606_v6  ;;  %v4261_v6 = vpop.permute.xlu1 %1800 }
 0x502   :  { %3203 = vpow2.f32 %v2771_v54  ;;  %v3036_v48 = vpop.f32.mrf.mxu0 }
 0x503   :  { %v2776_v46 = vmul.f32 -1.442695, %v1969_v2  ;;  %v1968_v18 = vadd.f32 %v4171_v53, %v4217_v47  ;;  %v4222_v30 = vadd.f32 %v3036_v48, %v4189_v23 }
 0x504   :  { %v1616_v29 = vpop.f32.mrf.mxu0 }
 0x505   :  { %3205 = vpow2.f32 %v2776_v46  ;;  %v2775_v32 = vmul.f32 -1.442695, %v1968_v18  ;;  %v1971_v60 = vadd.f32 %v4178_v44, %v4222_v30  ;;  %v4227_v22 = vadd.f32 %v4189_v23, %v1616_v29 }
 0x507   :  { %3207 = vpow2.f32 %v2775_v32  ;;  %v2778_v26 = vmul.f32 -1.442695, %v1971_v60  ;;  %v1970_v19 = vadd.f32 %v4180_v31, %v4227_v22  ;;  %v3039_v42 = vpop.f32.mrf.mxu0 }
 0x508   :  { %v4232_v3 = vadd.f32 %v3039_v42, %v4189_v23  ;;  %v4275_v42 = vpop.permute.xlu0 %1798 }
 0x509   :  { %v3198_v11 = vpop.eup %3197  ;;  %3209 = vpow2.f32 %v2778_v26  ;;  %v2777_v16 = vmul.f32 -1.442695, %v1970_v19  ;;  %v1626_v58 = vpop.f32.mrf.mxu0 }
 0x50a   :  { %v1783_v20 = vadd.f32 1.0, %v3198_v11  ;;  %v2128_v21 = vadd.f32 %v4168_v61, %v4232_v3  ;;  %v4237_v59 = vadd.f32 %v4189_v23, %v1626_v58 }
 0x50b   :  { %v3200_v1 = vpop.eup %3199  ;;  %3211 = vpow2.f32 %v2777_v16  ;;  %v3042_v49 = vpop.f32.mrf.mxu0 }
 0x50c   :  { %3213 = vrcp.f32 %v1783_v20  ;;  %v1782_v62 = vadd.f32 1.0, %v3200_v1  ;;  %v2784_v28 = vmul.f32 -1.442695, %v2128_v21  ;;  %v2127_v27 = vadd.f32 %v4171_v53, %v4237_v59  ;;  %v4281_v20 = vpop.permute.xlu1 %1804 }
 0x50d   :  { %v3202_v39 = vpop.eup %3201  ;;  %v4242_v24 = vadd.f32 %v3042_v49, %v4189_v23  ;;  %v1636_v36 = vpop.f32.mrf.mxu0 }
 0x50e   :  { %3215 = vrcp.f32 %v1782_v62  ;;  %v1785_v40 = vadd.f32 1.0, %v3202_v39  ;;  %v2783_v63 = vmul.f32 -1.442695, %v2127_v27  ;;  %v4245_v25 = vadd.f32 %v4189_v23, %v1636_v36  ;;  %v1803_v49 = vpop.permute.xlu0 %1802 }
 0x50f   :  { %v3204_v35 = vpop.eup %3203  ;;  %3217 = vpow2.f32 %v2784_v28  ;;  %v2130_v5 = vadd.f32 %v4178_v44, %v4242_v24 }
 0x510   :  { %3219 = vrcp.f32 %v1785_v40  ;;  %v1784_v12 = vadd.f32 1.0, %v3204_v35  ;;  %v2129_v51 = vadd.f32 %v4180_v31, %v4245_v25  ;;  %v3045_v9 = vpop.f32.mrf.mxu0 }
 0x511   :  { %3221 = vpow2.f32 %v2783_v63  ;;  %v2786_v37 = vmul.f32 -1.442695, %v2130_v5  ;;  %v4252_v41 = vadd.f32 %v3045_v9, %v4189_v23 }
 0x512   :  { %v3206_v7 = vpop.eup %3205  ;;  %3223 = vrcp.f32 %v1784_v12  ;;  %v2785_v43 = vmul.f32 -1.442695, %v2129_v51  ;;  %v1646_v4 = vpop.f32.mrf.mxu0 }
 0x513   :  { %v1985_v45 = vadd.f32 1.0, %v3206_v7  ;;  %3225 = vpow2.f32 %v2786_v37  ;;  %v2287_v55 = vadd.f32 %v4168_v61, %v4252_v41  ;;  %v4257_v17 = vadd.f32 %v4189_v23, %v1646_v4 }
 0x514   :  { %v3208_v10 = vpop.eup %3207  ;;  %3227 = vpow2.f32 %v2785_v43  ;;  %v3048_v15 = vpop.f32.mrf.mxu0 }
 0x515   :  { %3229 = vrcp.f32 %v1985_v45  ;;  %v1984_v0 = vadd.f32 1.0, %v3208_v10  ;;  %v2792_v38 = vmul.f32 -1.442695, %v2287_v55  ;;  %v2286_v54 = vadd.f32 %v4171_v53, %v4257_v17 }
 0x516   :  { %v3210_v2 = vpop.eup %3209  ;;  %v4264_v48 = vadd.f32 %v3048_v15, %v4189_v23  ;;  %v1656_v46 = vpop.f32.mrf.mxu0 }
 0x517   :  { %3231 = vrcp.f32 %v1984_v0  ;;  %v1987_v61 = vadd.f32 1.0, %v3210_v2  ;;  %v2791_v18 = vmul.f32 -1.442695, %v2286_v54  ;;  %v4267_v29 = vadd.f32 %v4189_v23, %v1656_v46 }
 0x518   :  { %v3212_v32 = vpop.eup %3211  ;;  %3233 = vpow2.f32 %v2792_v38  ;;  %v2289_v60 = vadd.f32 %v4178_v44, %v4264_v48 }
 0x519   :  { %v4271_v26 = vpop.eup %3213  ;;  %3235 = vrcp.f32 %v1987_v61  ;;  %v1986_v53 = vadd.f32 1.0, %v3212_v32  ;;  %v2288_v19 = vadd.f32 %v4180_v31, %v4267_v29 }
 0x51a   :  { %3237 = vpow2.f32 %v2791_v18  ;;  %v2794_v11 = vmul.f32 -1.442695, %v2289_v60  ;;  %v1811_v23 = vmul.f32 %v4271_v26, %v4261_v6 }
 0x51b   :  { %v4279_v16 = vpop.eup %3215  ;;  %3239 = vrcp.f32 %v1986_v53  ;;  %v2793_v58 = vmul.f32 -1.442695, %v2288_v19 }
 0x51c   :  { %v3218_v44 = vpop.eup %3217  ;;  %3241 = vpow2.f32 %v2794_v11  ;;  %1820 = vrot.lane.b32.xlu1 %v1811_v23, %s3302_s26  ;;  %v1810_v31 = vmul.f32 %v4279_v16, %v4275_v42 }
 0x51d   :  { %v4286_v21 = vpop.eup %3219  ;;  %v2144_v1 = vadd.f32 1.0, %v3218_v44  ;;  %3243 = vpow2.f32 %v2793_v58 }
 0x51e   :  { %v3222_v62 = vpop.eup %3221  ;;  %1818 = vrot.lane.b32.xlu0 %v1810_v31, %s3302_s26  ;;  %v1813_v28 = vmul.f32 %v4286_v21, %v4281_v20 }
 0x51f   :  { %v4291_v27 = vpop.eup %3223  ;;  %3245 = vrcp.f32 %v2144_v1  ;;  %v2143_v39 = vadd.f32 1.0, %v3222_v62 }
 0x520   :  { %v3226_v36 = vpop.eup %3225  ;;  %1824 = vrot.lane.b32.xlu1 %v1813_v28, %s3302_s26  ;;  %v1812_v40 = vmul.f32 %v4291_v27, %v1803_v49 }
 0x521   :  { %v3228_v63 = vpop.eup %3227  ;;  %3247 = vrcp.f32 %v2143_v39  ;;  %v2146_v35 = vadd.f32 1.0, %v3226_v36 }
 0x522   :  { %v4295_v5 = vpop.eup %3229  ;;  %v2145_v12 = vadd.f32 1.0, %v3228_v63  ;;  %1822 = vrot.lane.b32.xlu0 %v1812_v40, %s3302_s26 }
 0x523   :  { %3249 = vrcp.f32 %v2146_v35  ;;  %v1997_v51 = vmul.f32 %v4295_v5, %v4261_v6 }
 0x524   :  { %v4300_v9 = vpop.eup %3231  ;;  %3251 = vrcp.f32 %v2145_v12 }
 0x525   :  { %v3234_v37 = vpop.eup %3233  ;;  %2006 = vrot.lane.b32.xlu1 %v1997_v51, %s3302_s26  ;;  %v1996_v7 = vmul.f32 %v4300_v9, %v4275_v42 }
 0x526   :  { %v4305_v43 = vpop.eup %3235  ;;  %v2303_v4 = vadd.f32 1.0, %v3234_v37 }
 0x527   :  { %v3238_v45 = vpop.eup %3237  ;;  %2004 = vrot.lane.b32.xlu0 %v1996_v7, %s3302_s26  ;;  %v1999_v55 = vmul.f32 %v4305_v43, %v4281_v20 }
 0x528   :  { %v4310_v10 = vpop.eup %3239  ;;  %3253 = vrcp.f32 %v2303_v4  ;;  %v2302_v15 = vadd.f32 1.0, %v3238_v45 }
 0x529   :  { %v3242_v0 = vpop.eup %3241  ;;  %2010 = vrot.lane.b32.xlu1 %v1999_v55, %s3302_s26  ;;  %v1998_v38 = vmul.f32 %v4310_v10, %v1803_v49 }
 0x52a   :  { %v3244_v54 = vpop.eup %3243  ;;  %3255 = vrcp.f32 %v2302_v15  ;;  %v2305_v2 = vadd.f32 1.0, %v3242_v0 }
 0x52b   :  { %v2304_v46 = vadd.f32 1.0, %v3244_v54  ;;  %2008 = vrot.lane.b32.xlu0 %v1998_v38, %s3302_s26 }
 0x52c   :  { %v4315_v61 = vpop.eup %3245  ;;  %3257 = vrcp.f32 %v2305_v2 }
 0x52d   :  { %3259 = vrcp.f32 %v2304_v46  ;;  %v2156_v18 = vmul.f32 %v4315_v61, %v4261_v6 }
 0x52e   :  { %v4319_v32 = vpop.eup %3247 }
 0x52f   :  { %2165 = vrot.lane.b32.xlu1 %v2156_v18, %s3302_s26  ;;  %v2155_v60 = vmul.f32 %v4319_v32, %v4275_v42 }
 0x530   :  { %v4324_v53 = vpop.eup %3249 }
 0x531   :  { %v4326_v19 = vpop.eup %3251  ;;  %2163 = vrot.lane.b32.xlu0 %v2155_v60, %s3302_s26  ;;  %v2158_v11 = vmul.f32 %v4324_v53, %v4281_v20 }
 0x532   :  { %v2157_v23 = vmul.f32 %v4326_v19, %v1803_v49 }
 0x533   :  { %2169 = vrot.lane.b32.xlu1 %v2158_v11, %s3302_s26 }
 0x535   :  { %v4333_v58 = vpop.eup %3253  ;;  %2167 = vrot.lane.b32.xlu0 %v2157_v23, %s3302_s26 }
 0x536   :  { %v2315_v44 = vmul.f32 %v4333_v58, %v4261_v6 }
 0x537   :  { %v4338_v31 = vpop.eup %3255 }
 0x538   :  { %2324 = vrot.lane.b32.xlu1 %v2315_v44, %s3302_s26  ;;  %v2314_v1 = vmul.f32 %v4338_v31, %v4275_v42 }
 0x539   :  { %v4343_v62 = vpop.eup %3257 }
 0x53a   :  { %v4345_v28 = vpop.eup %3259  ;;  %2322 = vrot.lane.b32.xlu0 %v2314_v1, %s3302_s26  ;;  %v2317_v39 = vmul.f32 %v4343_v62, %v4281_v20 }
 0x53b   :  { %v2316_v36 = vmul.f32 %v4345_v28, %v1803_v49 }
 0x53c   :  { %2328 = vrot.lane.b32.xlu1 %v2317_v39, %s3302_s26 }
 0x53e   :  { %2326 = vrot.lane.b32.xlu0 %v2316_v36, %s3302_s26 }
 0x540   :  { %1864 = vrot.lane.b32.xlu1 %v4127_v13, %s3303_s27 }
 0x542   :  { %1862 = vrot.lane.b32.xlu0 %v4110_v34, %s3303_s27 }
 0x544   :  { %1866 = vrot.lane.b32.xlu1 %v4132_v52, %s3303_s27 }
 0x58e   :  { %v1821_v6 = vpop.permute.xlu1 %1820 }
 0x58f   :  { %v1831_v42 = vadd.f32 %v1821_v6, %v4192_v56  ;;  %v2774_v6 = vld [vmem:[%s4842_s6 + $0x5] ss:$0 sm:$0xff] }
 0x590   :  { %v1819_v40 = vpop.permute.xlu0 %1818 }
 0x591   :  { %3261 = vtanh.f32 %v1831_v42  ;;  %v1830_v20 = vadd.f32 %v1819_v40, %v4197_v50  ;;  %v2773_v42 = vld [vmem:[%s4842_s6 + $0x4] ss:$0 sm:$0xff]  ;;  %v2446_v40 = vld [vmem:[%s4846_s7 + $0x8] sm:$0xff] }
 0x592   :  { %v1825_v49 = vpop.permute.xlu1 %1824  ;;  %3059 = vmatprep.subr.mxu0 %v2446_v40 }
 0x593   :  { %3263 = vtanh.f32 %v1830_v20  ;;  %v1833_v63 = vadd.f32 %v1825_v49, %v4202_v57  ;;  %v2445_v20 = vld [vmem:[%s4846_s7] sm:$0xff]  ;;  %3060 = vmatpush3.msra.mxu0 %v2446_v40 }
 0x594   :  { %v1823_v35 = vpop.permute.xlu0 %1822  ;;  %3061 = vmatprep.subr.mxu0 %v2445_v20 }
 0x595   :  { %3265 = vtanh.f32 %v1833_v63  ;;  %v1832_v13 = vadd.f32 %v1823_v35, %v4207_v8  ;;  %3062 = vmatpush3.msra.mxu0 %v2445_v20  ;;  %v2183_v20 = vsub.f32 1.0, %v4319_v32 }
 0x597   :  { %v2007_v12 = vpop.permute.xlu1 %2006 }
 0x598   :  { %v2017_v34 = vadd.f32 %v2007_v12, %v4212_v33  ;;  %v1838_v12 = vsub.f32 1.0, %v4279_v16 }
 0x599   :  { %v2005_v51 = vpop.permute.xlu0 %2004 }
 0x59a   :  { %3267 = vtanh.f32 %v2017_v34  ;;  %v2016_v52 = vadd.f32 %v2005_v51, %v4217_v47  ;;  %v1839_v51 = vsub.f32 1.0, %v4271_v26 }
 0x59b   :  { %3269 = vtanh.f32 %v1832_v13  ;;  %v2011_v56 = vpop.permute.xlu1 %2010 }
 0x59c   :  { %v2019_v37 = vadd.f32 %v2011_v56, %v4222_v30 }
 0x59d   :  { %v2009_v50 = vpop.permute.xlu0 %2008 }
 0x59e   :  { %v3262_v7 = vpop.eup %3261  ;;  %3271 = vtanh.f32 %v2019_v37  ;;  %v2018_v57 = vadd.f32 %v2009_v50, %v4227_v22 }
 0x59f   :  { %3273 = vtanh.f32 %v2016_v52  ;;  %1848 = vrot.lane.b32.xlu1 %v3262_v7, %s3304_s28 }
 0x5a0   :  { %v3264_v8 = vpop.eup %3263  ;;  %3275 = vtanh.f32 %v2018_v57 }
 0x5a1   :  { %v2166_v4 = vpop.permute.xlu1 %2165  ;;  %1846 = vrot.lane.b32.xlu0 %v3264_v8, %s3304_s28 }
 0x5a2   :  { %v2176_v33 = vadd.f32 %v2166_v4, %v4232_v3  ;;  %v3266_v47 = vpop.eup %3265  ;;  %v1841_v4 = vsub.f32 1.0, %v4286_v21 }
 0x5a3   :  { %v2164_v45 = vpop.permute.xlu0 %2163  ;;  %1868 = vrot.lane.b32.xlu1 %v4141_v14, %s3303_s27 }
 0x5a4   :  { %3277 = vtanh.f32 %v2176_v33  ;;  %v2175_v30 = vadd.f32 %v2164_v45, %v4237_v59 }
 0x5a5   :  { %v2170_v55 = vpop.permute.xlu1 %2169  ;;  %1852 = vrot.lane.b32.xlu0 %v3266_v47, %s3304_s28 }
 0x5a6   :  { %v2178_v22 = vadd.f32 %v2170_v55, %v4242_v24  ;;  %3279 = vtanh.f32 %v2175_v30  ;;  %v1840_v30 = vsub.f32 1.0, %v4291_v27  ;;  %v2025_v55 = vsub.f32 1.0, %v4295_v5 }
 0x5a7   :  { %v3268_v15 = vpop.eup %3267  ;;  %v2168_v0 = vpop.permute.xlu0 %2167 }
 0x5a8   :  { %v3270_v38 = vpop.eup %3269  ;;  %3281 = vtanh.f32 %v2178_v22  ;;  %v2177_v3 = vadd.f32 %v2168_v0, %v4245_v25  ;;  %2034 = vrot.lane.b32.xlu1 %v3268_v15, %s3304_s28 }
 0x5a9   :  { %1850 = vrot.lane.b32.xlu0 %v3270_v38, %s3304_s28  ;;  %v2024_v38 = vsub.f32 1.0, %v4300_v9 }
 0x5aa   :  { %v2325_v14 = vpop.permute.xlu1 %2324  ;;  %3283 = vtanh.f32 %v2177_v3 }
 0x5ab   :  { %v3272_v54 = vpop.eup %3271  ;;  %v2335_v59 = vadd.f32 %v2325_v14, %v4252_v41 }
 0x5ac   :  { %v3274_v2 = vpop.eup %3273  ;;  %v2323_v46 = vpop.permute.xlu0 %2322  ;;  %2038 = vrot.lane.b32.xlu1 %v3272_v54, %s3304_s28 }
 0x5ad   :  { %3285 = vtanh.f32 %v2335_v59  ;;  %v2334_v24 = vadd.f32 %v2323_v46, %v4257_v17  ;;  %2032 = vrot.lane.b32.xlu0 %v3274_v2, %s3304_s28  ;;  %v3276_v60 = vpop.eup %3275 }
 0x5ae   :  { %v2329_v18 = vpop.permute.xlu1 %2328 }
 0x5af   :  { %3287 = vtanh.f32 %v2334_v24  ;;  %v2337_v25 = vadd.f32 %v2329_v18, %v4264_v48  ;;  %v2027_v24 = vsub.f32 1.0, %v4305_v43 }
 0x5b0   :  { %v2327_v11 = vpop.permute.xlu0 %2326 }
 0x5b1   :  { %v3278_v23 = vpop.eup %3277  ;;  %3289 = vtanh.f32 %v2337_v25  ;;  %v2336_v44 = vadd.f32 %v2327_v11, %v4267_v29  ;;  %2036 = vrot.lane.b32.xlu0 %v3276_v60, %s3304_s28 }
 0x5b2   :  { %2193 = vrot.lane.b32.xlu1 %v3278_v23, %s3304_s28  ;;  %v4407_v49 = vpop.permute.xlu1 %1864  ;;  %v2026_v23 = vsub.f32 1.0, %v4310_v10 }
 0x5b3   :  { %3291 = vtanh.f32 %v2336_v44  ;;  %v3280_v41 = vpop.eup %3279  ;;  %v1875_v57 = vmul.f32 %v4271_v26, %v4407_v49 }
 0x5b4   :  { %v4411_v35 = vpop.permute.xlu0 %1862 }
 0x5b5   :  { %v3282_v1 = vpop.eup %3281  ;;  %2191 = vrot.lane.b32.xlu0 %v3280_v41, %s3304_s28  ;;  %v1874_v50 = vmul.f32 %v4279_v16, %v4411_v35  ;;  %v2048_v25 = vmul.f32 %v4300_v9, %v4411_v35 }
 0x5b6   :  { %2197 = vrot.lane.b32.xlu1 %v3282_v1, %s3304_s28  ;;  %v4409_v63 = vpop.permute.xlu1 %1866 }
 0x5b7   :  { %v3284_v17 = vpop.eup %3283  ;;  %v1876_v26 = vmul.f32 %v4291_v27, %v4409_v63 }
 0x5b9   :  { %2195 = vrot.lane.b32.xlu0 %v3284_v17, %s3304_s28 }
 0x5ba   :  { %v3286_v48 = vpop.eup %3285 }
 0x5bb   :  { %2352 = vrot.lane.b32.xlu1 %v3286_v48, %s3304_s28 }
 0x5bc   :  { %v3288_v39 = vpop.eup %3287 }
 0x5bd   :  { %2350 = vrot.lane.b32.xlu0 %v3288_v39, %s3304_s28 }
 0x5be   :  { %v3290_v29 = vpop.eup %3289 }
 0x5bf   :  { %2356 = vrot.lane.b32.xlu1 %v3290_v29, %s3304_s28 }
 0x5c0   :  { %v3292_v36 = vpop.eup %3291 }
 0x5c1   :  { %2354 = vrot.lane.b32.xlu0 %v3292_v36, %s3304_s28 }
 0x5c3   :  { %1941 = vrot.lane.b32.xlu1 %v2774_v6, %s3303_s27  ;;  %v2050_v6 = vmul.f32 %v4310_v10, %v4409_v63  ;;  %v2208_v10 = vmul.f32 %v4315_v61, %v4407_v49 }
 0x5c5   :  { %1929 = vrot.lane.b32.xlu0 %v2773_v42, %s3303_s27 }
 0x611   :  { %v1849_v13 = vpop.permute.xlu1 %1848 }
 0x612   :  { %v1859_v37 = vmul.f32 %v1849_v13, %v1839_v51 }
 0x613   :  { %v1847_v34 = vpop.permute.xlu0 %1846 }
 0x614   :  { %v1858_v52 = vmul.f32 %v1847_v34, %v1838_v12  ;;  %v4424_v33 = vadd.f32 %v1875_v57, %v1859_v37  ;;  %v2186_v37 = vsub.f32 1.0, %v4324_v53 }
 0x615   :  { %v4415_v56 = vpop.permute.xlu1 %1868 }
 0x616   :  { %v4421_v8 = vadd.f32 %v1874_v50, %v1858_v52  ;;  %v1877_v15 = vmul.f32 %v4286_v21, %v4415_v56  ;;  %v1883_v3 = vsel %vm695_vm2, %v4424_v33, 0.0  ;;  %v2049_v21 = vmul.f32 %v4295_v5, %v4407_v49 }
 0x617   :  { %v1853_v7 = vpop.permute.xlu0 %1852  ;;  %v2184_v5 = vsub.f32 1.0, %v4315_v61  ;;  %v2051_v29 = vmul.f32 %v4305_v43, %v4415_v56 }
 0x618   :  { %v1861_v45 = vmul.f32 %v1853_v7, %v1841_v4  ;;  %v1882_v16 = vsel %vm695_vm2, %v4421_v8, 0.0  ;;  %v2207_v4 = vmul.f32 %v4319_v32, %v4411_v35 }
 0x619   :  { %v1884_v46 = vadd.f32 %v1883_v3, %v1882_v16  ;;  %v2210_v3 = vmul.f32 %v4324_v53, %v4415_v56 }
 0x61a   :  { %v2035_v47 = vpop.permute.xlu1 %2034  ;;  %v4437_v14 = vadd.f32 %v1877_v15, %v1861_v45 }
 0x61b   :  { %v1851_v22 = vpop.permute.xlu0 %1850  ;;  %v2045_v54 = vmul.f32 %v2035_v47, %v2025_v55  ;;  %v2185_v55 = vsub.f32 1.0, %v4326_v19 }
 0x61c   :  { %v1860_v0 = vmul.f32 %v1851_v22, %v1840_v30  ;;  %v1887_v44 = vsel %vm695_vm2, %v4437_v14, 0.0 }
 0x61d   :  { %v4451_v41 = vadd.f32 %v2049_v21, %v2045_v54  ;;  %v2209_v54 = vmul.f32 %v4326_v19, %v4409_v63 }
 0x61e   :  { %v4439_v59 = vadd.f32 %v1876_v26, %v1860_v0  ;;  %v2039_v2 = vpop.permute.xlu1 %2038 }
 0x61f   :  { %v2033_v18 = vpop.permute.xlu0 %2032  ;;  %v2047_v1 = vmul.f32 %v2039_v2, %v2027_v24  ;;  %v2057_v13 = vsel %vm695_vm2, %v4451_v41, 0.0 }
 0x620   :  { %v1885_v27 = vsel %vm695_vm2, %v4439_v59, 0.0  ;;  %v2044_v60 = vmul.f32 %v2033_v18, %v2024_v38 }
 0x621   :  { %v1886_v11 = vadd.f32 %v1885_v27, %v1884_v46  ;;  %v4465_v12 = vadd.f32 %v2051_v29, %v2047_v1  ;;  %v2343_v1 = vsub.f32 1.0, %v4333_v58 }
 0x622   :  { %v4453_v17 = vadd.f32 %v2048_v25, %v2044_v60 }
 0x623   :  { %v1888_v48 = vadd.f32 %v1887_v44, %v1886_v11  ;;  %v2037_v39 = vpop.permute.xlu0 %2036  ;;  %v2061_v22 = vsel %vm695_vm2, %v4465_v12, 0.0 }
 0x624   :  { %v2056_v9 = vsel %vm695_vm2, %v4453_v17, 0.0  ;;  %v2194_v36 = vpop.permute.xlu1 %2193  ;;  %v2046_v42 = vmul.f32 %v2037_v39, %v2026_v23  ;;  %v2342_v23 = vsub.f32 1.0, %v4338_v31 }
 0x625   :  { %v1889_v40 = vrot.slane %v1888_v48, 4  ;;  %v2204_v34 = vmul.f32 %v2194_v36, %v2184_v5  ;;  %v2058_v52 = vadd.f32 %v2057_v13, %v2056_v9 }
 0x626   :  { %v4467_v51 = vadd.f32 %v2050_v6, %v2046_v42  ;;  %v2345_v6 = vsub.f32 1.0, %v4343_v62  ;;  %v2366_v42 = vmul.f32 %v4338_v31, %v4411_v35  ;;  %v2344_v31 = vsub.f32 1.0, %v4345_v28 }
 0x627   :  { %v1890_v43 = vadd.f32 %v1889_v40, %v1888_v48  ;;  %v2192_v50 = vpop.permute.xlu0 %2191  ;;  %v4479_v16 = vadd.f32 %v2208_v10, %v2204_v34 }
 0x628   :  { %v2059_v7 = vsel %vm695_vm2, %v4467_v51, 0.0  ;;  %v2198_v57 = vpop.permute.xlu1 %2197  ;;  %v2203_v45 = vmul.f32 %v2192_v50, %v2183_v20 }
 0x629   :  { %v1891_v47 = vrot.slane %v1890_v43, 2  ;;  %v2060_v30 = vadd.f32 %v2059_v7, %v2058_v52  ;;  %v2206_v15 = vmul.f32 %v2198_v57, %v2186_v37  ;;  %v2216_v18 = vsel %vm695_vm2, %v4479_v16, 0.0 }
 0x62a   :  { %v4481_v26 = vadd.f32 %v2207_v4, %v2203_v45  ;;  %v2367_v52 = vmul.f32 %v4333_v58, %v4407_v49  ;;  %v2368_v49 = vmul.f32 %v4345_v28, %v4409_v63 }
 0x62b   :  { %v1892_v61 = vadd.f32 %v1891_v47, %v1890_v43  ;;  %v2062_v0 = vadd.f32 %v2061_v22, %v2060_v30  ;;  %v2196_v38 = vpop.permute.xlu0 %2195  ;;  %v4491_v21 = vadd.f32 %v2210_v3, %v2206_v15 }
 0x62c   :  { %v2215_v32 = vsel %vm695_vm2, %v4481_v26, 0.0  ;;  %v2205_v2 = vmul.f32 %v2196_v38, %v2185_v55 }
 0x62d   :  { %v1893_v46 = vrot.slane %v1892_v61, 1  ;;  %v2063_v24 = vrot.slane %v2062_v0, 4  ;;  %v2353_v27 = vpop.permute.xlu1 %2352  ;;  %v2217_v53 = vadd.f32 %v2216_v18, %v2215_v32  ;;  %v2220_v9 = vsel %vm695_vm2, %v4491_v21, 0.0 }
 0x62e   :  { %v4493_v25 = vadd.f32 %v2209_v54, %v2205_v2  ;;  %v2363_v36 = vmul.f32 %v2353_v27, %v2343_v1 }
 0x62f   :  { %v1894_v60 = vadd.f32 %v1893_v46, %v1892_v61  ;;  %v2064_v11 = vadd.f32 %v2063_v24, %v2062_v0  ;;  %v2351_v44 = vpop.permute.xlu0 %2350  ;;  %v2369_v0 = vmul.f32 %v4343_v62, %v4415_v56 }
 0x630   :  { %v2218_v19 = vsel %vm695_vm2, %v4493_v25, 0.0  ;;  %v2362_v29 = vmul.f32 %v2351_v44, %v2342_v23  ;;  %v4527_v7 = vadd.f32 %v2367_v52, %v2363_v36 }
 0x631   :  { %v1895_v48 = vmul.f32 0.03125, %v1894_v60  ;;  %v2065_v5 = vrot.slane %v2064_v11, 2  ;;  %v2219_v39 = vadd.f32 %v2218_v19, %v2217_v53  ;;  %v2357_v50 = vpop.permute.xlu1 %2356 }
 0x632   :  { %v2365_v47 = vmul.f32 %v2357_v50, %v2345_v6  ;;  %v2375_v2 = vsel %vm695_vm2, %v4527_v7, 0.0 }
 0x633   :  { %v4505_v40 = vsub.f32 %v4421_v8, %v1895_v48  ;;  %v4508_v20 = vsub.f32 %v4424_v33, %v1895_v48  ;;  %v4511_v13 = vsub.f32 %v4439_v59, %v1895_v48  ;;  %v4514_v34 = vsub.f32 %v4437_v14, %v1895_v48  ;;  %v2355_v14 = vpop.permute.xlu0 %2354 }
 0x634   :  { %v2066_v43 = vadd.f32 %v2065_v5, %v2064_v11  ;;  %v2221_v37 = vadd.f32 %v2220_v9, %v2219_v39  ;;  %v4525_v59 = vadd.f32 %v2366_v42, %v2362_v29  ;;  %v2364_v15 = vmul.f32 %v2355_v14, %v2344_v31 }
 0x635   :  { %v1900_v35 = vmul.f32 %v4505_v40, %v4505_v40  ;;  %v1901_v8 = vmul.f32 %v4508_v20, %v4508_v20  ;;  %v1902_v33 = vmul.f32 %v4511_v13, %v4511_v13  ;;  %v1903_v57 = vmul.f32 %v4514_v34, %v4514_v34 }
 0x636   :  { %v2067_v10 = vrot.slane %v2066_v43, 1  ;;  %v2222_v58 = vrot.slane %v2221_v37, 4  ;;  %v2374_v28 = vsel %vm695_vm2, %v4525_v59, 0.0  ;;  %v4540_v32 = vadd.f32 %v2368_v49, %v2364_v15 }
 0x637   :  { %v1904_v4 = vsel %vm695_vm2, %v1900_v35, 0.0  ;;  %v1905_v45 = vsel %vm695_vm2, %v1901_v8, 0.0  ;;  %v1907_v61 = vsel %vm695_vm2, %v1902_v33, 0.0  ;;  %v1909_v54 = vsel %vm695_vm2, %v1903_v57, 0.0 }
 0x638   :  { %v1906_v30 = vadd.f32 %v1905_v45, %v1904_v4  ;;  %v2068_v55 = vadd.f32 %v2067_v10, %v2066_v43  ;;  %v2223_v22 = vadd.f32 %v2222_v58, %v2221_v37  ;;  %v4545_v46 = vadd.f32 %v2369_v0, %v2365_v47 }
 0x639   :  { %v2376_v11 = vadd.f32 %v2375_v2, %v2374_v28  ;;  %v2377_v53 = vsel %vm695_vm2, %v4540_v32, 0.0 }
 0x63a   :  { %v1908_v63 = vadd.f32 %v1907_v61, %v1906_v30  ;;  %v2069_v38 = vmul.f32 0.03125, %v2068_v55  ;;  %v2224_v3 = vrot.slane %v2223_v22, 2 }
 0x63b   :  { %v2378_v1 = vadd.f32 %v2377_v53, %v2376_v11 }
 0x63c   :  { %v1910_v24 = vadd.f32 %v1909_v54, %v1908_v63  ;;  %v4548_v18 = vsub.f32 %v4453_v17, %v2069_v38  ;;  %v4551_v62 = vsub.f32 %v4451_v41, %v2069_v38  ;;  %v4554_v56 = vsub.f32 %v4467_v51, %v2069_v38 }
 0x63d   :  { %v4557_v27 = vsub.f32 %v4465_v12, %v2069_v38  ;;  %v2225_v60 = vadd.f32 %v2224_v3, %v2223_v22  ;;  %v2379_v12 = vsel %vm695_vm2, %v4545_v46, 0.0 }
 0x63e   :  { %v1911_v23 = vrot.slane %v1910_v24, 4  ;;  %v2074_v44 = vmul.f32 %v4548_v18, %v4548_v18  ;;  %v2075_v17 = vmul.f32 %v4551_v62, %v4551_v62  ;;  %v2076_v41 = vmul.f32 %v4554_v56, %v4554_v56 }
 0x63f   :  { %v2226_v51 = vrot.slane %v2225_v60, 1  ;;  %v2077_v48 = vmul.f32 %v4557_v27, %v4557_v27  ;;  %v2380_v36 = vadd.f32 %v2379_v12, %v2378_v1 }
 0x640   :  { %v1912_v19 = vadd.f32 %v1911_v23, %v1910_v24  ;;  %v2078_v5 = vsel %vm695_vm2, %v2074_v44, 0.0  ;;  %v2079_v39 = vsel %vm695_vm2, %v2075_v17, 0.0  ;;  %v2081_v42 = vsel %vm695_vm2, %v2076_v41, 0.0 }
 0x641   :  { %v2080_v29 = vadd.f32 %v2079_v39, %v2078_v5  ;;  %v2227_v9 = vadd.f32 %v2226_v51, %v2225_v60  ;;  %v2381_v37 = vrot.slane %v2380_v36, 4  ;;  %v2083_v31 = vsel %vm695_vm2, %v2077_v48, 0.0 }
 0x642   :  { %v1913_v6 = vrot.slane %v1912_v19, 2 }
 0x643   :  { %v2082_v43 = vadd.f32 %v2081_v42, %v2080_v29  ;;  %v2228_v52 = vmul.f32 0.03125, %v2227_v9  ;;  %v2382_v49 = vadd.f32 %v2381_v37, %v2380_v36 }
 0x644   :  { %v1914_v50 = vadd.f32 %v1913_v6, %v1912_v19 }
 0x645   :  { %v2084_v35 = vadd.f32 %v2083_v31, %v2082_v43  ;;  %v4576_v8 = vsub.f32 %v4481_v26, %v2228_v52  ;;  %v4579_v33 = vsub.f32 %v4479_v16, %v2228_v52  ;;  %v4582_v14 = vsub.f32 %v4493_v25, %v2228_v52 }
 0x646   :  { %v1915_v10 = vrot.slane %v1914_v50, 1  ;;  %v4585_v58 = vsub.f32 %v4491_v21, %v2228_v52  ;;  %v2383_v47 = vrot.slane %v2382_v49, 2 }
 0x647   :  { %v2085_v57 = vrot.slane %v2084_v35, 4  ;;  %v2233_v4 = vmul.f32 %v4576_v8, %v4576_v8  ;;  %v2234_v45 = vmul.f32 %v4579_v33, %v4579_v33  ;;  %v2235_v26 = vmul.f32 %v4582_v14, %v4582_v14 }
 0x648   :  { %v1916_v16 = vadd.f32 %v1915_v10, %v1914_v50  ;;  %v2236_v25 = vmul.f32 %v4585_v58, %v4585_v58  ;;  %v2384_v61 = vadd.f32 %v2383_v47, %v2382_v49 }
 0x649   :  { %v2086_v30 = vadd.f32 %v2085_v57, %v2084_v35  ;;  %v2237_v21 = vsel %vm695_vm2, %v2233_v4, 0.0  ;;  %v2238_v55 = vsel %vm695_vm2, %v2234_v45, 0.0  ;;  %v2240_v28 = vsel %vm695_vm2, %v2235_v26, 0.0  ;;  %v4623_v35 = vpop.permute.xlu0 %1929  ;;  %v4628_v26 = vpop.permute.xlu1 %1941 }
 0x64a   :  { %v1917_v22 = vmul.f32 0.03125, %v1916_v16  ;;  %v2239_v15 = vadd.f32 %v2238_v55, %v2237_v21  ;;  %v2385_v3 = vrot.slane %v2384_v61, 1  ;;  %v2242_v2 = vsel %vm695_vm2, %v2236_v25, 0.0 }
 0x64b   :  { %v2087_v0 = vrot.slane %v2086_v30, 2 }
 0x64c   :  { %v1918_v63 = vadd.f32 1e-05, %v1917_v22  ;;  %v2241_v38 = vadd.f32 %v2240_v28, %v2239_v15  ;;  %v2386_v60 = vadd.f32 %v2385_v3, %v2384_v61 }
 0x64d   :  { %v2088_v54 = vadd.f32 %v2087_v0, %v2086_v30 }
 0x64e   :  { %3293 = vrsqrt.f32 %v1918_v63  ;;  %v2243_v24 = vadd.f32 %v2242_v2, %v2241_v38  ;;  %v2387_v23 = vmul.f32 0.03125, %v2386_v60 }
 0x64f   :  { %v2089_v11 = vrot.slane %v2088_v54, 1 }
 0x650   :  { %v2244_v53 = vrot.slane %v2243_v24, 4  ;;  %v4600_v41 = vsub.f32 %v4525_v59, %v2387_v23  ;;  %v4603_v51 = vsub.f32 %v4527_v7, %v2387_v23  ;;  %v4606_v12 = vsub.f32 %v4540_v32, %v2387_v23 }
 0x651   :  { %v2090_v44 = vadd.f32 %v2089_v11, %v2088_v54  ;;  %v4609_v19 = vsub.f32 %v4545_v46, %v2387_v23 }
 0x652   :  { %v2245_v17 = vadd.f32 %v2244_v53, %v2243_v24  ;;  %v2392_v5 = vmul.f32 %v4600_v41, %v4600_v41  ;;  %v2393_v39 = vmul.f32 %v4603_v51, %v4603_v51  ;;  %v2394_v59 = vmul.f32 %v4606_v12, %v4606_v12 }
 0x653   :  { %v2091_v1 = vmul.f32 0.03125, %v2090_v44  ;;  %v2395_v32 = vmul.f32 %v4609_v19, %v4609_v19 }
 0x654   :  { %v2246_v48 = vrot.slane %v2245_v17, 2  ;;  %v2396_v9 = vsel %vm695_vm2, %v2392_v5, 0.0  ;;  %v2397_v46 = vsel %vm695_vm2, %v2393_v39, 0.0  ;;  %v2399_v42 = vsel %vm695_vm2, %v2394_v59, 0.0 }
 0x655   :  { %v2092_v29 = vadd.f32 1e-05, %v2091_v1  ;;  %v2398_v36 = vadd.f32 %v2397_v46, %v2396_v9  ;;  %v2401_v37 = vsel %vm695_vm2, %v2395_v32, 0.0 }
 0x656   :  { %v2247_v7 = vadd.f32 %v2246_v48, %v2245_v17 }
 0x657   :  { %3295 = vrsqrt.f32 %v2092_v29  ;;  %v2400_v43 = vadd.f32 %v2399_v42, %v2398_v36 }
 0x658   :  { %v2248_v6 = vrot.slane %v2247_v7, 1 }
 0x659   :  { %v2402_v31 = vadd.f32 %v2401_v37, %v2400_v43 }
 0x65a   :  { %v2249_v52 = vadd.f32 %v2248_v6, %v2247_v7 }
 0x65b   :  { %v3294_v50 = vpop.eup %3293  ;;  %v2403_v45 = vrot.slane %v2402_v31, 4 }
 0x65c   :  { %v1922_v10 = vmul.f32 %v3294_v50, %v4511_v13  ;;  %v2250_v49 = vmul.f32 0.03125, %v2249_v52  ;;  %v1921_v57 = vmul.f32 %v3294_v50, %v4508_v20  ;;  %v1920_v4 = vmul.f32 %v3294_v50, %v4505_v40 }
 0x65d   :  { %v1923_v16 = vmul.f32 %v3294_v50, %v4514_v34  ;;  %v2404_v21 = vadd.f32 %v2403_v45, %v2402_v31 }
 0x65e   :  { %v2251_v47 = vadd.f32 1e-05, %v2250_v49  ;;  %v1933_v30 = vmul.f32 %v4623_v35, %v1921_v57  ;;  %v1932_v25 = vmul.f32 %v4623_v35, %v1920_v4  ;;  %v1934_v55 = vmul.f32 %v4623_v35, %v1922_v10 }
 0x65f   :  { %v1935_v40 = vmul.f32 %v4623_v35, %v1923_v16  ;;  %v2405_v22 = vrot.slane %v2404_v21, 2 }
 0x660   :  { %3297 = vrsqrt.f32 %v2251_v47  ;;  %v1945_v13 = vadd.f32 %v4628_v26, %v1933_v30  ;;  %v1944_v20 = vadd.f32 %v4628_v26, %v1932_v25  ;;  %v1946_v0 = vadd.f32 %v4628_v26, %v1934_v55 }
 0x661   :  { %v2406_v34 = vadd.f32 %v2405_v22, %v2404_v21  ;;  %v1947_v61 = vadd.f32 %v4628_v26, %v1935_v40  ;;  %v2799_v40 = vld [vmem:[%s4846_s7 + $0x10] ss:$0 sm:$0xff] }
 0x662   :  { %1954 = vrot.lane.b32.xlu1 %v1945_v13, %s3304_s28  ;;  %1952 = vrot.lane.b32.xlu0 %v1944_v20, %s3304_s28 }
 0x663   :  { %v2407_v63 = vrot.slane %v2406_v34, 1 }
 0x664   :  { %v3296_v15 = vpop.eup %3295 }
 0x665   :  { %v2096_v28 = vmul.f32 %v3296_v15, %v4554_v56  ;;  %v2095_v38 = vmul.f32 %v3296_v15, %v4551_v62  ;;  %v2094_v3 = vmul.f32 %v3296_v15, %v4548_v18  ;;  %v2097_v54 = vmul.f32 %v3296_v15, %v4557_v27 }
 0x666   :  { %1958 = vrot.lane.b32.xlu1 %v1947_v61, %s3304_s28  ;;  %1956 = vrot.lane.b32.xlu0 %v1946_v0, %s3304_s28  ;;  %v2408_v2 = vadd.f32 %v2407_v63, %v2406_v34 }
 0x667   :  { %v2099_v24 = vmul.f32 %v2095_v38, %v4623_v35  ;;  %v2098_v60 = vmul.f32 %v2094_v3, %v4623_v35  ;;  %v2100_v11 = vmul.f32 %v2096_v28, %v4623_v35  ;;  %v2101_v18 = vmul.f32 %v2097_v54, %v4623_v35 }
 0x668   :  { %v2409_v53 = vmul.f32 0.03125, %v2408_v2 }
 0x669   :  { %v2103_v56 = vadd.f32 %v2099_v24, %v4628_v26  ;;  %v2102_v62 = vadd.f32 %v2098_v60, %v4628_v26  ;;  %v2105_v44 = vadd.f32 %v2101_v18, %v4628_v26  ;;  %v2104_v17 = vadd.f32 %v2100_v11, %v4628_v26 }
 0x66a   :  { %v2410_v23 = vadd.f32 1e-05, %v2409_v53 }
 0x66b   :  { %2112 = vrot.lane.b32.xlu1 %v2103_v56, %s3304_s28  ;;  %2110 = vrot.lane.b32.xlu0 %v2102_v62, %s3304_s28 }
 0x66c   :  { %3299 = vrsqrt.f32 %v2410_v23 }
 0x66d   :  { %v3298_v27 = vpop.eup %3297 }
 0x66e   :  { %v2255_v1 = vmul.f32 %v3298_v27, %v4582_v14  ;;  %v2254_v48 = vmul.f32 %v3298_v27, %v4579_v33  ;;  %v2253_v5 = vmul.f32 %v3298_v27, %v4576_v8  ;;  %v2256_v39 = vmul.f32 %v3298_v27, %v4585_v58 }
 0x66f   :  { %2116 = vrot.lane.b32.xlu1 %v2105_v44, %s3304_s28  ;;  %2114 = vrot.lane.b32.xlu0 %v2104_v17, %s3304_s28 }
 0x670   :  { %v2258_v59 = vmul.f32 %v2254_v48, %v4623_v35  ;;  %v2257_v29 = vmul.f32 %v2253_v5, %v4623_v35  ;;  %v2260_v14 = vmul.f32 %v2256_v39, %v4623_v35  ;;  %v2259_v33 = vmul.f32 %v2255_v1, %v4623_v35 }
 0x672   :  { %v2262_v7 = vadd.f32 %v2258_v59, %v4628_v26  ;;  %v2261_v32 = vadd.f32 %v2257_v29, %v4628_v26  ;;  %v2264_v8 = vadd.f32 %v2260_v14, %v4628_v26  ;;  %v2263_v58 = vadd.f32 %v2259_v33, %v4628_v26 }
 0x674   :  { %2271 = vrot.lane.b32.xlu1 %v2262_v7, %s3304_s28  ;;  %2269 = vrot.lane.b32.xlu0 %v2261_v32, %s3304_s28 }
 0x678   :  { %2275 = vrot.lane.b32.xlu1 %v2264_v8, %s3304_s28  ;;  %2273 = vrot.lane.b32.xlu0 %v2263_v58, %s3304_s28 }
 0x679   :  { %v3300_v9 = vpop.eup %3299 }
 0x67a   :  { %v2414_v46 = vmul.f32 %v3300_v9, %v4606_v12  ;;  %v2413_v36 = vmul.f32 %v3300_v9, %v4603_v51  ;;  %v2412_v6 = vmul.f32 %v3300_v9, %v4600_v41  ;;  %v2415_v42 = vmul.f32 %v3300_v9, %v4609_v19 }
 0x67c   :  { %v2417_v43 = vmul.f32 %v2413_v36, %v4623_v35  ;;  %v2416_v52 = vmul.f32 %v2412_v6, %v4623_v35  ;;  %v2419_v31 = vmul.f32 %v2415_v42, %v4623_v35  ;;  %v2418_v10 = vmul.f32 %v2414_v46, %v4623_v35 }
 0x67e   :  { %v2421_v37 = vadd.f32 %v2417_v43, %v4628_v26  ;;  %v2420_v50 = vadd.f32 %v2416_v52, %v4628_v26  ;;  %v2423_v41 = vadd.f32 %v2419_v31, %v4628_v26  ;;  %v2422_v51 = vadd.f32 %v2418_v10, %v4628_v26 }
 0x680   :  { %2430 = vrot.lane.b32.xlu1 %v2421_v37, %s3304_s28  ;;  %2428 = vrot.lane.b32.xlu0 %v2420_v50, %s3304_s28 }
 0x684   :  { %2434 = vrot.lane.b32.xlu1 %v2423_v41, %s3304_s28  ;;  %2432 = vrot.lane.b32.xlu0 %v2422_v51, %s3304_s28 }
 0x6d4   :  { %v1955_v12 = vpop.permute.xlu1 %1954  ;;  %v1953_v19 = vpop.permute.xlu0 %1952 }
 0x6d5   :  { %1965 = vst.msk [vmem:[%s4847_s10 + $0x8] sm:$0xff] %vm284_vm1, %v1955_v12  ;;  %1964 = vst.msk [vmem:[%s4847_s10] sm:$0xff] %vm284_vm1, %v1953_v19  ;;  %3063 = vmatprep.mubr.msk.f32.mxu0 %vm284_vm1, %v1953_v19 }
 0x6d6   :  { %3064 = vmatmul.mubr.msk.f32.vlgmr.msra.gmra.mxu0 %vm284_vm1, %v1955_v12 }
 0x6d8   :  { %v1959_v35 = vpop.permute.xlu1 %1958  ;;  %v1957_v49 = vpop.permute.xlu0 %1956 }
 0x6d9   :  { %1967 = vst.msk [vmem:[%s4847_s10 + $0x18] sm:$0xff] %vm284_vm1, %v1959_v35  ;;  %1966 = vst.msk [vmem:[%s4847_s10 + $0x10] sm:$0xff] %vm284_vm1, %v1957_v49  ;;  %3066 = vmatprep.mubr.msk.f32.mxu0 %vm284_vm1, %v1957_v49 }
 0x6da   :  { %3067 = vmatmul.mubr.msk.f32.gmra.mxu0 %vm284_vm1, %v1959_v35 }
 0x6dd   :  { %v2113_v57 = vpop.permute.xlu1 %2112  ;;  %v2111_v4 = vpop.permute.xlu0 %2110 }
 0x6de   :  { %2780 = vst.msk [vmem:[%s4847_s10 + $0x28] sm:$0xff] %vm284_vm1, %v2113_v57  ;;  %2779 = vst.msk [vmem:[%s4847_s10 + $0x20] sm:$0xff] %vm284_vm1, %v2111_v4  ;;  %3069 = vmatprep.mubr.msk.f32.mxu0 %vm284_vm1, %v2111_v4 }
 0x6df   :  { %3070 = vmatmul.mubr.msk.f32.gmra.mxu0 %vm284_vm1, %v2113_v57 }
 0x6e1   :  { %v2117_v45 = vpop.permute.xlu1 %2116  ;;  %v2115_v26 = vpop.permute.xlu0 %2114 }
 0x6e2   :  { %2782 = vst.msk [vmem:[%s4847_s10 + $0x38] sm:$0xff] %vm284_vm1, %v2117_v45  ;;  %2781 = vst.msk [vmem:[%s4847_s10 + $0x30] sm:$0xff] %vm284_vm1, %v2115_v26  ;;  %3072 = vmatprep.mubr.msk.f32.mxu0 %vm284_vm1, %v2115_v26 }
 0x6e3   :  { %3073 = vmatmul.mubr.msk.f32.gmra.mxu0 %vm284_vm1, %v2117_v45 }
 0x6e6   :  { %v2272_v16 = vpop.permute.xlu1 %2271  ;;  %v2270_v47 = vpop.permute.xlu0 %2269 }
 0x6e7   :  { %2788 = vst.msk [vmem:[%s4847_s10 + $0x48] sm:$0xff] %vm284_vm1, %v2272_v16  ;;  %2787 = vst.msk [vmem:[%s4847_s10 + $0x40] sm:$0xff] %vm284_vm1, %v2270_v47  ;;  %3075 = vmatprep.mubr.msk.f32.mxu0 %vm284_vm1, %v2270_v47 }
 0x6e8   :  { %3076 = vmatmul.mubr.msk.f32.gmra.mxu0 %vm284_vm1, %v2272_v16 }
 0x6ea   :  { %v2276_v30 = vpop.permute.xlu1 %2275  ;;  %v2274_v25 = vpop.permute.xlu0 %2273 }
 0x6eb   :  { %2790 = vst.msk [vmem:[%s4847_s10 + $0x58] sm:$0xff] %vm284_vm1, %v2276_v30  ;;  %2789 = vst.msk [vmem:[%s4847_s10 + $0x50] sm:$0xff] %vm284_vm1, %v2274_v25  ;;  %3078 = vmatprep.mubr.msk.f32.mxu0 %vm284_vm1, %v2274_v25 }
 0x6ec   :  { %3079 = vmatmul.mubr.msk.f32.gmra.mxu0 %vm284_vm1, %v2276_v30 }
 0x6f2   :  { %v2431_v21 = vpop.permute.xlu1 %2430  ;;  %v2429_v55 = vpop.permute.xlu0 %2428 }
 0x6f3   :  { %2796 = vst.msk [vmem:[%s4847_s10 + $0x68] sm:$0xff] %vm284_vm1, %v2431_v21  ;;  %2795 = vst.msk [vmem:[%s4847_s10 + $0x60] sm:$0xff] %vm284_vm1, %v2429_v55  ;;  %3081 = vmatprep.mubr.msk.f32.mxu0 %vm284_vm1, %v2429_v55 }
 0x6f4   :  { %3082 = vmatmul.mubr.msk.f32.gmra.mxu0 %vm284_vm1, %v2431_v21 }
 0x6f6   :  { %v2435_v13 = vpop.permute.xlu1 %2434  ;;  %v2433_v20 = vpop.permute.xlu0 %2432 }
 0x6f7   :  { %2798 = vst.msk [vmem:[%s4847_s10 + $0x78] sm:$0xff] %vm284_vm1, %v2435_v13  ;;  %2797 = vst.msk [vmem:[%s4847_s10 + $0x70] sm:$0xff] %vm284_vm1, %v2433_v20  ;;  %3084 = vmatprep.mubr.msk.f32.mxu0 %vm284_vm1, %v2433_v20 }
 0x6f8   :  { %3085 = vmatmul.mubr.msk.f32.gmra.mxu0 %vm284_vm1, %v2435_v13 }
 0x796   :  { %v3065_v22 = vpop.f32.mrf.mxu0 }
 0x797   :  { %v2556_v34 = vadd.f32 %v3065_v22, %v2799_v40 }
 0x798   :  { %v2550_v15 = vpop.f32.mrf.mxu0 }
 0x799   :  { %2631 = vst.msk [vmem:[%s4848_s8 + $0x8] sm:$0xff] %vm2629_vm3, %v2556_v34  ;;  %v2551_v61 = vadd.f32 %v2799_v40, %v2550_v15 }
 0x79a   :  { %v3068_v0 = vpop.f32.mrf.mxu0 }
 0x79b   :  { %2630 = vst.msk [vmem:[%s4848_s8] sm:$0xff] %vm2629_vm3, %v2551_v61  ;;  %v2566_v28 = vadd.f32 %v3068_v0, %v2799_v40 }
 0x79c   :  { %v2560_v63 = vpop.f32.mrf.mxu0 }
 0x79d   :  { %2633 = vst.msk [vmem:[%s4848_s8 + $0x18] sm:$0xff] %vm2629_vm3, %v2566_v28  ;;  %v2561_v38 = vadd.f32 %v2799_v40, %v2560_v63 }
 0x79f   :  { %2632 = vst.msk [vmem:[%s4848_s8 + $0x10] sm:$0xff] %vm2629_vm3, %v2561_v38  ;;  %v3071_v3 = vpop.f32.mrf.mxu0 }
 0x7a0   :  { %v2576_v54 = vadd.f32 %v3071_v3, %v2799_v40 }
 0x7a1   :  { %v2570_v2 = vpop.f32.mrf.mxu0 }
 0x7a2   :  { %2817 = vst.msk [vmem:[%s4848_s8 + $0x28] sm:$0xff] %vm2629_vm3, %v2576_v54  ;;  %v2571_v24 = vadd.f32 %v2799_v40, %v2570_v2 }
 0x7a3   :  { %v3074_v60 = vpop.f32.mrf.mxu0 }
 0x7a4   :  { %2816 = vst.msk [vmem:[%s4848_s8 + $0x20] sm:$0xff] %vm2629_vm3, %v2571_v24  ;;  %v2586_v11 = vadd.f32 %v3074_v60, %v2799_v40 }
 0x7a5   :  { %v2580_v53 = vpop.f32.mrf.mxu0 }
 0x7a6   :  { %2819 = vst.msk [vmem:[%s4848_s8 + $0x38] sm:$0xff] %vm2629_vm3, %v2586_v11  ;;  %v2581_v56 = vadd.f32 %v2799_v40, %v2580_v53 }
 0x7a8   :  { %2818 = vst.msk [vmem:[%s4848_s8 + $0x30] sm:$0xff] %vm2629_vm3, %v2581_v56  ;;  %v3077_v62 = vpop.f32.mrf.mxu0 }
 0x7a9   :  { %v2596_v18 = vadd.f32 %v3077_v62, %v2799_v40 }
 0x7aa   :  { %v2590_v23 = vpop.f32.mrf.mxu0 }
 0x7ab   :  { %2821 = vst.msk [vmem:[%s4848_s8 + $0x48] sm:$0xff] %vm2629_vm3, %v2596_v18  ;;  %v2591_v27 = vadd.f32 %v2799_v40, %v2590_v23 }
 0x7ac   :  { %v3080_v44 = vpop.f32.mrf.mxu0 }
 0x7ad   :  { %2820 = vst.msk [vmem:[%s4848_s8 + $0x40] sm:$0xff] %vm2629_vm3, %v2591_v27  ;;  %v2606_v17 = vadd.f32 %v3080_v44, %v2799_v40 }
 0x7ae   :  { %v2600_v1 = vpop.f32.mrf.mxu0 }
 0x7af   :  { %2823 = vst.msk [vmem:[%s4848_s8 + $0x58] sm:$0xff] %vm2629_vm3, %v2606_v17  ;;  %v2601_v48 = vadd.f32 %v2799_v40, %v2600_v1 }
 0x7b1   :  { %2822 = vst.msk [vmem:[%s4848_s8 + $0x50] sm:$0xff] %vm2629_vm3, %v2601_v48 }
 0x7b4   :  { %v3083_v5 = vpop.f32.mrf.mxu0 }
 0x7b5   :  { %v2616_v39 = vadd.f32 %v3083_v5, %v2799_v40 }
 0x7b6   :  { %v2610_v59 = vpop.f32.mrf.mxu0 }
 0x7b7   :  { %2825 = vst.msk [vmem:[%s4848_s8 + $0x68] sm:$0xff] %vm2629_vm3, %v2616_v39  ;;  %v2611_v29 = vadd.f32 %v2799_v40, %v2610_v59 }
 0x7b8   :  { %v3086_v7 = vpop.f32.mrf.mxu0 }
 0x7b9   :  { %2824 = vst.msk [vmem:[%s4848_s8 + $0x60] sm:$0xff] %vm2629_vm3, %v2611_v29  ;;  %v2626_v32 = vadd.f32 %v3086_v7, %v2799_v40 }
 0x7ba   :  { %v2620_v14 = vpop.f32.mrf.mxu0 }
 0x7bb   :  { %2827 = vst.msk [vmem:[%s4848_s8 + $0x78] sm:$0xff] %vm2629_vm3, %v2626_v32  ;;  %v2621_v33 = vadd.f32 %v2799_v40, %v2620_v14 }
 0x7bd   :  { %2826 = vst.msk [vmem:[%s4848_s8 + $0x70] sm:$0xff] %vm2629_vm3, %v2621_v33 }

</bundles_post_ra>
